<compile_context>
chip_gen: v5e
topology: v5e:2x2
jax: 0.10.0
libtpu: 0.0.40
codegen_flags: <defaults>
</compile_context>

<pallas_src>
import functools

import jax
import jax.numpy as jnp
from jax.experimental import pallas as pl
from jax.experimental.pallas import tpu as pltpu


LEAKY_SLOPE = 0.2


# --------------------------------------------------------------------------- #
# Fused kernel: conv1+LReLU -> conv2+LReLU -> conv3 -> batch mean, all in VMEM #
# --------------------------------------------------------------------------- #
def _fused_dcgan_d_kernel(a1_ref, w1_ref, w2_ref, w3t_ref, out_ref,
                          o1_ref, h1p_ref, a2blk_ref, *, n_batch, slope):
    """All refs live in VMEM.

    a1_ref   : (64n, 16*nc)     layer-1 im2col, rows grouped (ph, pw, n, i, j),
                                columns ordered (kh, kw, c).
    w1_ref   : (16*nc, ndf)     packed conv-1 weight.
    w2_ref   : (16, ndf, 2ndf)  packed conv-2 weight, leading dim = kh*4+kw.
    w3t_ref  : (16n, 2ndf)      conv-3 weight replicated per batch, rows (n, i2, j2).
    out_ref  : (1, 128)         scalar result, broadcast along lanes.
    o1_ref   : (64n, ndf)       scratch: layer-1 activations.
    h1p_ref  : (4n, 5, 5, ndf)  scratch: zero-padded parity planes of the 8x8 map.
    a2blk_ref: (16n, ndf)       scratch: one (kh, kw) column block of layer-2 im2col.
    """
    # ---- layer 1: single GEMM on the MXU, fused LeakyReLU ------------------
    o1 = jnp.dot(a1_ref[...], w1_ref[...], preferred_element_type=jnp.float32)
    o1_ref[...] = jnp.where(o1 > 0, o1, slope * o1)

    # ---- handoff: scatter layer-1 rows into zero-padded parity planes ------
    # Plane (ph, pw) of the (pad=1) 10x10 map holds pixels at padded coordinates
    # (2u+ph, 2v+pw).  Because layer-1 rows were emitted grouped by output-pixel
    # parity, each plane interior is a run of contiguous (4, ndf) row blocks.
    h1p_ref[...] = jnp.zeros(h1p_ref.shape, jnp.float32)
    for ph in range(2):
        for pw in range(2):
            g = ph * 2 + pw
            i0, j0 = 1 - ph, 1 - pw      # interior offset inside the 5x5 plane
            for n in range(n_batch):
                for i in range(4):
                    r = (g * n_batch + n) * 16 + i * 4
                    h1p_ref[g * n_batch + n, i0 + i, j0:j0 + 4, :] = (
                        o1_ref[r:r + 4, :])

    # ---- layer 2: accumulate 16 (kh, kw) GEMMs, fused LeakyReLU ------------
    m2 = n_batch * 16
    oc2 = w2_ref.shape[2]
    acc2 = jnp.zeros((m2, oc2), jnp.float32)
    for kh in range(4):
        for kw in range(4):
            kidx = kh * 4 + kw
            ph, a = kh % 2, kh // 2
            pw, b = kw % 2, kw // 2
            plane = (ph * 2 + pw) * n_batch
            # Column block (kh, kw): contiguous (4, ndf) slices of one parity
            # plane, one per (batch, output-row) pair.
            for n in range(n_batch):
                for i2 in range(4):
                    r = (n * 4 + i2) * 4
                    a2blk_ref[r:r + 4, :] = h1p_ref[plane + n, i2 + a, b:b + 4, :]
            acc2 = acc2 + jnp.dot(a2blk_ref[...], w2_ref[kidx],
                                  preferred_element_type=jnp.float32)
    o2 = jnp.where(acc2 > 0, acc2, slope * acc2)

    # ---- layer 3 (4x4 valid conv -> 1x1) + batch mean, fused ---------------
    # conv3 contracts over all of (i2, j2, c); with w3 pre-tiled per batch row it
    # is an elementwise product + full reduction.  Dividing by n gives mean(0).
    t = o2 * w3t_ref[...]
    s = jnp.sum(t, axis=1, keepdims=True)      # cross-lane reduce   -> (16n, 1)
    s = jnp.sum(s, axis=0, keepdims=True)      # cross-sublane reduce -> (1, 1)
    s = s * (1.0 / n_batch)
    out_ref[...] = jnp.broadcast_to(s, out_ref.shape)   # lane-dense store


# --------------------------------------------------------------------------- #
# Host-side glue (jitted): layer-1 im2col with parity-grouped rows             #
# --------------------------------------------------------------------------- #
def _build_a1(x_nchw):
    """Layer-1 im2col matrix, rows ordered (ph, pw, n, i, j), cols (kh, kw, c)."""
    n, c0, h, w = x_nchw.shape
    oh = h // 2
    x = jnp.transpose(x_nchw, (0, 2, 3, 1))                  # NHWC
    xp = jnp.pad(x, ((0, 0), (1, 1), (1, 1), (0, 0)))        # (n, 18, 18, c0)
    cols = []
    for kh in range(4):
        for kw in range(4):
            cols.append(
                xp[:, kh:kh + 2 * oh - 1:2, kw:kw + 2 * oh - 1:2, :])  # (n,8,8,c0)
    p = jnp.stack(cols, axis=3)                               # (n, 8, 8, 16, c0)
    groups = []
    for ph in (0, 1):
        for pw in (0, 1):
            # output pixels with oh = 2i + (1-ph), ow = 2j + (1-pw)
            groups.append(p[:, (1 - ph)::2, (1 - pw)::2, :, :])  # (n, 4, 4, 16, c0)
    a1 = jnp.stack(groups, axis=0)                            # (4, n, 4, 4, 16, c0)
    return a1.reshape(4 * n * (oh // 2) * (oh // 2), 16 * c0)


@jax.jit
def dcgan_d_nobn_forward(x_nchw, packed):
    """Forward pass of DCGAN_D_nobn (isize=16, n_extra_layers=0). Returns shape (1,)."""
    n, c0, h, w = x_nchw.shape
    assert h == 16 and w == 16, "kernel structure is specialized to isize=16"
    oc1 = packed["w1p"].shape[1]          # ndf
    oc2 = packed["w2p"].shape[2]          # 2*ndf
    a1 = _build_a1(x_nchw)                # (64n, 16*c0)
    m1, k1 = a1.shape
    m2 = n * 16

    out = pl.pallas_call(
        functools.partial(_fused_dcgan_d_kernel, n_batch=n, slope=LEAKY_SLOPE),
        out_shape=jax.ShapeDtypeStruct((1, 128), jnp.float32),
        grid=(1,),
        in_specs=[
            pl.BlockSpec((m1, k1), lambda i: (0, 0)),
            pl.BlockSpec(packed["w1p"].shape, lambda i: (0, 0)),
            pl.BlockSpec(packed["w2p"].shape, lambda i: (0, 0, 0)),
            pl.BlockSpec(packed["w3t"].shape, lambda i: (0, 0)),
        ],
        out_specs=pl.BlockSpec((1, 128), lambda i: (0, 0)),
        scratch_shapes=[
            pltpu.VMEM((m1, oc1), jnp.float32),           # layer-1 activations
            pltpu.VMEM((4 * n, 5, 5, oc1), jnp.float32),  # padded parity planes
            pltpu.VMEM((m2, oc1), jnp.float32),           # layer-2 column block
        ],
        compiler_params=pltpu.CompilerParams(
            dimension_semantics=("arbitrary",)),
    )(a1, packed["w1p"], packed["w2p"], packed["w3t"])
    return out[0, 0].reshape(1)


# --------------------------------------------------------------------------- #
# Parameters                                                                   #
# --------------------------------------------------------------------------- #
def init_params(key, nc, ndf):
    k1, k2, k3 = jax.random.split(key, 3)
    # DCGAN-style N(0, 0.02) init; shapes match nn.Conv2d weights.
    w1 = 0.02 * jax.random.normal(k1, (ndf, nc, 4, 4), dtype=jnp.float32)
    w2 = 0.02 * jax.random.normal(k2, (2 * ndf, ndf, 4, 4), dtype=jnp.float32)
    w3 = 0.02 * jax.random.normal(k3, (1, 2 * ndf, 4, 4), dtype=jnp.float32)
    return {"w1": w1, "w2": w2, "w3": w3}


def pack_params(params, n_batch):
    """One-time weight packing (hoisted out of the forward path)."""
    w1, w2, w3 = params["w1"], params["w2"], params["w3"]
    c0, oc1 = w1.shape[1], w1.shape[0]
    c1, oc2 = w2.shape[1], w2.shape[0]
    # rows ordered (kh, kw, c) to match the im2col column order
    w1p = jnp.transpose(w1, (2, 3, 1, 0)).reshape(16 * c0, oc1)
    w2p = jnp.transpose(w2, (2, 3, 1, 0)).reshape(16, c1, oc2)
    # conv3 weight laid out per layer-2 output row (n, i2, j2) -> channel
    w3t = jnp.tile(jnp.transpose(w3[0], (1, 2, 0)).reshape(16, oc2), (n_batch, 1))
    return {"w1p": w1p, "w2p": w2p, "w3t": w3t}


# --------------------------------------------------------------------------- #
# Pure-JAX reference (for a sanity check)                                      #
# --------------------------------------------------------------------------- #
def reference_forward(x, params, slope=LEAKY_SLOPE):
    def conv(h, w_, stride, pad):
        return jax.lax.conv_general_dilated(
            h, w_, (stride, stride), [(pad, pad), (pad, pad)],
            dimension_numbers=("NCHW", "OIHW", "NCHW"),
            precision=jax.lax.Precision.HIGHEST)

    def lrelu(h):
        return jnp.where(h > 0, h, slope * h)

    h = lrelu(conv(x, params["w1"], 2, 1))
    h = lrelu(conv(h, params["w2"], 2, 1))
    h = conv(h, params["w3"], 1, 0)
    return jnp.mean(h, axis=0).reshape(1)


if __name__ == "__main__":
    batch, nc, isize, ndf = 2, 4, 16, 8
    key = jax.random.PRNGKey(0)
    kx, kp = jax.random.split(key)
    x = jax.random.normal(kx, (batch, nc, isize, isize), dtype=jnp.float32)
    params = init_params(kp, nc, ndf)
    packed = pack_params(params, batch)

    out = dcgan_d_nobn_forward(x, packed)
    out = jax.block_until_ready(out)
    assert out.shape == (1,)

    ref = jax.block_until_ready(reference_forward(x, params))
    if not bool(jnp.allclose(out, ref, rtol=5e-2, atol=2e-3)):
        raise AssertionError(
            f"mismatch: kernel={float(out[0]):.6f} ref={float(ref[0]):.6f}")

    print("KERNEL_OK")
</pallas_src>

<mosaic_0001>
module attributes {stable_mosaic.version = 11 : i64} {
  func.func @_fused_dcgan_d_kernel(%arg0: i32, %arg1: memref<128x64xf32, #tpu.memory_space<vmem>>, %arg2: memref<64x8xf32, #tpu.memory_space<vmem>>, %arg3: memref<16x8x16xf32, #tpu.memory_space<vmem>>, %arg4: memref<32x16xf32, #tpu.memory_space<vmem>>, %arg5: memref<1x128xf32, #tpu.memory_space<vmem>>, %arg6: memref<128x8xf32, #tpu.memory_space<vmem>>, %arg7: memref<8x5x5x8xf32, #tpu.memory_space<vmem>>, %arg8: memref<32x8xf32, #tpu.memory_space<vmem>>) attributes {dimension_semantics = [#tpu.dimension_semantics<arbitrary>], iteration_bounds = array<i64: 1>, scalar_prefetch = 0 : i64, scratch_operands = 3 : i64, tpu.core_type = #tpu.core_type<tc>, window_params = [{pipeline_mode = #tpu.pipeline_mode<synchronous>, transform_indices = @transform_0, window_bounds = array<i64: 128, 64>}, {pipeline_mode = #tpu.pipeline_mode<synchronous>, transform_indices = @transform_1, window_bounds = array<i64: 64, 8>}, {pipeline_mode = #tpu.pipeline_mode<synchronous>, transform_indices = @transform_2, window_bounds = array<i64: 16, 8, 16>}, {pipeline_mode = #tpu.pipeline_mode<synchronous>, transform_indices = @transform_3, window_bounds = array<i64: 32, 16>}, {pipeline_mode = #tpu.pipeline_mode<synchronous>, transform_indices = @transform_4, window_bounds = array<i64: 1, 128>}]} {
    %c0 = arith.constant 0 : index
    %c0_0 = arith.constant 0 : index
    %0 = vector.load %arg1[%c0, %c0_0] : memref<128x64xf32, #tpu.memory_space<vmem>>, vector<128x64xf32>
    %c0_1 = arith.constant 0 : index
    %c0_2 = arith.constant 0 : index
    %1 = vector.load %arg2[%c0_1, %c0_2] : memref<64x8xf32, #tpu.memory_space<vmem>>, vector<64x8xf32>
    %cst = arith.constant dense<0.000000e+00> : vector<128x8xf32>
    %2 = tpu.matmul %0, %1, %cst {dimension_numbers = #tpu.dot_dimension_numbers<[1], [0], [0], [1], [0, 0, 1, 1], [], []>} : vector<128x64xf32>, vector<64x8xf32>, vector<128x8xf32> -> vector<128x8xf32>
    %cst_3 = arith.constant 0.000000e+00 : f32
    %3 = vector.broadcast %cst_3 : f32 to vector<128x8xf32>
    %4 = arith.cmpf ogt, %2, %3 : vector<128x8xf32>
    %cst_4 = arith.constant 2.000000e-01 : f32
    %5 = vector.broadcast %cst_4 : f32 to vector<128x8xf32>
    %6 = arith.mulf %5, %2 : vector<128x8xf32>
    %7 = arith.select %4, %2, %6 : vector<128x8xi1>, vector<128x8xf32>
    %c0_5 = arith.constant 0 : index
    %c0_6 = arith.constant 0 : index
    %8 = vector.load %arg6[%c0_5, %c0_6] : memref<128x8xf32, #tpu.memory_space<vmem>>, vector<128x8xf32>
    tpu.vector_store %arg6[%c0_5, %c0_6], %7 {strides = array<i32>} : memref<128x8xf32, #tpu.memory_space<vmem>>, vector<128x8xf32>,
    %cst_7 = arith.constant 0.000000e+00 : f32
    %9 = vector.broadcast %cst_7 : f32 to vector<8x5x5x8xf32>
    %c0_8 = arith.constant 0 : index
    %c0_9 = arith.constant 0 : index
    %c0_10 = arith.constant 0 : index
    %c0_11 = arith.constant 0 : index
    %10 = vector.load %arg7[%c0_8, %c0_9, %c0_10, %c0_11] : memref<8x5x5x8xf32, #tpu.memory_space<vmem>>, vector<8x5x5x8xf32>
    tpu.vector_store %arg7[%c0_8, %c0_9, %c0_10, %c0_11], %9 {strides = array<i32>} : memref<8x5x5x8xf32, #tpu.memory_space<vmem>>, vector<8x5x5x8xf32>,
    %c0_12 = arith.constant 0 : index
    %c0_13 = arith.constant 0 : index
    %11 = vector.load %arg6[%c0_12, %c0_13] : memref<128x8xf32, #tpu.memory_space<vmem>>, vector<4x8xf32>
    %c0_14 = arith.constant 0 : index
    %c1 = arith.constant 1 : index
    %c1_15 = arith.constant 1 : index
    %c0_16 = arith.constant 0 : index
    %12 = vector.load %arg7[%c0_14, %c1, %c1_15, %c0_16] : memref<8x5x5x8xf32, #tpu.memory_space<vmem>>, vector<1x1x4x8xf32>
    %13 = vector.shape_cast %12 : vector<1x1x4x8xf32> to vector<4x8xf32>
    %14 = vector.shape_cast %11 : vector<4x8xf32> to vector<1x1x4x8xf32>
    tpu.vector_store %arg7[%c0_14, %c1, %c1_15, %c0_16], %14 {strides = array<i32>} : memref<8x5x5x8xf32, #tpu.memory_space<vmem>>, vector<1x1x4x8xf32>,
    %c4 = arith.constant 4 : index
    %c0_17 = arith.constant 0 : index
    %15 = vector.load %arg6[%c4, %c0_17] : memref<128x8xf32, #tpu.memory_space<vmem>>, vector<4x8xf32>
    %c0_18 = arith.constant 0 : index
    %c2 = arith.constant 2 : index
    %c1_19 = arith.constant 1 : index
    %c0_20 = arith.constant 0 : index
    %16 = vector.load %arg7[%c0_18, %c2, %c1_19, %c0_20] : memref<8x5x5x8xf32, #tpu.memory_space<vmem>>, vector<1x1x4x8xf32>
    %17 = vector.shape_cast %16 : vector<1x1x4x8xf32> to vector<4x8xf32>
    %18 = vector.shape_cast %15 : vector<4x8xf32> to vector<1x1x4x8xf32>
    tpu.vector_store %arg7[%c0_18, %c2, %c1_19, %c0_20], %18 {strides = array<i32>} : memref<8x5x5x8xf32, #tpu.memory_space<vmem>>, vector<1x1x4x8xf32>,
    %c8 = arith.constant 8 : index
    %c0_21 = arith.constant 0 : index
    %19 = vector.load %arg6[%c8, %c0_21] : memref<128x8xf32, #tpu.memory_space<vmem>>, vector<4x8xf32>
    %c0_22 = arith.constant 0 : index
    %c3 = arith.constant 3 : index
    %c1_23 = arith.constant 1 : index
    %c0_24 = arith.constant 0 : index
    %20 = vector.load %arg7[%c0_22, %c3, %c1_23, %c0_24] : memref<8x5x5x8xf32, #tpu.memory_space<vmem>>, vector<1x1x4x8xf32>
    %21 = vector.shape_cast %20 : vector<1x1x4x8xf32> to vector<4x8xf32>
    %22 = vector.shape_cast %19 : vector<4x8xf32> to vector<1x1x4x8xf32>
    tpu.vector_store %arg7[%c0_22, %c3, %c1_23, %c0_24], %22 {strides = array<i32>} : memref<8x5x5x8xf32, #tpu.memory_space<vmem>>, vector<1x1x4x8xf32>,
    %c12 = arith.constant 12 : index
    %c0_25 = arith.constant 0 : index
    %23 = vector.load %arg6[%c12, %c0_25] : memref<128x8xf32, #tpu.memory_space<vmem>>, vector<4x8xf32>
    %c0_26 = arith.constant 0 : index
    %c4_27 = arith.constant 4 : index
    %c1_28 = arith.constant 1 : index
    %c0_29 = arith.constant 0 : index
    %24 = vector.load %arg7[%c0_26, %c4_27, %c1_28, %c0_29] : memref<8x5x5x8xf32, #tpu.memory_space<vmem>>, vector<1x1x4x8xf32>
    %25 = vector.shape_cast %24 : vector<1x1x4x8xf32> to vector<4x8xf32>
    %26 = vector.shape_cast %23 : vector<4x8xf32> to vector<1x1x4x8xf32>
    tpu.vector_store %arg7[%c0_26, %c4_27, %c1_28, %c0_29], %26 {strides = array<i32>} : memref<8x5x5x8xf32, #tpu.memory_space<vmem>>, vector<1x1x4x8xf32>,
    %c16 = arith.constant 16 : index
    %c0_30 = arith.constant 0 : index
    %27 = vector.load %arg6[%c16, %c0_30] : memref<128x8xf32, #tpu.memory_space<vmem>>, vector<4x8xf32>
    %c1_31 = arith.constant 1 : index
    %c1_32 = arith.constant 1 : index
    %c1_33 = arith.constant 1 : index
    %c0_34 = arith.constant 0 : index
    %28 = vector.load %arg7[%c1_31, %c1_32, %c1_33, %c0_34] : memref<8x5x5x8xf32, #tpu.memory_space<vmem>>, vector<1x1x4x8xf32>
    %29 = vector.shape_cast %28 : vector<1x1x4x8xf32> to vector<4x8xf32>
    %30 = vector.shape_cast %27 : vector<4x8xf32> to vector<1x1x4x8xf32>
    tpu.vector_store %arg7[%c1_31, %c1_32, %c1_33, %c0_34], %30 {strides = array<i32>} : memref<8x5x5x8xf32, #tpu.memory_space<vmem>>, vector<1x1x4x8xf32>,
    %c20 = arith.constant 20 : index
    %c0_35 = arith.constant 0 : index
    %31 = vector.load %arg6[%c20, %c0_35] : memref<128x8xf32, #tpu.memory_space<vmem>>, vector<4x8xf32>
    %c1_36 = arith.constant 1 : index
    %c2_37 = arith.constant 2 : index
    %c1_38 = arith.constant 1 : index
    %c0_39 = arith.constant 0 : index
    %32 = vector.load %arg7[%c1_36, %c2_37, %c1_38, %c0_39] : memref<8x5x5x8xf32, #tpu.memory_space<vmem>>, vector<1x1x4x8xf32>
    %33 = vector.shape_cast %32 : vector<1x1x4x8xf32> to vector<4x8xf32>
    %34 = vector.shape_cast %31 : vector<4x8xf32> to vector<1x1x4x8xf32>
    tpu.vector_store %arg7[%c1_36, %c2_37, %c1_38, %c0_39], %34 {strides = array<i32>} : memref<8x5x5x8xf32, #tpu.memory_space<vmem>>, vector<1x1x4x8xf32>,
    %c24 = arith.constant 24 : index
    %c0_40 = arith.constant 0 : index
    %35 = vector.load %arg6[%c24, %c0_40] : memref<128x8xf32, #tpu.memory_space<vmem>>, vector<4x8xf32>
    %c1_41 = arith.constant 1 : index
    %c3_42 = arith.constant 3 : index
    %c1_43 = arith.constant 1 : index
    %c0_44 = arith.constant 0 : index
    %36 = vector.load %arg7[%c1_41, %c3_42, %c1_43, %c0_44] : memref<8x5x5x8xf32, #tpu.memory_space<vmem>>, vector<1x1x4x8xf32>
    %37 = vector.shape_cast %36 : vector<1x1x4x8xf32> to vector<4x8xf32>
    %38 = vector.shape_cast %35 : vector<4x8xf32> to vector<1x1x4x8xf32>
    tpu.vector_store %arg7[%c1_41, %c3_42, %c1_43, %c0_44], %38 {strides = array<i32>} : memref<8x5x5x8xf32, #tpu.memory_space<vmem>>, vector<1x1x4x8xf32>,
    %c28 = arith.constant 28 : index
    %c0_45 = arith.constant 0 : index
    %39 = vector.load %arg6[%c28, %c0_45] : memref<128x8xf32, #tpu.memory_space<vmem>>, vector<4x8xf32>
    %c1_46 = arith.constant 1 : index
    %c4_47 = arith.constant 4 : index
    %c1_48 = arith.constant 1 : index
    %c0_49 = arith.constant 0 : index
    %40 = vector.load %arg7[%c1_46, %c4_47, %c1_48, %c0_49] : memref<8x5x5x8xf32, #tpu.memory_space<vmem>>, vector<1x1x4x8xf32>
    %41 = vector.shape_cast %40 : vector<1x1x4x8xf32> to vector<4x8xf32>
    %42 = vector.shape_cast %39 : vector<4x8xf32> to vector<1x1x4x8xf32>
    tpu.vector_store %arg7[%c1_46, %c4_47, %c1_48, %c0_49], %42 {strides = array<i32>} : memref<8x5x5x8xf32, #tpu.memory_space<vmem>>, vector<1x1x4x8xf32>,
    %c32 = arith.constant 32 : index
    %c0_50 = arith.constant 0 : index
    %43 = vector.load %arg6[%c32, %c0_50] : memref<128x8xf32, #tpu.memory_space<vmem>>, vector<4x8xf32>
    %c2_51 = arith.constant 2 : index
    %c1_52 = arith.constant 1 : index
    %c0_53 = arith.constant 0 : index
    %c0_54 = arith.constant 0 : index
    %44 = vector.load %arg7[%c2_51, %c1_52, %c0_53, %c0_54] : memref<8x5x5x8xf32, #tpu.memory_space<vmem>>, vector<1x1x4x8xf32>
    %45 = vector.shape_cast %44 : vector<1x1x4x8xf32> to vector<4x8xf32>
    %46 = vector.shape_cast %43 : vector<4x8xf32> to vector<1x1x4x8xf32>
    tpu.vector_store %arg7[%c2_51, %c1_52, %c0_53, %c0_54], %46 {strides = array<i32>} : memref<8x5x5x8xf32, #tpu.memory_space<vmem>>, vector<1x1x4x8xf32>,
    %c36 = arith.constant 36 : index
    %c0_55 = arith.constant 0 : index
    %47 = vector.load %arg6[%c36, %c0_55] : memref<128x8xf32, #tpu.memory_space<vmem>>, vector<4x8xf32>
    %c2_56 = arith.constant 2 : index
    %c2_57 = arith.constant 2 : index
    %c0_58 = arith.constant 0 : index
    %c0_59 = arith.constant 0 : index
    %48 = vector.load %arg7[%c2_56, %c2_57, %c0_58, %c0_59] : memref<8x5x5x8xf32, #tpu.memory_space<vmem>>, vector<1x1x4x8xf32>
    %49 = vector.shape_cast %48 : vector<1x1x4x8xf32> to vector<4x8xf32>
    %50 = vector.shape_cast %47 : vector<4x8xf32> to vector<1x1x4x8xf32>
    tpu.vector_store %arg7[%c2_56, %c2_57, %c0_58, %c0_59], %50 {strides = array<i32>} : memref<8x5x5x8xf32, #tpu.memory_space<vmem>>, vector<1x1x4x8xf32>,
    %c40 = arith.constant 40 : index
    %c0_60 = arith.constant 0 : index
    %51 = vector.load %arg6[%c40, %c0_60] : memref<128x8xf32, #tpu.memory_space<vmem>>, vector<4x8xf32>
    %c2_61 = arith.constant 2 : index
    %c3_62 = arith.constant 3 : index
    %c0_63 = arith.constant 0 : index
    %c0_64 = arith.constant 0 : index
    %52 = vector.load %arg7[%c2_61, %c3_62, %c0_63, %c0_64] : memref<8x5x5x8xf32, #tpu.memory_space<vmem>>, vector<1x1x4x8xf32>
    %53 = vector.shape_cast %52 : vector<1x1x4x8xf32> to vector<4x8xf32>
    %54 = vector.shape_cast %51 : vector<4x8xf32> to vector<1x1x4x8xf32>
    tpu.vector_store %arg7[%c2_61, %c3_62, %c0_63, %c0_64], %54 {strides = array<i32>} : memref<8x5x5x8xf32, #tpu.memory_space<vmem>>, vector<1x1x4x8xf32>,
    %c44 = arith.constant 44 : index
    %c0_65 = arith.constant 0 : index
    %55 = vector.load %arg6[%c44, %c0_65] : memref<128x8xf32, #tpu.memory_space<vmem>>, vector<4x8xf32>
    %c2_66 = arith.constant 2 : index
    %c4_67 = arith.constant 4 : index
    %c0_68 = arith.constant 0 : index
    %c0_69 = arith.constant 0 : index
    %56 = vector.load %arg7[%c2_66, %c4_67, %c0_68, %c0_69] : memref<8x5x5x8xf32, #tpu.memory_space<vmem>>, vector<1x1x4x8xf32>
    %57 = vector.shape_cast %56 : vector<1x1x4x8xf32> to vector<4x8xf32>
    %58 = vector.shape_cast %55 : vector<4x8xf32> to vector<1x1x4x8xf32>
    tpu.vector_store %arg7[%c2_66, %c4_67, %c0_68, %c0_69], %58 {strides = array<i32>} : memref<8x5x5x8xf32, #tpu.memory_space<vmem>>, vector<1x1x4x8xf32>,
    %c48 = arith.constant 48 : index
    %c0_70 = arith.constant 0 : index
    %59 = vector.load %arg6[%c48, %c0_70] : memref<128x8xf32, #tpu.memory_space<vmem>>, vector<4x8xf32>
    %c3_71 = arith.constant 3 : index
    %c1_72 = arith.constant 1 : index
    %c0_73 = arith.constant 0 : index
    %c0_74 = arith.constant 0 : index
    %60 = vector.load %arg7[%c3_71, %c1_72, %c0_73, %c0_74] : memref<8x5x5x8xf32, #tpu.memory_space<vmem>>, vector<1x1x4x8xf32>
    %61 = vector.shape_cast %60 : vector<1x1x4x8xf32> to vector<4x8xf32>
    %62 = vector.shape_cast %59 : vector<4x8xf32> to vector<1x1x4x8xf32>
    tpu.vector_store %arg7[%c3_71, %c1_72, %c0_73, %c0_74], %62 {strides = array<i32>} : memref<8x5x5x8xf32, #tpu.memory_space<vmem>>, vector<1x1x4x8xf32>,
    %c52 = arith.constant 52 : index
    %c0_75 = arith.constant 0 : index
    %63 = vector.load %arg6[%c52, %c0_75] : memref<128x8xf32, #tpu.memory_space<vmem>>, vector<4x8xf32>
    %c3_76 = arith.constant 3 : index
    %c2_77 = arith.constant 2 : index
    %c0_78 = arith.constant 0 : index
    %c0_79 = arith.constant 0 : index
    %64 = vector.load %arg7[%c3_76, %c2_77, %c0_78, %c0_79] : memref<8x5x5x8xf32, #tpu.memory_space<vmem>>, vector<1x1x4x8xf32>
    %65 = vector.shape_cast %64 : vector<1x1x4x8xf32> to vector<4x8xf32>
    %66 = vector.shape_cast %63 : vector<4x8xf32> to vector<1x1x4x8xf32>
    tpu.vector_store %arg7[%c3_76, %c2_77, %c0_78, %c0_79], %66 {strides = array<i32>} : memref<8x5x5x8xf32, #tpu.memory_space<vmem>>, vector<1x1x4x8xf32>,
    %c56 = arith.constant 56 : index
    %c0_80 = arith.constant 0 : index
    %67 = vector.load %arg6[%c56, %c0_80] : memref<128x8xf32, #tpu.memory_space<vmem>>, vector<4x8xf32>
    %c3_81 = arith.constant 3 : index
    %c3_82 = arith.constant 3 : index
    %c0_83 = arith.constant 0 : index
    %c0_84 = arith.constant 0 : index
    %68 = vector.load %arg7[%c3_81, %c3_82, %c0_83, %c0_84] : memref<8x5x5x8xf32, #tpu.memory_space<vmem>>, vector<1x1x4x8xf32>
    %69 = vector.shape_cast %68 : vector<1x1x4x8xf32> to vector<4x8xf32>
    %70 = vector.shape_cast %67 : vector<4x8xf32> to vector<1x1x4x8xf32>
    tpu.vector_store %arg7[%c3_81, %c3_82, %c0_83, %c0_84], %70 {strides = array<i32>} : memref<8x5x5x8xf32, #tpu.memory_space<vmem>>, vector<1x1x4x8xf32>,
    %c60 = arith.constant 60 : index
    %c0_85 = arith.constant 0 : index
    %71 = vector.load %arg6[%c60, %c0_85] : memref<128x8xf32, #tpu.memory_space<vmem>>, vector<4x8xf32>
    %c3_86 = arith.constant 3 : index
    %c4_87 = arith.constant 4 : index
    %c0_88 = arith.constant 0 : index
    %c0_89 = arith.constant 0 : index
    %72 = vector.load %arg7[%c3_86, %c4_87, %c0_88, %c0_89] : memref<8x5x5x8xf32, #tpu.memory_space<vmem>>, vector<1x1x4x8xf32>
    %73 = vector.shape_cast %72 : vector<1x1x4x8xf32> to vector<4x8xf32>
    %74 = vector.shape_cast %71 : vector<4x8xf32> to vector<1x1x4x8xf32>
    tpu.vector_store %arg7[%c3_86, %c4_87, %c0_88, %c0_89], %74 {strides = array<i32>} : memref<8x5x5x8xf32, #tpu.memory_space<vmem>>, vector<1x1x4x8xf32>,
    %c64 = arith.constant 64 : index
    %c0_90 = arith.constant 0 : index
    %75 = vector.load %arg6[%c64, %c0_90] : memref<128x8xf32, #tpu.memory_space<vmem>>, vector<4x8xf32>
    %c4_91 = arith.constant 4 : index
    %c0_92 = arith.constant 0 : index
    %c1_93 = arith.constant 1 : index
    %c0_94 = arith.constant 0 : index
    %76 = vector.load %arg7[%c4_91, %c0_92, %c1_93, %c0_94] : memref<8x5x5x8xf32, #tpu.memory_space<vmem>>, vector<1x1x4x8xf32>
    %77 = vector.shape_cast %76 : vector<1x1x4x8xf32> to vector<4x8xf32>
    %78 = vector.shape_cast %75 : vector<4x8xf32> to vector<1x1x4x8xf32>
    tpu.vector_store %arg7[%c4_91, %c0_92, %c1_93, %c0_94], %78 {strides = array<i32>} : memref<8x5x5x8xf32, #tpu.memory_space<vmem>>, vector<1x1x4x8xf32>,
    %c68 = arith.constant 68 : index
    %c0_95 = arith.constant 0 : index
    %79 = vector.load %arg6[%c68, %c0_95] : memref<128x8xf32, #tpu.memory_space<vmem>>, vector<4x8xf32>
    %c4_96 = arith.constant 4 : index
    %c1_97 = arith.constant 1 : index
    %c1_98 = arith.constant 1 : index
    %c0_99 = arith.constant 0 : index
    %80 = vector.load %arg7[%c4_96, %c1_97, %c1_98, %c0_99] : memref<8x5x5x8xf32, #tpu.memory_space<vmem>>, vector<1x1x4x8xf32>
    %81 = vector.shape_cast %80 : vector<1x1x4x8xf32> to vector<4x8xf32>
    %82 = vector.shape_cast %79 : vector<4x8xf32> to vector<1x1x4x8xf32>
    tpu.vector_store %arg7[%c4_96, %c1_97, %c1_98, %c0_99], %82 {strides = array<i32>} : memref<8x5x5x8xf32, #tpu.memory_space<vmem>>, vector<1x1x4x8xf32>,
    %c72 = arith.constant 72 : index
    %c0_100 = arith.constant 0 : index
    %83 = vector.load %arg6[%c72, %c0_100] : memref<128x8xf32, #tpu.memory_space<vmem>>, vector<4x8xf32>
    %c4_101 = arith.constant 4 : index
    %c2_102 = arith.constant 2 : index
    %c1_103 = arith.constant 1 : index
    %c0_104 = arith.constant 0 : index
    %84 = vector.load %arg7[%c4_101, %c2_102, %c1_103, %c0_104] : memref<8x5x5x8xf32, #tpu.memory_space<vmem>>, vector<1x1x4x8xf32>
    %85 = vector.shape_cast %84 : vector<1x1x4x8xf32> to vector<4x8xf32>
    %86 = vector.shape_cast %83 : vector<4x8xf32> to vector<1x1x4x8xf32>
    tpu.vector_store %arg7[%c4_101, %c2_102, %c1_103, %c0_104], %86 {strides = array<i32>} : memref<8x5x5x8xf32, #tpu.memory_space<vmem>>, vector<1x1x4x8xf32>,
    %c76 = arith.constant 76 : index
    %c0_105 = arith.constant 0 : index
    %87 = vector.load %arg6[%c76, %c0_105] : memref<128x8xf32, #tpu.memory_space<vmem>>, vector<4x8xf32>
    %c4_106 = arith.constant 4 : index
    %c3_107 = arith.constant 3 : index
    %c1_108 = arith.constant 1 : index
    %c0_109 = arith.constant 0 : index
    %88 = vector.load %arg7[%c4_106, %c3_107, %c1_108, %c0_109] : memref<8x5x5x8xf32, #tpu.memory_space<vmem>>, vector<1x1x4x8xf32>
    %89 = vector.shape_cast %88 : vector<1x1x4x8xf32> to vector<4x8xf32>
    %90 = vector.shape_cast %87 : vector<4x8xf32> to vector<1x1x4x8xf32>
    tpu.vector_store %arg7[%c4_106, %c3_107, %c1_108, %c0_109], %90 {strides = array<i32>} : memref<8x5x5x8xf32, #tpu.memory_space<vmem>>, vector<1x1x4x8xf32>,
    %c80 = arith.constant 80 : index
    %c0_110 = arith.constant 0 : index
    %91 = vector.load %arg6[%c80, %c0_110] : memref<128x8xf32, #tpu.memory_space<vmem>>, vector<4x8xf32>
    %c5 = arith.constant 5 : index
    %c0_111 = arith.constant 0 : index
    %c1_112 = arith.constant 1 : index
    %c0_113 = arith.constant 0 : index
    %92 = vector.load %arg7[%c5, %c0_111, %c1_112, %c0_113] : memref<8x5x5x8xf32, #tpu.memory_space<vmem>>, vector<1x1x4x8xf32>
    %93 = vector.shape_cast %92 : vector<1x1x4x8xf32> to vector<4x8xf32>
    %94 = vector.shape_cast %91 : vector<4x8xf32> to vector<1x1x4x8xf32>
    tpu.vector_store %arg7[%c5, %c0_111, %c1_112, %c0_113], %94 {strides = array<i32>} : memref<8x5x5x8xf32, #tpu.memory_space<vmem>>, vector<1x1x4x8xf32>,
    %c84 = arith.constant 84 : index
    %c0_114 = arith.constant 0 : index
    %95 = vector.load %arg6[%c84, %c0_114] : memref<128x8xf32, #tpu.memory_space<vmem>>, vector<4x8xf32>
    %c5_115 = arith.constant 5 : index
    %c1_116 = arith.constant 1 : index
    %c1_117 = arith.constant 1 : index
    %c0_118 = arith.constant 0 : index
    %96 = vector.load %arg7[%c5_115, %c1_116, %c1_117, %c0_118] : memref<8x5x5x8xf32, #tpu.memory_space<vmem>>, vector<1x1x4x8xf32>
    %97 = vector.shape_cast %96 : vector<1x1x4x8xf32> to vector<4x8xf32>
    %98 = vector.shape_cast %95 : vector<4x8xf32> to vector<1x1x4x8xf32>
    tpu.vector_store %arg7[%c5_115, %c1_116, %c1_117, %c0_118], %98 {strides = array<i32>} : memref<8x5x5x8xf32, #tpu.memory_space<vmem>>, vector<1x1x4x8xf32>,
    %c88 = arith.constant 88 : index
    %c0_119 = arith.constant 0 : index
    %99 = vector.load %arg6[%c88, %c0_119] : memref<128x8xf32, #tpu.memory_space<vmem>>, vector<4x8xf32>
    %c5_120 = arith.constant 5 : index
    %c2_121 = arith.constant 2 : index
    %c1_122 = arith.constant 1 : index
    %c0_123 = arith.constant 0 : index
    %100 = vector.load %arg7[%c5_120, %c2_121, %c1_122, %c0_123] : memref<8x5x5x8xf32, #tpu.memory_space<vmem>>, vector<1x1x4x8xf32>
    %101 = vector.shape_cast %100 : vector<1x1x4x8xf32> to vector<4x8xf32>
    %102 = vector.shape_cast %99 : vector<4x8xf32> to vector<1x1x4x8xf32>
    tpu.vector_store %arg7[%c5_120, %c2_121, %c1_122, %c0_123], %102 {strides = array<i32>} : memref<8x5x5x8xf32, #tpu.memory_space<vmem>>, vector<1x1x4x8xf32>,
    %c92 = arith.constant 92 : index
    %c0_124 = arith.constant 0 : index
    %103 = vector.load %arg6[%c92, %c0_124] : memref<128x8xf32, #tpu.memory_space<vmem>>, vector<4x8xf32>
    %c5_125 = arith.constant 5 : index
    %c3_126 = arith.constant 3 : index
    %c1_127 = arith.constant 1 : index
    %c0_128 = arith.constant 0 : index
    %104 = vector.load %arg7[%c5_125, %c3_126, %c1_127, %c0_128] : memref<8x5x5x8xf32, #tpu.memory_space<vmem>>, vector<1x1x4x8xf32>
    %105 = vector.shape_cast %104 : vector<1x1x4x8xf32> to vector<4x8xf32>
    %106 = vector.shape_cast %103 : vector<4x8xf32> to vector<1x1x4x8xf32>
    tpu.vector_store %arg7[%c5_125, %c3_126, %c1_127, %c0_128], %106 {strides = array<i32>} : memref<8x5x5x8xf32, #tpu.memory_space<vmem>>, vector<1x1x4x8xf32>,
    %c96 = arith.constant 96 : index
    %c0_129 = arith.constant 0 : index
    %107 = vector.load %arg6[%c96, %c0_129] : memref<128x8xf32, #tpu.memory_space<vmem>>, vector<4x8xf32>
    %c6 = arith.constant 6 : index
    %c0_130 = arith.constant 0 : index
    %c0_131 = arith.constant 0 : index
    %c0_132 = arith.constant 0 : index
    %108 = vector.load %arg7[%c6, %c0_130, %c0_131, %c0_132] : memref<8x5x5x8xf32, #tpu.memory_space<vmem>>, vector<1x1x4x8xf32>
    %109 = vector.shape_cast %108 : vector<1x1x4x8xf32> to vector<4x8xf32>
    %110 = vector.shape_cast %107 : vector<4x8xf32> to vector<1x1x4x8xf32>
    tpu.vector_store %arg7[%c6, %c0_130, %c0_131, %c0_132], %110 {strides = array<i32>} : memref<8x5x5x8xf32, #tpu.memory_space<vmem>>, vector<1x1x4x8xf32>,
    %c100 = arith.constant 100 : index
    %c0_133 = arith.constant 0 : index
    %111 = vector.load %arg6[%c100, %c0_133] : memref<128x8xf32, #tpu.memory_space<vmem>>, vector<4x8xf32>
    %c6_134 = arith.constant 6 : index
    %c1_135 = arith.constant 1 : index
    %c0_136 = arith.constant 0 : index
    %c0_137 = arith.constant 0 : index
    %112 = vector.load %arg7[%c6_134, %c1_135, %c0_136, %c0_137] : memref<8x5x5x8xf32, #tpu.memory_space<vmem>>, vector<1x1x4x8xf32>
    %113 = vector.shape_cast %112 : vector<1x1x4x8xf32> to vector<4x8xf32>
    %114 = vector.shape_cast %111 : vector<4x8xf32> to vector<1x1x4x8xf32>
    tpu.vector_store %arg7[%c6_134, %c1_135, %c0_136, %c0_137], %114 {strides = array<i32>} : memref<8x5x5x8xf32, #tpu.memory_space<vmem>>, vector<1x1x4x8xf32>,
    %c104 = arith.constant 104 : index
    %c0_138 = arith.constant 0 : index
    %115 = vector.load %arg6[%c104, %c0_138] : memref<128x8xf32, #tpu.memory_space<vmem>>, vector<4x8xf32>
    %c6_139 = arith.constant 6 : index
    %c2_140 = arith.constant 2 : index
    %c0_141 = arith.constant 0 : index
    %c0_142 = arith.constant 0 : index
    %116 = vector.load %arg7[%c6_139, %c2_140, %c0_141, %c0_142] : memref<8x5x5x8xf32, #tpu.memory_space<vmem>>, vector<1x1x4x8xf32>
    %117 = vector.shape_cast %116 : vector<1x1x4x8xf32> to vector<4x8xf32>
    %118 = vector.shape_cast %115 : vector<4x8xf32> to vector<1x1x4x8xf32>
    tpu.vector_store %arg7[%c6_139, %c2_140, %c0_141, %c0_142], %118 {strides = array<i32>} : memref<8x5x5x8xf32, #tpu.memory_space<vmem>>, vector<1x1x4x8xf32>,
    %c108 = arith.constant 108 : index
    %c0_143 = arith.constant 0 : index
    %119 = vector.load %arg6[%c108, %c0_143] : memref<128x8xf32, #tpu.memory_space<vmem>>, vector<4x8xf32>
    %c6_144 = arith.constant 6 : index
    %c3_145 = arith.constant 3 : index
    %c0_146 = arith.constant 0 : index
    %c0_147 = arith.constant 0 : index
    %120 = vector.load %arg7[%c6_144, %c3_145, %c0_146, %c0_147] : memref<8x5x5x8xf32, #tpu.memory_space<vmem>>, vector<1x1x4x8xf32>
    %121 = vector.shape_cast %120 : vector<1x1x4x8xf32> to vector<4x8xf32>
    %122 = vector.shape_cast %119 : vector<4x8xf32> to vector<1x1x4x8xf32>
    tpu.vector_store %arg7[%c6_144, %c3_145, %c0_146, %c0_147], %122 {strides = array<i32>} : memref<8x5x5x8xf32, #tpu.memory_space<vmem>>, vector<1x1x4x8xf32>,
    %c112 = arith.constant 112 : index
    %c0_148 = arith.constant 0 : index
    %123 = vector.load %arg6[%c112, %c0_148] : memref<128x8xf32, #tpu.memory_space<vmem>>, vector<4x8xf32>
    %c7 = arith.constant 7 : index
    %c0_149 = arith.constant 0 : index
    %c0_150 = arith.constant 0 : index
    %c0_151 = arith.constant 0 : index
    %124 = vector.load %arg7[%c7, %c0_149, %c0_150, %c0_151] : memref<8x5x5x8xf32, #tpu.memory_space<vmem>>, vector<1x1x4x8xf32>
    %125 = vector.shape_cast %124 : vector<1x1x4x8xf32> to vector<4x8xf32>
    %126 = vector.shape_cast %123 : vector<4x8xf32> to vector<1x1x4x8xf32>
    tpu.vector_store %arg7[%c7, %c0_149, %c0_150, %c0_151], %126 {strides = array<i32>} : memref<8x5x5x8xf32, #tpu.memory_space<vmem>>, vector<1x1x4x8xf32>,
    %c116 = arith.constant 116 : index
    %c0_152 = arith.constant 0 : index
    %127 = vector.load %arg6[%c116, %c0_152] : memref<128x8xf32, #tpu.memory_space<vmem>>, vector<4x8xf32>
    %c7_153 = arith.constant 7 : index
    %c1_154 = arith.constant 1 : index
    %c0_155 = arith.constant 0 : index
    %c0_156 = arith.constant 0 : index
    %128 = vector.load %arg7[%c7_153, %c1_154, %c0_155, %c0_156] : memref<8x5x5x8xf32, #tpu.memory_space<vmem>>, vector<1x1x4x8xf32>
    %129 = vector.shape_cast %128 : vector<1x1x4x8xf32> to vector<4x8xf32>
    %130 = vector.shape_cast %127 : vector<4x8xf32> to vector<1x1x4x8xf32>
    tpu.vector_store %arg7[%c7_153, %c1_154, %c0_155, %c0_156], %130 {strides = array<i32>} : memref<8x5x5x8xf32, #tpu.memory_space<vmem>>, vector<1x1x4x8xf32>,
    %c120 = arith.constant 120 : index
    %c0_157 = arith.constant 0 : index
    %131 = vector.load %arg6[%c120, %c0_157] : memref<128x8xf32, #tpu.memory_space<vmem>>, vector<4x8xf32>
    %c7_158 = arith.constant 7 : index
    %c2_159 = arith.constant 2 : index
    %c0_160 = arith.constant 0 : index
    %c0_161 = arith.constant 0 : index
    %132 = vector.load %arg7[%c7_158, %c2_159, %c0_160, %c0_161] : memref<8x5x5x8xf32, #tpu.memory_space<vmem>>, vector<1x1x4x8xf32>
    %133 = vector.shape_cast %132 : vector<1x1x4x8xf32> to vector<4x8xf32>
    %134 = vector.shape_cast %131 : vector<4x8xf32> to vector<1x1x4x8xf32>
    tpu.vector_store %arg7[%c7_158, %c2_159, %c0_160, %c0_161], %134 {strides = array<i32>} : memref<8x5x5x8xf32, #tpu.memory_space<vmem>>, vector<1x1x4x8xf32>,
    %c124 = arith.constant 124 : index
    %c0_162 = arith.constant 0 : index
    %135 = vector.load %arg6[%c124, %c0_162] : memref<128x8xf32, #tpu.memory_space<vmem>>, vector<4x8xf32>
    %c7_163 = arith.constant 7 : index
    %c3_164 = arith.constant 3 : index
    %c0_165 = arith.constant 0 : index
    %c0_166 = arith.constant 0 : index
    %136 = vector.load %arg7[%c7_163, %c3_164, %c0_165, %c0_166] : memref<8x5x5x8xf32, #tpu.memory_space<vmem>>, vector<1x1x4x8xf32>
    %137 = vector.shape_cast %136 : vector<1x1x4x8xf32> to vector<4x8xf32>
    %138 = vector.shape_cast %135 : vector<4x8xf32> to vector<1x1x4x8xf32>
    tpu.vector_store %arg7[%c7_163, %c3_164, %c0_165, %c0_166], %138 {strides = array<i32>} : memref<8x5x5x8xf32, #tpu.memory_space<vmem>>, vector<1x1x4x8xf32>,
    %cst_167 = arith.constant 0.000000e+00 : f32
    %139 = vector.broadcast %cst_167 : f32 to vector<32x16xf32>
    %c0_168 = arith.constant 0 : index
    %c0_169 = arith.constant 0 : index
    %c0_170 = arith.constant 0 : index
    %c0_171 = arith.constant 0 : index
    %140 = vector.load %arg7[%c0_168, %c0_169, %c0_170, %c0_171] : memref<8x5x5x8xf32, #tpu.memory_space<vmem>>, vector<1x1x4x8xf32>
    %141 = vector.shape_cast %140 : vector<1x1x4x8xf32> to vector<4x8xf32>
    %c0_172 = arith.constant 0 : index
    %c0_173 = arith.constant 0 : index
    %142 = vector.load %arg8[%c0_172, %c0_173] : memref<32x8xf32, #tpu.memory_space<vmem>>, vector<4x8xf32>
    tpu.vector_store %arg8[%c0_172, %c0_173], %141 {strides = array<i32>} : memref<32x8xf32, #tpu.memory_space<vmem>>, vector<4x8xf32>,
    %c0_174 = arith.constant 0 : index
    %c1_175 = arith.constant 1 : index
    %c0_176 = arith.constant 0 : index
    %c0_177 = arith.constant 0 : index
    %143 = vector.load %arg7[%c0_174, %c1_175, %c0_176, %c0_177] : memref<8x5x5x8xf32, #tpu.memory_space<vmem>>, vector<1x1x4x8xf32>
    %144 = vector.shape_cast %143 : vector<1x1x4x8xf32> to vector<4x8xf32>
    %c4_178 = arith.constant 4 : index
    %c0_179 = arith.constant 0 : index
    %145 = vector.load %arg8[%c4_178, %c0_179] : memref<32x8xf32, #tpu.memory_space<vmem>>, vector<4x8xf32>
    tpu.vector_store %arg8[%c4_178, %c0_179], %144 {strides = array<i32>} : memref<32x8xf32, #tpu.memory_space<vmem>>, vector<4x8xf32>,
    %c0_180 = arith.constant 0 : index
    %c2_181 = arith.constant 2 : index
    %c0_182 = arith.constant 0 : index
    %c0_183 = arith.constant 0 : index
    %146 = vector.load %arg7[%c0_180, %c2_181, %c0_182, %c0_183] : memref<8x5x5x8xf32, #tpu.memory_space<vmem>>, vector<1x1x4x8xf32>
    %147 = vector.shape_cast %146 : vector<1x1x4x8xf32> to vector<4x8xf32>
    %c8_184 = arith.constant 8 : index
    %c0_185 = arith.constant 0 : index
    %148 = vector.load %arg8[%c8_184, %c0_185] : memref<32x8xf32, #tpu.memory_space<vmem>>, vector<4x8xf32>
    tpu.vector_store %arg8[%c8_184, %c0_185], %147 {strides = array<i32>} : memref<32x8xf32, #tpu.memory_space<vmem>>, vector<4x8xf32>,
    %c0_186 = arith.constant 0 : index
    %c3_187 = arith.constant 3 : index
    %c0_188 = arith.constant 0 : index
    %c0_189 = arith.constant 0 : index
    %149 = vector.load %arg7[%c0_186, %c3_187, %c0_188, %c0_189] : memref<8x5x5x8xf32, #tpu.memory_space<vmem>>, vector<1x1x4x8xf32>
    %150 = vector.shape_cast %149 : vector<1x1x4x8xf32> to vector<4x8xf32>
    %c12_190 = arith.constant 12 : index
    %c0_191 = arith.constant 0 : index
    %151 = vector.load %arg8[%c12_190, %c0_191] : memref<32x8xf32, #tpu.memory_space<vmem>>, vector<4x8xf32>
    tpu.vector_store %arg8[%c12_190, %c0_191], %150 {strides = array<i32>} : memref<32x8xf32, #tpu.memory_space<vmem>>, vector<4x8xf32>,
    %c1_192 = arith.constant 1 : index
    %c0_193 = arith.constant 0 : index
    %c0_194 = arith.constant 0 : index
    %c0_195 = arith.constant 0 : index
    %152 = vector.load %arg7[%c1_192, %c0_193, %c0_194, %c0_195] : memref<8x5x5x8xf32, #tpu.memory_space<vmem>>, vector<1x1x4x8xf32>
    %153 = vector.shape_cast %152 : vector<1x1x4x8xf32> to vector<4x8xf32>
    %c16_196 = arith.constant 16 : index
    %c0_197 = arith.constant 0 : index
    %154 = vector.load %arg8[%c16_196, %c0_197] : memref<32x8xf32, #tpu.memory_space<vmem>>, vector<4x8xf32>
    tpu.vector_store %arg8[%c16_196, %c0_197], %153 {strides = array<i32>} : memref<32x8xf32, #tpu.memory_space<vmem>>, vector<4x8xf32>,
    %c1_198 = arith.constant 1 : index
    %c1_199 = arith.constant 1 : index
    %c0_200 = arith.constant 0 : index
    %c0_201 = arith.constant 0 : index
    %155 = vector.load %arg7[%c1_198, %c1_199, %c0_200, %c0_201] : memref<8x5x5x8xf32, #tpu.memory_space<vmem>>, vector<1x1x4x8xf32>
    %156 = vector.shape_cast %155 : vector<1x1x4x8xf32> to vector<4x8xf32>
    %c20_202 = arith.constant 20 : index
    %c0_203 = arith.constant 0 : index
    %157 = vector.load %arg8[%c20_202, %c0_203] : memref<32x8xf32, #tpu.memory_space<vmem>>, vector<4x8xf32>
    tpu.vector_store %arg8[%c20_202, %c0_203], %156 {strides = array<i32>} : memref<32x8xf32, #tpu.memory_space<vmem>>, vector<4x8xf32>,
    %c1_204 = arith.constant 1 : index
    %c2_205 = arith.constant 2 : index
    %c0_206 = arith.constant 0 : index
    %c0_207 = arith.constant 0 : index
    %158 = vector.load %arg7[%c1_204, %c2_205, %c0_206, %c0_207] : memref<8x5x5x8xf32, #tpu.memory_space<vmem>>, vector<1x1x4x8xf32>
    %159 = vector.shape_cast %158 : vector<1x1x4x8xf32> to vector<4x8xf32>
    %c24_208 = arith.constant 24 : index
    %c0_209 = arith.constant 0 : index
    %160 = vector.load %arg8[%c24_208, %c0_209] : memref<32x8xf32, #tpu.memory_space<vmem>>, vector<4x8xf32>
    tpu.vector_store %arg8[%c24_208, %c0_209], %159 {strides = array<i32>} : memref<32x8xf32, #tpu.memory_space<vmem>>, vector<4x8xf32>,
    %c1_210 = arith.constant 1 : index
    %c3_211 = arith.constant 3 : index
    %c0_212 = arith.constant 0 : index
    %c0_213 = arith.constant 0 : index
    %161 = vector.load %arg7[%c1_210, %c3_211, %c0_212, %c0_213] : memref<8x5x5x8xf32, #tpu.memory_space<vmem>>, vector<1x1x4x8xf32>
    %162 = vector.shape_cast %161 : vector<1x1x4x8xf32> to vector<4x8xf32>
    %c28_214 = arith.constant 28 : index
    %c0_215 = arith.constant 0 : index
    %163 = vector.load %arg8[%c28_214, %c0_215] : memref<32x8xf32, #tpu.memory_space<vmem>>, vector<4x8xf32>
    tpu.vector_store %arg8[%c28_214, %c0_215], %162 {strides = array<i32>} : memref<32x8xf32, #tpu.memory_space<vmem>>, vector<4x8xf32>,
    %c0_216 = arith.constant 0 : index
    %c0_217 = arith.constant 0 : index
    %164 = vector.load %arg8[%c0_216, %c0_217] : memref<32x8xf32, #tpu.memory_space<vmem>>, vector<32x8xf32>
    %c0_218 = arith.constant 0 : index
    %c0_219 = arith.constant 0 : index
    %c0_220 = arith.constant 0 : index
    %165 = vector.load %arg3[%c0_218, %c0_219, %c0_220] : memref<16x8x16xf32, #tpu.memory_space<vmem>>, vector<1x8x16xf32>
    %166 = vector.shape_cast %165 : vector<1x8x16xf32> to vector<8x16xf32>
    %cst_221 = arith.constant dense<0.000000e+00> : vector<32x16xf32>
    %167 = tpu.matmul %164, %166, %cst_221 {dimension_numbers = #tpu.dot_dimension_numbers<[1], [0], [0], [1], [0, 0, 1, 1], [], []>} : vector<32x8xf32>, vector<8x16xf32>, vector<32x16xf32> -> vector<32x16xf32>
    %168 = arith.addf %139, %167 : vector<32x16xf32>
    %c2_222 = arith.constant 2 : index
    %c0_223 = arith.constant 0 : index
    %c0_224 = arith.constant 0 : index
    %c0_225 = arith.constant 0 : index
    %169 = vector.load %arg7[%c2_222, %c0_223, %c0_224, %c0_225] : memref<8x5x5x8xf32, #tpu.memory_space<vmem>>, vector<1x1x4x8xf32>
    %170 = vector.shape_cast %169 : vector<1x1x4x8xf32> to vector<4x8xf32>
    %c0_226 = arith.constant 0 : index
    %c0_227 = arith.constant 0 : index
    %171 = vector.load %arg8[%c0_226, %c0_227] : memref<32x8xf32, #tpu.memory_space<vmem>>, vector<4x8xf32>
    tpu.vector_store %arg8[%c0_226, %c0_227], %170 {strides = array<i32>} : memref<32x8xf32, #tpu.memory_space<vmem>>, vector<4x8xf32>,
    %c2_228 = arith.constant 2 : index
    %c1_229 = arith.constant 1 : index
    %c0_230 = arith.constant 0 : index
    %c0_231 = arith.constant 0 : index
    %172 = vector.load %arg7[%c2_228, %c1_229, %c0_230, %c0_231] : memref<8x5x5x8xf32, #tpu.memory_space<vmem>>, vector<1x1x4x8xf32>
    %173 = vector.shape_cast %172 : vector<1x1x4x8xf32> to vector<4x8xf32>
    %c4_232 = arith.constant 4 : index
    %c0_233 = arith.constant 0 : index
    %174 = vector.load %arg8[%c4_232, %c0_233] : memref<32x8xf32, #tpu.memory_space<vmem>>, vector<4x8xf32>
    tpu.vector_store %arg8[%c4_232, %c0_233], %173 {strides = array<i32>} : memref<32x8xf32, #tpu.memory_space<vmem>>, vector<4x8xf32>,
    %c2_234 = arith.constant 2 : index
    %c2_235 = arith.constant 2 : index
    %c0_236 = arith.constant 0 : index
    %c0_237 = arith.constant 0 : index
    %175 = vector.load %arg7[%c2_234, %c2_235, %c0_236, %c0_237] : memref<8x5x5x8xf32, #tpu.memory_space<vmem>>, vector<1x1x4x8xf32>
    %176 = vector.shape_cast %175 : vector<1x1x4x8xf32> to vector<4x8xf32>
    %c8_238 = arith.constant 8 : index
    %c0_239 = arith.constant 0 : index
    %177 = vector.load %arg8[%c8_238, %c0_239] : memref<32x8xf32, #tpu.memory_space<vmem>>, vector<4x8xf32>
    tpu.vector_store %arg8[%c8_238, %c0_239], %176 {strides = array<i32>} : memref<32x8xf32, #tpu.memory_space<vmem>>, vector<4x8xf32>,
    %c2_240 = arith.constant 2 : index
    %c3_241 = arith.constant 3 : index
    %c0_242 = arith.constant 0 : index
    %c0_243 = arith.constant 0 : index
    %178 = vector.load %arg7[%c2_240, %c3_241, %c0_242, %c0_243] : memref<8x5x5x8xf32, #tpu.memory_space<vmem>>, vector<1x1x4x8xf32>
    %179 = vector.shape_cast %178 : vector<1x1x4x8xf32> to vector<4x8xf32>
    %c12_244 = arith.constant 12 : index
    %c0_245 = arith.constant 0 : index
    %180 = vector.load %arg8[%c12_244, %c0_245] : memref<32x8xf32, #tpu.memory_space<vmem>>, vector<4x8xf32>
    tpu.vector_store %arg8[%c12_244, %c0_245], %179 {strides = array<i32>} : memref<32x8xf32, #tpu.memory_space<vmem>>, vector<4x8xf32>,
    %c3_246 = arith.constant 3 : index
    %c0_247 = arith.constant 0 : index
    %c0_248 = arith.constant 0 : index
    %c0_249 = arith.constant 0 : index
    %181 = vector.load %arg7[%c3_246, %c0_247, %c0_248, %c0_249] : memref<8x5x5x8xf32, #tpu.memory_space<vmem>>, vector<1x1x4x8xf32>
    %182 = vector.shape_cast %181 : vector<1x1x4x8xf32> to vector<4x8xf32>
    %c16_250 = arith.constant 16 : index
    %c0_251 = arith.constant 0 : index
    %183 = vector.load %arg8[%c16_250, %c0_251] : memref<32x8xf32, #tpu.memory_space<vmem>>, vector<4x8xf32>
    tpu.vector_store %arg8[%c16_250, %c0_251], %182 {strides = array<i32>} : memref<32x8xf32, #tpu.memory_space<vmem>>, vector<4x8xf32>,
    %c3_252 = arith.constant 3 : index
    %c1_253 = arith.constant 1 : index
    %c0_254 = arith.constant 0 : index
    %c0_255 = arith.constant 0 : index
    %184 = vector.load %arg7[%c3_252, %c1_253, %c0_254, %c0_255] : memref<8x5x5x8xf32, #tpu.memory_space<vmem>>, vector<1x1x4x8xf32>
    %185 = vector.shape_cast %184 : vector<1x1x4x8xf32> to vector<4x8xf32>
    %c20_256 = arith.constant 20 : index
    %c0_257 = arith.constant 0 : index
    %186 = vector.load %arg8[%c20_256, %c0_257] : memref<32x8xf32, #tpu.memory_space<vmem>>, vector<4x8xf32>
    tpu.vector_store %arg8[%c20_256, %c0_257], %185 {strides = array<i32>} : memref<32x8xf32, #tpu.memory_space<vmem>>, vector<4x8xf32>,
    %c3_258 = arith.constant 3 : index
    %c2_259 = arith.constant 2 : index
    %c0_260 = arith.constant 0 : index
    %c0_261 = arith.constant 0 : index
    %187 = vector.load %arg7[%c3_258, %c2_259, %c0_260, %c0_261] : memref<8x5x5x8xf32, #tpu.memory_space<vmem>>, vector<1x1x4x8xf32>
    %188 = vector.shape_cast %187 : vector<1x1x4x8xf32> to vector<4x8xf32>
    %c24_262 = arith.constant 24 : index
    %c0_263 = arith.constant 0 : index
    %189 = vector.load %arg8[%c24_262, %c0_263] : memref<32x8xf32, #tpu.memory_space<vmem>>, vector<4x8xf32>
    tpu.vector_store %arg8[%c24_262, %c0_263], %188 {strides = array<i32>} : memref<32x8xf32, #tpu.memory_space<vmem>>, vector<4x8xf32>,
    %c3_264 = arith.constant 3 : index
    %c3_265 = arith.constant 3 : index
    %c0_266 = arith.constant 0 : index
    %c0_267 = arith.constant 0 : index
    %190 = vector.load %arg7[%c3_264, %c3_265, %c0_266, %c0_267] : memref<8x5x5x8xf32, #tpu.memory_space<vmem>>, vector<1x1x4x8xf32>
    %191 = vector.shape_cast %190 : vector<1x1x4x8xf32> to vector<4x8xf32>
    %c28_268 = arith.constant 28 : index
    %c0_269 = arith.constant 0 : index
    %192 = vector.load %arg8[%c28_268, %c0_269] : memref<32x8xf32, #tpu.memory_space<vmem>>, vector<4x8xf32>
    tpu.vector_store %arg8[%c28_268, %c0_269], %191 {strides = array<i32>} : memref<32x8xf32, #tpu.memory_space<vmem>>, vector<4x8xf32>,
    %c0_270 = arith.constant 0 : index
    %c0_271 = arith.constant 0 : index
    %193 = vector.load %arg8[%c0_270, %c0_271] : memref<32x8xf32, #tpu.memory_space<vmem>>, vector<32x8xf32>
    %c1_272 = arith.constant 1 : index
    %c0_273 = arith.constant 0 : index
    %c0_274 = arith.constant 0 : index
    %194 = vector.load %arg3[%c1_272, %c0_273, %c0_274] : memref<16x8x16xf32, #tpu.memory_space<vmem>>, vector<1x8x16xf32>
    %195 = vector.shape_cast %194 : vector<1x8x16xf32> to vector<8x16xf32>
    %cst_275 = arith.constant dense<0.000000e+00> : vector<32x16xf32>
    %196 = tpu.matmul %193, %195, %cst_275 {dimension_numbers = #tpu.dot_dimension_numbers<[1], [0], [0], [1], [0, 0, 1, 1], [], []>} : vector<32x8xf32>, vector<8x16xf32>, vector<32x16xf32> -> vector<32x16xf32>
    %197 = arith.addf %168, %196 : vector<32x16xf32>
    %c0_276 = arith.constant 0 : index
    %c0_277 = arith.constant 0 : index
    %c1_278 = arith.constant 1 : index
    %c0_279 = arith.constant 0 : index
    %198 = vector.load %arg7[%c0_276, %c0_277, %c1_278, %c0_279] : memref<8x5x5x8xf32, #tpu.memory_space<vmem>>, vector<1x1x4x8xf32>
    %199 = vector.shape_cast %198 : vector<1x1x4x8xf32> to vector<4x8xf32>
    %c0_280 = arith.constant 0 : index
    %c0_281 = arith.constant 0 : index
    %200 = vector.load %arg8[%c0_280, %c0_281] : memref<32x8xf32, #tpu.memory_space<vmem>>, vector<4x8xf32>
    tpu.vector_store %arg8[%c0_280, %c0_281], %199 {strides = array<i32>} : memref<32x8xf32, #tpu.memory_space<vmem>>, vector<4x8xf32>,
    %c0_282 = arith.constant 0 : index
    %c1_283 = arith.constant 1 : index
    %c1_284 = arith.constant 1 : index
    %c0_285 = arith.constant 0 : index
    %201 = vector.load %arg7[%c0_282, %c1_283, %c1_284, %c0_285] : memref<8x5x5x8xf32, #tpu.memory_space<vmem>>, vector<1x1x4x8xf32>
    %202 = vector.shape_cast %201 : vector<1x1x4x8xf32> to vector<4x8xf32>
    %c4_286 = arith.constant 4 : index
    %c0_287 = arith.constant 0 : index
    %203 = vector.load %arg8[%c4_286, %c0_287] : memref<32x8xf32, #tpu.memory_space<vmem>>, vector<4x8xf32>
    tpu.vector_store %arg8[%c4_286, %c0_287], %202 {strides = array<i32>} : memref<32x8xf32, #tpu.memory_space<vmem>>, vector<4x8xf32>,
    %c0_288 = arith.constant 0 : index
    %c2_289 = arith.constant 2 : index
    %c1_290 = arith.constant 1 : index
    %c0_291 = arith.constant 0 : index
    %204 = vector.load %arg7[%c0_288, %c2_289, %c1_290, %c0_291] : memref<8x5x5x8xf32, #tpu.memory_space<vmem>>, vector<1x1x4x8xf32>
    %205 = vector.shape_cast %204 : vector<1x1x4x8xf32> to vector<4x8xf32>
    %c8_292 = arith.constant 8 : index
    %c0_293 = arith.constant 0 : index
    %206 = vector.load %arg8[%c8_292, %c0_293] : memref<32x8xf32, #tpu.memory_space<vmem>>, vector<4x8xf32>
    tpu.vector_store %arg8[%c8_292, %c0_293], %205 {strides = array<i32>} : memref<32x8xf32, #tpu.memory_space<vmem>>, vector<4x8xf32>,
    %c0_294 = arith.constant 0 : index
    %c3_295 = arith.constant 3 : index
    %c1_296 = arith.constant 1 : index
    %c0_297 = arith.constant 0 : index
    %207 = vector.load %arg7[%c0_294, %c3_295, %c1_296, %c0_297] : memref<8x5x5x8xf32, #tpu.memory_space<vmem>>, vector<1x1x4x8xf32>
    %208 = vector.shape_cast %207 : vector<1x1x4x8xf32> to vector<4x8xf32>
    %c12_298 = arith.constant 12 : index
    %c0_299 = arith.constant 0 : index
    %209 = vector.load %arg8[%c12_298, %c0_299] : memref<32x8xf32, #tpu.memory_space<vmem>>, vector<4x8xf32>
    tpu.vector_store %arg8[%c12_298, %c0_299], %208 {strides = array<i32>} : memref<32x8xf32, #tpu.memory_space<vmem>>, vector<4x8xf32>,
    %c1_300 = arith.constant 1 : index
    %c0_301 = arith.constant 0 : index
    %c1_302 = arith.constant 1 : index
    %c0_303 = arith.constant 0 : index
    %210 = vector.load %arg7[%c1_300, %c0_301, %c1_302, %c0_303] : memref<8x5x5x8xf32, #tpu.memory_space<vmem>>, vector<1x1x4x8xf32>
    %211 = vector.shape_cast %210 : vector<1x1x4x8xf32> to vector<4x8xf32>
    %c16_304 = arith.constant 16 : index
    %c0_305 = arith.constant 0 : index
    %212 = vector.load %arg8[%c16_304, %c0_305] : memref<32x8xf32, #tpu.memory_space<vmem>>, vector<4x8xf32>
    tpu.vector_store %arg8[%c16_304, %c0_305], %211 {strides = array<i32>} : memref<32x8xf32, #tpu.memory_space<vmem>>, vector<4x8xf32>,
    %c1_306 = arith.constant 1 : index
    %c1_307 = arith.constant 1 : index
    %c1_308 = arith.constant 1 : index
    %c0_309 = arith.constant 0 : index
    %213 = vector.load %arg7[%c1_306, %c1_307, %c1_308, %c0_309] : memref<8x5x5x8xf32, #tpu.memory_space<vmem>>, vector<1x1x4x8xf32>
    %214 = vector.shape_cast %213 : vector<1x1x4x8xf32> to vector<4x8xf32>
    %c20_310 = arith.constant 20 : index
    %c0_311 = arith.constant 0 : index
    %215 = vector.load %arg8[%c20_310, %c0_311] : memref<32x8xf32, #tpu.memory_space<vmem>>, vector<4x8xf32>
    tpu.vector_store %arg8[%c20_310, %c0_311], %214 {strides = array<i32>} : memref<32x8xf32, #tpu.memory_space<vmem>>, vector<4x8xf32>,
    %c1_312 = arith.constant 1 : index
    %c2_313 = arith.constant 2 : index
    %c1_314 = arith.constant 1 : index
    %c0_315 = arith.constant 0 : index
    %216 = vector.load %arg7[%c1_312, %c2_313, %c1_314, %c0_315] : memref<8x5x5x8xf32, #tpu.memory_space<vmem>>, vector<1x1x4x8xf32>
    %217 = vector.shape_cast %216 : vector<1x1x4x8xf32> to vector<4x8xf32>
    %c24_316 = arith.constant 24 : index
    %c0_317 = arith.constant 0 : index
    %218 = vector.load %arg8[%c24_316, %c0_317] : memref<32x8xf32, #tpu.memory_space<vmem>>, vector<4x8xf32>
    tpu.vector_store %arg8[%c24_316, %c0_317], %217 {strides = array<i32>} : memref<32x8xf32, #tpu.memory_space<vmem>>, vector<4x8xf32>,
    %c1_318 = arith.constant 1 : index
    %c3_319 = arith.constant 3 : index
    %c1_320 = arith.constant 1 : index
    %c0_321 = arith.constant 0 : index
    %219 = vector.load %arg7[%c1_318, %c3_319, %c1_320, %c0_321] : memref<8x5x5x8xf32, #tpu.memory_space<vmem>>, vector<1x1x4x8xf32>
    %220 = vector.shape_cast %219 : vector<1x1x4x8xf32> to vector<4x8xf32>
    %c28_322 = arith.constant 28 : index
    %c0_323 = arith.constant 0 : index
    %221 = vector.load %arg8[%c28_322, %c0_323] : memref<32x8xf32, #tpu.memory_space<vmem>>, vector<4x8xf32>
    tpu.vector_store %arg8[%c28_322, %c0_323], %220 {strides = array<i32>} : memref<32x8xf32, #tpu.memory_space<vmem>>, vector<4x8xf32>,
    %c0_324 = arith.constant 0 : index
    %c0_325 = arith.constant 0 : index
    %222 = vector.load %arg8[%c0_324, %c0_325] : memref<32x8xf32, #tpu.memory_space<vmem>>, vector<32x8xf32>
    %c2_326 = arith.constant 2 : index
    %c0_327 = arith.constant 0 : index
    %c0_328 = arith.constant 0 : index
    %223 = vector.load %arg3[%c2_326, %c0_327, %c0_328] : memref<16x8x16xf32, #tpu.memory_space<vmem>>, vector<1x8x16xf32>
    %224 = vector.shape_cast %223 : vector<1x8x16xf32> to vector<8x16xf32>
    %cst_329 = arith.constant dense<0.000000e+00> : vector<32x16xf32>
    %225 = tpu.matmul %222, %224, %cst_329 {dimension_numbers = #tpu.dot_dimension_numbers<[1], [0], [0], [1], [0, 0, 1, 1], [], []>} : vector<32x8xf32>, vector<8x16xf32>, vector<32x16xf32> -> vector<32x16xf32>
    %226 = arith.addf %197, %225 : vector<32x16xf32>
    %c2_330 = arith.constant 2 : index
    %c0_331 = arith.constant 0 : index
    %c1_332 = arith.constant 1 : index
    %c0_333 = arith.constant 0 : index
    %227 = vector.load %arg7[%c2_330, %c0_331, %c1_332, %c0_333] : memref<8x5x5x8xf32, #tpu.memory_space<vmem>>, vector<1x1x4x8xf32>
    %228 = vector.shape_cast %227 : vector<1x1x4x8xf32> to vector<4x8xf32>
    %c0_334 = arith.constant 0 : index
    %c0_335 = arith.constant 0 : index
    %229 = vector.load %arg8[%c0_334, %c0_335] : memref<32x8xf32, #tpu.memory_space<vmem>>, vector<4x8xf32>
    tpu.vector_store %arg8[%c0_334, %c0_335], %228 {strides = array<i32>} : memref<32x8xf32, #tpu.memory_space<vmem>>, vector<4x8xf32>,
    %c2_336 = arith.constant 2 : index
    %c1_337 = arith.constant 1 : index
    %c1_338 = arith.constant 1 : index
    %c0_339 = arith.constant 0 : index
    %230 = vector.load %arg7[%c2_336, %c1_337, %c1_338, %c0_339] : memref<8x5x5x8xf32, #tpu.memory_space<vmem>>, vector<1x1x4x8xf32>
    %231 = vector.shape_cast %230 : vector<1x1x4x8xf32> to vector<4x8xf32>
    %c4_340 = arith.constant 4 : index
    %c0_341 = arith.constant 0 : index
    %232 = vector.load %arg8[%c4_340, %c0_341] : memref<32x8xf32, #tpu.memory_space<vmem>>, vector<4x8xf32>
    tpu.vector_store %arg8[%c4_340, %c0_341], %231 {strides = array<i32>} : memref<32x8xf32, #tpu.memory_space<vmem>>, vector<4x8xf32>,
    %c2_342 = arith.constant 2 : index
    %c2_343 = arith.constant 2 : index
    %c1_344 = arith.constant 1 : index
    %c0_345 = arith.constant 0 : index
    %233 = vector.load %arg7[%c2_342, %c2_343, %c1_344, %c0_345] : memref<8x5x5x8xf32, #tpu.memory_space<vmem>>, vector<1x1x4x8xf32>
    %234 = vector.shape_cast %233 : vector<1x1x4x8xf32> to vector<4x8xf32>
    %c8_346 = arith.constant 8 : index
    %c0_347 = arith.constant 0 : index
    %235 = vector.load %arg8[%c8_346, %c0_347] : memref<32x8xf32, #tpu.memory_space<vmem>>, vector<4x8xf32>
    tpu.vector_store %arg8[%c8_346, %c0_347], %234 {strides = array<i32>} : memref<32x8xf32, #tpu.memory_space<vmem>>, vector<4x8xf32>,
    %c2_348 = arith.constant 2 : index
    %c3_349 = arith.constant 3 : index
    %c1_350 = arith.constant 1 : index
    %c0_351 = arith.constant 0 : index
    %236 = vector.load %arg7[%c2_348, %c3_349, %c1_350, %c0_351] : memref<8x5x5x8xf32, #tpu.memory_space<vmem>>, vector<1x1x4x8xf32>
    %237 = vector.shape_cast %236 : vector<1x1x4x8xf32> to vector<4x8xf32>
    %c12_352 = arith.constant 12 : index
    %c0_353 = arith.constant 0 : index
    %238 = vector.load %arg8[%c12_352, %c0_353] : memref<32x8xf32, #tpu.memory_space<vmem>>, vector<4x8xf32>
    tpu.vector_store %arg8[%c12_352, %c0_353], %237 {strides = array<i32>} : memref<32x8xf32, #tpu.memory_space<vmem>>, vector<4x8xf32>,
    %c3_354 = arith.constant 3 : index
    %c0_355 = arith.constant 0 : index
    %c1_356 = arith.constant 1 : index
    %c0_357 = arith.constant 0 : index
    %239 = vector.load %arg7[%c3_354, %c0_355, %c1_356, %c0_357] : memref<8x5x5x8xf32, #tpu.memory_space<vmem>>, vector<1x1x4x8xf32>
    %240 = vector.shape_cast %239 : vector<1x1x4x8xf32> to vector<4x8xf32>
    %c16_358 = arith.constant 16 : index
    %c0_359 = arith.constant 0 : index
    %241 = vector.load %arg8[%c16_358, %c0_359] : memref<32x8xf32, #tpu.memory_space<vmem>>, vector<4x8xf32>
    tpu.vector_store %arg8[%c16_358, %c0_359], %240 {strides = array<i32>} : memref<32x8xf32, #tpu.memory_space<vmem>>, vector<4x8xf32>,
    %c3_360 = arith.constant 3 : index
    %c1_361 = arith.constant 1 : index
    %c1_362 = arith.constant 1 : index
    %c0_363 = arith.constant 0 : index
    %242 = vector.load %arg7[%c3_360, %c1_361, %c1_362, %c0_363] : memref<8x5x5x8xf32, #tpu.memory_space<vmem>>, vector<1x1x4x8xf32>
    %243 = vector.shape_cast %242 : vector<1x1x4x8xf32> to vector<4x8xf32>
    %c20_364 = arith.constant 20 : index
    %c0_365 = arith.constant 0 : index
    %244 = vector.load %arg8[%c20_364, %c0_365] : memref<32x8xf32, #tpu.memory_space<vmem>>, vector<4x8xf32>
    tpu.vector_store %arg8[%c20_364, %c0_365], %243 {strides = array<i32>} : memref<32x8xf32, #tpu.memory_space<vmem>>, vector<4x8xf32>,
    %c3_366 = arith.constant 3 : index
    %c2_367 = arith.constant 2 : index
    %c1_368 = arith.constant 1 : index
    %c0_369 = arith.constant 0 : index
    %245 = vector.load %arg7[%c3_366, %c2_367, %c1_368, %c0_369] : memref<8x5x5x8xf32, #tpu.memory_space<vmem>>, vector<1x1x4x8xf32>
    %246 = vector.shape_cast %245 : vector<1x1x4x8xf32> to vector<4x8xf32>
    %c24_370 = arith.constant 24 : index
    %c0_371 = arith.constant 0 : index
    %247 = vector.load %arg8[%c24_370, %c0_371] : memref<32x8xf32, #tpu.memory_space<vmem>>, vector<4x8xf32>
    tpu.vector_store %arg8[%c24_370, %c0_371], %246 {strides = array<i32>} : memref<32x8xf32, #tpu.memory_space<vmem>>, vector<4x8xf32>,
    %c3_372 = arith.constant 3 : index
    %c3_373 = arith.constant 3 : index
    %c1_374 = arith.constant 1 : index
    %c0_375 = arith.constant 0 : index
    %248 = vector.load %arg7[%c3_372, %c3_373, %c1_374, %c0_375] : memref<8x5x5x8xf32, #tpu.memory_space<vmem>>, vector<1x1x4x8xf32>
    %249 = vector.shape_cast %248 : vector<1x1x4x8xf32> to vector<4x8xf32>
    %c28_376 = arith.constant 28 : index
    %c0_377 = arith.constant 0 : index
    %250 = vector.load %arg8[%c28_376, %c0_377] : memref<32x8xf32, #tpu.memory_space<vmem>>, vector<4x8xf32>
    tpu.vector_store %arg8[%c28_376, %c0_377], %249 {strides = array<i32>} : memref<32x8xf32, #tpu.memory_space<vmem>>, vector<4x8xf32>,
    %c0_378 = arith.constant 0 : index
    %c0_379 = arith.constant 0 : index
    %251 = vector.load %arg8[%c0_378, %c0_379] : memref<32x8xf32, #tpu.memory_space<vmem>>, vector<32x8xf32>
    %c3_380 = arith.constant 3 : index
    %c0_381 = arith.constant 0 : index
    %c0_382 = arith.constant 0 : index
    %252 = vector.load %arg3[%c3_380, %c0_381, %c0_382] : memref<16x8x16xf32, #tpu.memory_space<vmem>>, vector<1x8x16xf32>
    %253 = vector.shape_cast %252 : vector<1x8x16xf32> to vector<8x16xf32>
    %cst_383 = arith.constant dense<0.000000e+00> : vector<32x16xf32>
    %254 = tpu.matmul %251, %253, %cst_383 {dimension_numbers = #tpu.dot_dimension_numbers<[1], [0], [0], [1], [0, 0, 1, 1], [], []>} : vector<32x8xf32>, vector<8x16xf32>, vector<32x16xf32> -> vector<32x16xf32>
    %255 = arith.addf %226, %254 : vector<32x16xf32>
    %c4_384 = arith.constant 4 : index
    %c0_385 = arith.constant 0 : index
    %c0_386 = arith.constant 0 : index
    %c0_387 = arith.constant 0 : index
    %256 = vector.load %arg7[%c4_384, %c0_385, %c0_386, %c0_387] : memref<8x5x5x8xf32, #tpu.memory_space<vmem>>, vector<1x1x4x8xf32>
    %257 = vector.shape_cast %256 : vector<1x1x4x8xf32> to vector<4x8xf32>
    %c0_388 = arith.constant 0 : index
    %c0_389 = arith.constant 0 : index
    %258 = vector.load %arg8[%c0_388, %c0_389] : memref<32x8xf32, #tpu.memory_space<vmem>>, vector<4x8xf32>
    tpu.vector_store %arg8[%c0_388, %c0_389], %257 {strides = array<i32>} : memref<32x8xf32, #tpu.memory_space<vmem>>, vector<4x8xf32>,
    %c4_390 = arith.constant 4 : index
    %c1_391 = arith.constant 1 : index
    %c0_392 = arith.constant 0 : index
    %c0_393 = arith.constant 0 : index
    %259 = vector.load %arg7[%c4_390, %c1_391, %c0_392, %c0_393] : memref<8x5x5x8xf32, #tpu.memory_space<vmem>>, vector<1x1x4x8xf32>
    %260 = vector.shape_cast %259 : vector<1x1x4x8xf32> to vector<4x8xf32>
    %c4_394 = arith.constant 4 : index
    %c0_395 = arith.constant 0 : index
    %261 = vector.load %arg8[%c4_394, %c0_395] : memref<32x8xf32, #tpu.memory_space<vmem>>, vector<4x8xf32>
    tpu.vector_store %arg8[%c4_394, %c0_395], %260 {strides = array<i32>} : memref<32x8xf32, #tpu.memory_space<vmem>>, vector<4x8xf32>,
    %c4_396 = arith.constant 4 : index
    %c2_397 = arith.constant 2 : index
    %c0_398 = arith.constant 0 : index
    %c0_399 = arith.constant 0 : index
    %262 = vector.load %arg7[%c4_396, %c2_397, %c0_398, %c0_399] : memref<8x5x5x8xf32, #tpu.memory_space<vmem>>, vector<1x1x4x8xf32>
    %263 = vector.shape_cast %262 : vector<1x1x4x8xf32> to vector<4x8xf32>
    %c8_400 = arith.constant 8 : index
    %c0_401 = arith.constant 0 : index
    %264 = vector.load %arg8[%c8_400, %c0_401] : memref<32x8xf32, #tpu.memory_space<vmem>>, vector<4x8xf32>
    tpu.vector_store %arg8[%c8_400, %c0_401], %263 {strides = array<i32>} : memref<32x8xf32, #tpu.memory_space<vmem>>, vector<4x8xf32>,
    %c4_402 = arith.constant 4 : index
    %c3_403 = arith.constant 3 : index
    %c0_404 = arith.constant 0 : index
    %c0_405 = arith.constant 0 : index
    %265 = vector.load %arg7[%c4_402, %c3_403, %c0_404, %c0_405] : memref<8x5x5x8xf32, #tpu.memory_space<vmem>>, vector<1x1x4x8xf32>
    %266 = vector.shape_cast %265 : vector<1x1x4x8xf32> to vector<4x8xf32>
    %c12_406 = arith.constant 12 : index
    %c0_407 = arith.constant 0 : index
    %267 = vector.load %arg8[%c12_406, %c0_407] : memref<32x8xf32, #tpu.memory_space<vmem>>, vector<4x8xf32>
    tpu.vector_store %arg8[%c12_406, %c0_407], %266 {strides = array<i32>} : memref<32x8xf32, #tpu.memory_space<vmem>>, vector<4x8xf32>,
    %c5_408 = arith.constant 5 : index
    %c0_409 = arith.constant 0 : index
    %c0_410 = arith.constant 0 : index
    %c0_411 = arith.constant 0 : index
    %268 = vector.load %arg7[%c5_408, %c0_409, %c0_410, %c0_411] : memref<8x5x5x8xf32, #tpu.memory_space<vmem>>, vector<1x1x4x8xf32>
    %269 = vector.shape_cast %268 : vector<1x1x4x8xf32> to vector<4x8xf32>
    %c16_412 = arith.constant 16 : index
    %c0_413 = arith.constant 0 : index
    %270 = vector.load %arg8[%c16_412, %c0_413] : memref<32x8xf32, #tpu.memory_space<vmem>>, vector<4x8xf32>
    tpu.vector_store %arg8[%c16_412, %c0_413], %269 {strides = array<i32>} : memref<32x8xf32, #tpu.memory_space<vmem>>, vector<4x8xf32>,
    %c5_414 = arith.constant 5 : index
    %c1_415 = arith.constant 1 : index
    %c0_416 = arith.constant 0 : index
    %c0_417 = arith.constant 0 : index
    %271 = vector.load %arg7[%c5_414, %c1_415, %c0_416, %c0_417] : memref<8x5x5x8xf32, #tpu.memory_space<vmem>>, vector<1x1x4x8xf32>
    %272 = vector.shape_cast %271 : vector<1x1x4x8xf32> to vector<4x8xf32>
    %c20_418 = arith.constant 20 : index
    %c0_419 = arith.constant 0 : index
    %273 = vector.load %arg8[%c20_418, %c0_419] : memref<32x8xf32, #tpu.memory_space<vmem>>, vector<4x8xf32>
    tpu.vector_store %arg8[%c20_418, %c0_419], %272 {strides = array<i32>} : memref<32x8xf32, #tpu.memory_space<vmem>>, vector<4x8xf32>,
    %c5_420 = arith.constant 5 : index
    %c2_421 = arith.constant 2 : index
    %c0_422 = arith.constant 0 : index
    %c0_423 = arith.constant 0 : index
    %274 = vector.load %arg7[%c5_420, %c2_421, %c0_422, %c0_423] : memref<8x5x5x8xf32, #tpu.memory_space<vmem>>, vector<1x1x4x8xf32>
    %275 = vector.shape_cast %274 : vector<1x1x4x8xf32> to vector<4x8xf32>
    %c24_424 = arith.constant 24 : index
    %c0_425 = arith.constant 0 : index
    %276 = vector.load %arg8[%c24_424, %c0_425] : memref<32x8xf32, #tpu.memory_space<vmem>>, vector<4x8xf32>
    tpu.vector_store %arg8[%c24_424, %c0_425], %275 {strides = array<i32>} : memref<32x8xf32, #tpu.memory_space<vmem>>, vector<4x8xf32>,
    %c5_426 = arith.constant 5 : index
    %c3_427 = arith.constant 3 : index
    %c0_428 = arith.constant 0 : index
    %c0_429 = arith.constant 0 : index
    %277 = vector.load %arg7[%c5_426, %c3_427, %c0_428, %c0_429] : memref<8x5x5x8xf32, #tpu.memory_space<vmem>>, vector<1x1x4x8xf32>
    %278 = vector.shape_cast %277 : vector<1x1x4x8xf32> to vector<4x8xf32>
    %c28_430 = arith.constant 28 : index
    %c0_431 = arith.constant 0 : index
    %279 = vector.load %arg8[%c28_430, %c0_431] : memref<32x8xf32, #tpu.memory_space<vmem>>, vector<4x8xf32>
    tpu.vector_store %arg8[%c28_430, %c0_431], %278 {strides = array<i32>} : memref<32x8xf32, #tpu.memory_space<vmem>>, vector<4x8xf32>,
    %c0_432 = arith.constant 0 : index
    %c0_433 = arith.constant 0 : index
    %280 = vector.load %arg8[%c0_432, %c0_433] : memref<32x8xf32, #tpu.memory_space<vmem>>, vector<32x8xf32>
    %c4_434 = arith.constant 4 : index
    %c0_435 = arith.constant 0 : index
    %c0_436 = arith.constant 0 : index
    %281 = vector.load %arg3[%c4_434, %c0_435, %c0_436] : memref<16x8x16xf32, #tpu.memory_space<vmem>>, vector<1x8x16xf32>
    %282 = vector.shape_cast %281 : vector<1x8x16xf32> to vector<8x16xf32>
    %cst_437 = arith.constant dense<0.000000e+00> : vector<32x16xf32>
    %283 = tpu.matmul %280, %282, %cst_437 {dimension_numbers = #tpu.dot_dimension_numbers<[1], [0], [0], [1], [0, 0, 1, 1], [], []>} : vector<32x8xf32>, vector<8x16xf32>, vector<32x16xf32> -> vector<32x16xf32>
    %284 = arith.addf %255, %283 : vector<32x16xf32>
    %c6_438 = arith.constant 6 : index
    %c0_439 = arith.constant 0 : index
    %c0_440 = arith.constant 0 : index
    %c0_441 = arith.constant 0 : index
    %285 = vector.load %arg7[%c6_438, %c0_439, %c0_440, %c0_441] : memref<8x5x5x8xf32, #tpu.memory_space<vmem>>, vector<1x1x4x8xf32>
    %286 = vector.shape_cast %285 : vector<1x1x4x8xf32> to vector<4x8xf32>
    %c0_442 = arith.constant 0 : index
    %c0_443 = arith.constant 0 : index
    %287 = vector.load %arg8[%c0_442, %c0_443] : memref<32x8xf32, #tpu.memory_space<vmem>>, vector<4x8xf32>
    tpu.vector_store %arg8[%c0_442, %c0_443], %286 {strides = array<i32>} : memref<32x8xf32, #tpu.memory_space<vmem>>, vector<4x8xf32>,
    %c6_444 = arith.constant 6 : index
    %c1_445 = arith.constant 1 : index
    %c0_446 = arith.constant 0 : index
    %c0_447 = arith.constant 0 : index
    %288 = vector.load %arg7[%c6_444, %c1_445, %c0_446, %c0_447] : memref<8x5x5x8xf32, #tpu.memory_space<vmem>>, vector<1x1x4x8xf32>
    %289 = vector.shape_cast %288 : vector<1x1x4x8xf32> to vector<4x8xf32>
    %c4_448 = arith.constant 4 : index
    %c0_449 = arith.constant 0 : index
    %290 = vector.load %arg8[%c4_448, %c0_449] : memref<32x8xf32, #tpu.memory_space<vmem>>, vector<4x8xf32>
    tpu.vector_store %arg8[%c4_448, %c0_449], %289 {strides = array<i32>} : memref<32x8xf32, #tpu.memory_space<vmem>>, vector<4x8xf32>,
    %c6_450 = arith.constant 6 : index
    %c2_451 = arith.constant 2 : index
    %c0_452 = arith.constant 0 : index
    %c0_453 = arith.constant 0 : index
    %291 = vector.load %arg7[%c6_450, %c2_451, %c0_452, %c0_453] : memref<8x5x5x8xf32, #tpu.memory_space<vmem>>, vector<1x1x4x8xf32>
    %292 = vector.shape_cast %291 : vector<1x1x4x8xf32> to vector<4x8xf32>
    %c8_454 = arith.constant 8 : index
    %c0_455 = arith.constant 0 : index
    %293 = vector.load %arg8[%c8_454, %c0_455] : memref<32x8xf32, #tpu.memory_space<vmem>>, vector<4x8xf32>
    tpu.vector_store %arg8[%c8_454, %c0_455], %292 {strides = array<i32>} : memref<32x8xf32, #tpu.memory_space<vmem>>, vector<4x8xf32>,
    %c6_456 = arith.constant 6 : index
    %c3_457 = arith.constant 3 : index
    %c0_458 = arith.constant 0 : index
    %c0_459 = arith.constant 0 : index
    %294 = vector.load %arg7[%c6_456, %c3_457, %c0_458, %c0_459] : memref<8x5x5x8xf32, #tpu.memory_space<vmem>>, vector<1x1x4x8xf32>
    %295 = vector.shape_cast %294 : vector<1x1x4x8xf32> to vector<4x8xf32>
    %c12_460 = arith.constant 12 : index
    %c0_461 = arith.constant 0 : index
    %296 = vector.load %arg8[%c12_460, %c0_461] : memref<32x8xf32, #tpu.memory_space<vmem>>, vector<4x8xf32>
    tpu.vector_store %arg8[%c12_460, %c0_461], %295 {strides = array<i32>} : memref<32x8xf32, #tpu.memory_space<vmem>>, vector<4x8xf32>,
    %c7_462 = arith.constant 7 : index
    %c0_463 = arith.constant 0 : index
    %c0_464 = arith.constant 0 : index
    %c0_465 = arith.constant 0 : index
    %297 = vector.load %arg7[%c7_462, %c0_463, %c0_464, %c0_465] : memref<8x5x5x8xf32, #tpu.memory_space<vmem>>, vector<1x1x4x8xf32>
    %298 = vector.shape_cast %297 : vector<1x1x4x8xf32> to vector<4x8xf32>
    %c16_466 = arith.constant 16 : index
    %c0_467 = arith.constant 0 : index
    %299 = vector.load %arg8[%c16_466, %c0_467] : memref<32x8xf32, #tpu.memory_space<vmem>>, vector<4x8xf32>
    tpu.vector_store %arg8[%c16_466, %c0_467], %298 {strides = array<i32>} : memref<32x8xf32, #tpu.memory_space<vmem>>, vector<4x8xf32>,
    %c7_468 = arith.constant 7 : index
    %c1_469 = arith.constant 1 : index
    %c0_470 = arith.constant 0 : index
    %c0_471 = arith.constant 0 : index
    %300 = vector.load %arg7[%c7_468, %c1_469, %c0_470, %c0_471] : memref<8x5x5x8xf32, #tpu.memory_space<vmem>>, vector<1x1x4x8xf32>
    %301 = vector.shape_cast %300 : vector<1x1x4x8xf32> to vector<4x8xf32>
    %c20_472 = arith.constant 20 : index
    %c0_473 = arith.constant 0 : index
    %302 = vector.load %arg8[%c20_472, %c0_473] : memref<32x8xf32, #tpu.memory_space<vmem>>, vector<4x8xf32>
    tpu.vector_store %arg8[%c20_472, %c0_473], %301 {strides = array<i32>} : memref<32x8xf32, #tpu.memory_space<vmem>>, vector<4x8xf32>,
    %c7_474 = arith.constant 7 : index
    %c2_475 = arith.constant 2 : index
    %c0_476 = arith.constant 0 : index
    %c0_477 = arith.constant 0 : index
    %303 = vector.load %arg7[%c7_474, %c2_475, %c0_476, %c0_477] : memref<8x5x5x8xf32, #tpu.memory_space<vmem>>, vector<1x1x4x8xf32>
    %304 = vector.shape_cast %303 : vector<1x1x4x8xf32> to vector<4x8xf32>
    %c24_478 = arith.constant 24 : index
    %c0_479 = arith.constant 0 : index
    %305 = vector.load %arg8[%c24_478, %c0_479] : memref<32x8xf32, #tpu.memory_space<vmem>>, vector<4x8xf32>
    tpu.vector_store %arg8[%c24_478, %c0_479], %304 {strides = array<i32>} : memref<32x8xf32, #tpu.memory_space<vmem>>, vector<4x8xf32>,
    %c7_480 = arith.constant 7 : index
    %c3_481 = arith.constant 3 : index
    %c0_482 = arith.constant 0 : index
    %c0_483 = arith.constant 0 : index
    %306 = vector.load %arg7[%c7_480, %c3_481, %c0_482, %c0_483] : memref<8x5x5x8xf32, #tpu.memory_space<vmem>>, vector<1x1x4x8xf32>
    %307 = vector.shape_cast %306 : vector<1x1x4x8xf32> to vector<4x8xf32>
    %c28_484 = arith.constant 28 : index
    %c0_485 = arith.constant 0 : index
    %308 = vector.load %arg8[%c28_484, %c0_485] : memref<32x8xf32, #tpu.memory_space<vmem>>, vector<4x8xf32>
    tpu.vector_store %arg8[%c28_484, %c0_485], %307 {strides = array<i32>} : memref<32x8xf32, #tpu.memory_space<vmem>>, vector<4x8xf32>,
    %c0_486 = arith.constant 0 : index
    %c0_487 = arith.constant 0 : index
    %309 = vector.load %arg8[%c0_486, %c0_487] : memref<32x8xf32, #tpu.memory_space<vmem>>, vector<32x8xf32>
    %c5_488 = arith.constant 5 : index
    %c0_489 = arith.constant 0 : index
    %c0_490 = arith.constant 0 : index
    %310 = vector.load %arg3[%c5_488, %c0_489, %c0_490] : memref<16x8x16xf32, #tpu.memory_space<vmem>>, vector<1x8x16xf32>
    %311 = vector.shape_cast %310 : vector<1x8x16xf32> to vector<8x16xf32>
    %cst_491 = arith.constant dense<0.000000e+00> : vector<32x16xf32>
    %312 = tpu.matmul %309, %311, %cst_491 {dimension_numbers = #tpu.dot_dimension_numbers<[1], [0], [0], [1], [0, 0, 1, 1], [], []>} : vector<32x8xf32>, vector<8x16xf32>, vector<32x16xf32> -> vector<32x16xf32>
    %313 = arith.addf %284, %312 : vector<32x16xf32>
    %c4_492 = arith.constant 4 : index
    %c0_493 = arith.constant 0 : index
    %c1_494 = arith.constant 1 : index
    %c0_495 = arith.constant 0 : index
    %314 = vector.load %arg7[%c4_492, %c0_493, %c1_494, %c0_495] : memref<8x5x5x8xf32, #tpu.memory_space<vmem>>, vector<1x1x4x8xf32>
    %315 = vector.shape_cast %314 : vector<1x1x4x8xf32> to vector<4x8xf32>
    %c0_496 = arith.constant 0 : index
    %c0_497 = arith.constant 0 : index
    %316 = vector.load %arg8[%c0_496, %c0_497] : memref<32x8xf32, #tpu.memory_space<vmem>>, vector<4x8xf32>
    tpu.vector_store %arg8[%c0_496, %c0_497], %315 {strides = array<i32>} : memref<32x8xf32, #tpu.memory_space<vmem>>, vector<4x8xf32>,
    %c4_498 = arith.constant 4 : index
    %c1_499 = arith.constant 1 : index
    %c1_500 = arith.constant 1 : index
    %c0_501 = arith.constant 0 : index
    %317 = vector.load %arg7[%c4_498, %c1_499, %c1_500, %c0_501] : memref<8x5x5x8xf32, #tpu.memory_space<vmem>>, vector<1x1x4x8xf32>
    %318 = vector.shape_cast %317 : vector<1x1x4x8xf32> to vector<4x8xf32>
    %c4_502 = arith.constant 4 : index
    %c0_503 = arith.constant 0 : index
    %319 = vector.load %arg8[%c4_502, %c0_503] : memref<32x8xf32, #tpu.memory_space<vmem>>, vector<4x8xf32>
    tpu.vector_store %arg8[%c4_502, %c0_503], %318 {strides = array<i32>} : memref<32x8xf32, #tpu.memory_space<vmem>>, vector<4x8xf32>,
    %c4_504 = arith.constant 4 : index
    %c2_505 = arith.constant 2 : index
    %c1_506 = arith.constant 1 : index
    %c0_507 = arith.constant 0 : index
    %320 = vector.load %arg7[%c4_504, %c2_505, %c1_506, %c0_507] : memref<8x5x5x8xf32, #tpu.memory_space<vmem>>, vector<1x1x4x8xf32>
    %321 = vector.shape_cast %320 : vector<1x1x4x8xf32> to vector<4x8xf32>
    %c8_508 = arith.constant 8 : index
    %c0_509 = arith.constant 0 : index
    %322 = vector.load %arg8[%c8_508, %c0_509] : memref<32x8xf32, #tpu.memory_space<vmem>>, vector<4x8xf32>
    tpu.vector_store %arg8[%c8_508, %c0_509], %321 {strides = array<i32>} : memref<32x8xf32, #tpu.memory_space<vmem>>, vector<4x8xf32>,
    %c4_510 = arith.constant 4 : index
    %c3_511 = arith.constant 3 : index
    %c1_512 = arith.constant 1 : index
    %c0_513 = arith.constant 0 : index
    %323 = vector.load %arg7[%c4_510, %c3_511, %c1_512, %c0_513] : memref<8x5x5x8xf32, #tpu.memory_space<vmem>>, vector<1x1x4x8xf32>
    %324 = vector.shape_cast %323 : vector<1x1x4x8xf32> to vector<4x8xf32>
    %c12_514 = arith.constant 12 : index
    %c0_515 = arith.constant 0 : index
    %325 = vector.load %arg8[%c12_514, %c0_515] : memref<32x8xf32, #tpu.memory_space<vmem>>, vector<4x8xf32>
    tpu.vector_store %arg8[%c12_514, %c0_515], %324 {strides = array<i32>} : memref<32x8xf32, #tpu.memory_space<vmem>>, vector<4x8xf32>,
    %c5_516 = arith.constant 5 : index
    %c0_517 = arith.constant 0 : index
    %c1_518 = arith.constant 1 : index
    %c0_519 = arith.constant 0 : index
    %326 = vector.load %arg7[%c5_516, %c0_517, %c1_518, %c0_519] : memref<8x5x5x8xf32, #tpu.memory_space<vmem>>, vector<1x1x4x8xf32>
    %327 = vector.shape_cast %326 : vector<1x1x4x8xf32> to vector<4x8xf32>
    %c16_520 = arith.constant 16 : index
    %c0_521 = arith.constant 0 : index
    %328 = vector.load %arg8[%c16_520, %c0_521] : memref<32x8xf32, #tpu.memory_space<vmem>>, vector<4x8xf32>
    tpu.vector_store %arg8[%c16_520, %c0_521], %327 {strides = array<i32>} : memref<32x8xf32, #tpu.memory_space<vmem>>, vector<4x8xf32>,
    %c5_522 = arith.constant 5 : index
    %c1_523 = arith.constant 1 : index
    %c1_524 = arith.constant 1 : index
    %c0_525 = arith.constant 0 : index
    %329 = vector.load %arg7[%c5_522, %c1_523, %c1_524, %c0_525] : memref<8x5x5x8xf32, #tpu.memory_space<vmem>>, vector<1x1x4x8xf32>
    %330 = vector.shape_cast %329 : vector<1x1x4x8xf32> to vector<4x8xf32>
    %c20_526 = arith.constant 20 : index
    %c0_527 = arith.constant 0 : index
    %331 = vector.load %arg8[%c20_526, %c0_527] : memref<32x8xf32, #tpu.memory_space<vmem>>, vector<4x8xf32>
    tpu.vector_store %arg8[%c20_526, %c0_527], %330 {strides = array<i32>} : memref<32x8xf32, #tpu.memory_space<vmem>>, vector<4x8xf32>,
    %c5_528 = arith.constant 5 : index
    %c2_529 = arith.constant 2 : index
    %c1_530 = arith.constant 1 : index
    %c0_531 = arith.constant 0 : index
    %332 = vector.load %arg7[%c5_528, %c2_529, %c1_530, %c0_531] : memref<8x5x5x8xf32, #tpu.memory_space<vmem>>, vector<1x1x4x8xf32>
    %333 = vector.shape_cast %332 : vector<1x1x4x8xf32> to vector<4x8xf32>
    %c24_532 = arith.constant 24 : index
    %c0_533 = arith.constant 0 : index
    %334 = vector.load %arg8[%c24_532, %c0_533] : memref<32x8xf32, #tpu.memory_space<vmem>>, vector<4x8xf32>
    tpu.vector_store %arg8[%c24_532, %c0_533], %333 {strides = array<i32>} : memref<32x8xf32, #tpu.memory_space<vmem>>, vector<4x8xf32>,
    %c5_534 = arith.constant 5 : index
    %c3_535 = arith.constant 3 : index
    %c1_536 = arith.constant 1 : index
    %c0_537 = arith.constant 0 : index
    %335 = vector.load %arg7[%c5_534, %c3_535, %c1_536, %c0_537] : memref<8x5x5x8xf32, #tpu.memory_space<vmem>>, vector<1x1x4x8xf32>
    %336 = vector.shape_cast %335 : vector<1x1x4x8xf32> to vector<4x8xf32>
    %c28_538 = arith.constant 28 : index
    %c0_539 = arith.constant 0 : index
    %337 = vector.load %arg8[%c28_538, %c0_539] : memref<32x8xf32, #tpu.memory_space<vmem>>, vector<4x8xf32>
    tpu.vector_store %arg8[%c28_538, %c0_539], %336 {strides = array<i32>} : memref<32x8xf32, #tpu.memory_space<vmem>>, vector<4x8xf32>,
    %c0_540 = arith.constant 0 : index
    %c0_541 = arith.constant 0 : index
    %338 = vector.load %arg8[%c0_540, %c0_541] : memref<32x8xf32, #tpu.memory_space<vmem>>, vector<32x8xf32>
    %c6_542 = arith.constant 6 : index
    %c0_543 = arith.constant 0 : index
    %c0_544 = arith.constant 0 : index
    %339 = vector.load %arg3[%c6_542, %c0_543, %c0_544] : memref<16x8x16xf32, #tpu.memory_space<vmem>>, vector<1x8x16xf32>
    %340 = vector.shape_cast %339 : vector<1x8x16xf32> to vector<8x16xf32>
    %cst_545 = arith.constant dense<0.000000e+00> : vector<32x16xf32>
    %341 = tpu.matmul %338, %340, %cst_545 {dimension_numbers = #tpu.dot_dimension_numbers<[1], [0], [0], [1], [0, 0, 1, 1], [], []>} : vector<32x8xf32>, vector<8x16xf32>, vector<32x16xf32> -> vector<32x16xf32>
    %342 = arith.addf %313, %341 : vector<32x16xf32>
    %c6_546 = arith.constant 6 : index
    %c0_547 = arith.constant 0 : index
    %c1_548 = arith.constant 1 : index
    %c0_549 = arith.constant 0 : index
    %343 = vector.load %arg7[%c6_546, %c0_547, %c1_548, %c0_549] : memref<8x5x5x8xf32, #tpu.memory_space<vmem>>, vector<1x1x4x8xf32>
    %344 = vector.shape_cast %343 : vector<1x1x4x8xf32> to vector<4x8xf32>
    %c0_550 = arith.constant 0 : index
    %c0_551 = arith.constant 0 : index
    %345 = vector.load %arg8[%c0_550, %c0_551] : memref<32x8xf32, #tpu.memory_space<vmem>>, vector<4x8xf32>
    tpu.vector_store %arg8[%c0_550, %c0_551], %344 {strides = array<i32>} : memref<32x8xf32, #tpu.memory_space<vmem>>, vector<4x8xf32>,
    %c6_552 = arith.constant 6 : index
    %c1_553 = arith.constant 1 : index
    %c1_554 = arith.constant 1 : index
    %c0_555 = arith.constant 0 : index
    %346 = vector.load %arg7[%c6_552, %c1_553, %c1_554, %c0_555] : memref<8x5x5x8xf32, #tpu.memory_space<vmem>>, vector<1x1x4x8xf32>
    %347 = vector.shape_cast %346 : vector<1x1x4x8xf32> to vector<4x8xf32>
    %c4_556 = arith.constant 4 : index
    %c0_557 = arith.constant 0 : index
    %348 = vector.load %arg8[%c4_556, %c0_557] : memref<32x8xf32, #tpu.memory_space<vmem>>, vector<4x8xf32>
    tpu.vector_store %arg8[%c4_556, %c0_557], %347 {strides = array<i32>} : memref<32x8xf32, #tpu.memory_space<vmem>>, vector<4x8xf32>,
    %c6_558 = arith.constant 6 : index
    %c2_559 = arith.constant 2 : index
    %c1_560 = arith.constant 1 : index
    %c0_561 = arith.constant 0 : index
    %349 = vector.load %arg7[%c6_558, %c2_559, %c1_560, %c0_561] : memref<8x5x5x8xf32, #tpu.memory_space<vmem>>, vector<1x1x4x8xf32>
    %350 = vector.shape_cast %349 : vector<1x1x4x8xf32> to vector<4x8xf32>
    %c8_562 = arith.constant 8 : index
    %c0_563 = arith.constant 0 : index
    %351 = vector.load %arg8[%c8_562, %c0_563] : memref<32x8xf32, #tpu.memory_space<vmem>>, vector<4x8xf32>
    tpu.vector_store %arg8[%c8_562, %c0_563], %350 {strides = array<i32>} : memref<32x8xf32, #tpu.memory_space<vmem>>, vector<4x8xf32>,
    %c6_564 = arith.constant 6 : index
    %c3_565 = arith.constant 3 : index
    %c1_566 = arith.constant 1 : index
    %c0_567 = arith.constant 0 : index
    %352 = vector.load %arg7[%c6_564, %c3_565, %c1_566, %c0_567] : memref<8x5x5x8xf32, #tpu.memory_space<vmem>>, vector<1x1x4x8xf32>
    %353 = vector.shape_cast %352 : vector<1x1x4x8xf32> to vector<4x8xf32>
    %c12_568 = arith.constant 12 : index
    %c0_569 = arith.constant 0 : index
    %354 = vector.load %arg8[%c12_568, %c0_569] : memref<32x8xf32, #tpu.memory_space<vmem>>, vector<4x8xf32>
    tpu.vector_store %arg8[%c12_568, %c0_569], %353 {strides = array<i32>} : memref<32x8xf32, #tpu.memory_space<vmem>>, vector<4x8xf32>,
    %c7_570 = arith.constant 7 : index
    %c0_571 = arith.constant 0 : index
    %c1_572 = arith.constant 1 : index
    %c0_573 = arith.constant 0 : index
    %355 = vector.load %arg7[%c7_570, %c0_571, %c1_572, %c0_573] : memref<8x5x5x8xf32, #tpu.memory_space<vmem>>, vector<1x1x4x8xf32>
    %356 = vector.shape_cast %355 : vector<1x1x4x8xf32> to vector<4x8xf32>
    %c16_574 = arith.constant 16 : index
    %c0_575 = arith.constant 0 : index
    %357 = vector.load %arg8[%c16_574, %c0_575] : memref<32x8xf32, #tpu.memory_space<vmem>>, vector<4x8xf32>
    tpu.vector_store %arg8[%c16_574, %c0_575], %356 {strides = array<i32>} : memref<32x8xf32, #tpu.memory_space<vmem>>, vector<4x8xf32>,
    %c7_576 = arith.constant 7 : index
    %c1_577 = arith.constant 1 : index
    %c1_578 = arith.constant 1 : index
    %c0_579 = arith.constant 0 : index
    %358 = vector.load %arg7[%c7_576, %c1_577, %c1_578, %c0_579] : memref<8x5x5x8xf32, #tpu.memory_space<vmem>>, vector<1x1x4x8xf32>
    %359 = vector.shape_cast %358 : vector<1x1x4x8xf32> to vector<4x8xf32>
    %c20_580 = arith.constant 20 : index
    %c0_581 = arith.constant 0 : index
    %360 = vector.load %arg8[%c20_580, %c0_581] : memref<32x8xf32, #tpu.memory_space<vmem>>, vector<4x8xf32>
    tpu.vector_store %arg8[%c20_580, %c0_581], %359 {strides = array<i32>} : memref<32x8xf32, #tpu.memory_space<vmem>>, vector<4x8xf32>,
    %c7_582 = arith.constant 7 : index
    %c2_583 = arith.constant 2 : index
    %c1_584 = arith.constant 1 : index
    %c0_585 = arith.constant 0 : index
    %361 = vector.load %arg7[%c7_582, %c2_583, %c1_584, %c0_585] : memref<8x5x5x8xf32, #tpu.memory_space<vmem>>, vector<1x1x4x8xf32>
    %362 = vector.shape_cast %361 : vector<1x1x4x8xf32> to vector<4x8xf32>
    %c24_586 = arith.constant 24 : index
    %c0_587 = arith.constant 0 : index
    %363 = vector.load %arg8[%c24_586, %c0_587] : memref<32x8xf32, #tpu.memory_space<vmem>>, vector<4x8xf32>
    tpu.vector_store %arg8[%c24_586, %c0_587], %362 {strides = array<i32>} : memref<32x8xf32, #tpu.memory_space<vmem>>, vector<4x8xf32>,
    %c7_588 = arith.constant 7 : index
    %c3_589 = arith.constant 3 : index
    %c1_590 = arith.constant 1 : index
    %c0_591 = arith.constant 0 : index
    %364 = vector.load %arg7[%c7_588, %c3_589, %c1_590, %c0_591] : memref<8x5x5x8xf32, #tpu.memory_space<vmem>>, vector<1x1x4x8xf32>
    %365 = vector.shape_cast %364 : vector<1x1x4x8xf32> to vector<4x8xf32>
    %c28_592 = arith.constant 28 : index
    %c0_593 = arith.constant 0 : index
    %366 = vector.load %arg8[%c28_592, %c0_593] : memref<32x8xf32, #tpu.memory_space<vmem>>, vector<4x8xf32>
    tpu.vector_store %arg8[%c28_592, %c0_593], %365 {strides = array<i32>} : memref<32x8xf32, #tpu.memory_space<vmem>>, vector<4x8xf32>,
    %c0_594 = arith.constant 0 : index
    %c0_595 = arith.constant 0 : index
    %367 = vector.load %arg8[%c0_594, %c0_595] : memref<32x8xf32, #tpu.memory_space<vmem>>, vector<32x8xf32>
    %c7_596 = arith.constant 7 : index
    %c0_597 = arith.constant 0 : index
    %c0_598 = arith.constant 0 : index
    %368 = vector.load %arg3[%c7_596, %c0_597, %c0_598] : memref<16x8x16xf32, #tpu.memory_space<vmem>>, vector<1x8x16xf32>
    %369 = vector.shape_cast %368 : vector<1x8x16xf32> to vector<8x16xf32>
    %cst_599 = arith.constant dense<0.000000e+00> : vector<32x16xf32>
    %370 = tpu.matmul %367, %369, %cst_599 {dimension_numbers = #tpu.dot_dimension_numbers<[1], [0], [0], [1], [0, 0, 1, 1], [], []>} : vector<32x8xf32>, vector<8x16xf32>, vector<32x16xf32> -> vector<32x16xf32>
    %371 = arith.addf %342, %370 : vector<32x16xf32>
    %c0_600 = arith.constant 0 : index
    %c1_601 = arith.constant 1 : index
    %c0_602 = arith.constant 0 : index
    %c0_603 = arith.constant 0 : index
    %372 = vector.load %arg7[%c0_600, %c1_601, %c0_602, %c0_603] : memref<8x5x5x8xf32, #tpu.memory_space<vmem>>, vector<1x1x4x8xf32>
    %373 = vector.shape_cast %372 : vector<1x1x4x8xf32> to vector<4x8xf32>
    %c0_604 = arith.constant 0 : index
    %c0_605 = arith.constant 0 : index
    %374 = vector.load %arg8[%c0_604, %c0_605] : memref<32x8xf32, #tpu.memory_space<vmem>>, vector<4x8xf32>
    tpu.vector_store %arg8[%c0_604, %c0_605], %373 {strides = array<i32>} : memref<32x8xf32, #tpu.memory_space<vmem>>, vector<4x8xf32>,
    %c0_606 = arith.constant 0 : index
    %c2_607 = arith.constant 2 : index
    %c0_608 = arith.constant 0 : index
    %c0_609 = arith.constant 0 : index
    %375 = vector.load %arg7[%c0_606, %c2_607, %c0_608, %c0_609] : memref<8x5x5x8xf32, #tpu.memory_space<vmem>>, vector<1x1x4x8xf32>
    %376 = vector.shape_cast %375 : vector<1x1x4x8xf32> to vector<4x8xf32>
    %c4_610 = arith.constant 4 : index
    %c0_611 = arith.constant 0 : index
    %377 = vector.load %arg8[%c4_610, %c0_611] : memref<32x8xf32, #tpu.memory_space<vmem>>, vector<4x8xf32>
    tpu.vector_store %arg8[%c4_610, %c0_611], %376 {strides = array<i32>} : memref<32x8xf32, #tpu.memory_space<vmem>>, vector<4x8xf32>,
    %c0_612 = arith.constant 0 : index
    %c3_613 = arith.constant 3 : index
    %c0_614 = arith.constant 0 : index
    %c0_615 = arith.constant 0 : index
    %378 = vector.load %arg7[%c0_612, %c3_613, %c0_614, %c0_615] : memref<8x5x5x8xf32, #tpu.memory_space<vmem>>, vector<1x1x4x8xf32>
    %379 = vector.shape_cast %378 : vector<1x1x4x8xf32> to vector<4x8xf32>
    %c8_616 = arith.constant 8 : index
    %c0_617 = arith.constant 0 : index
    %380 = vector.load %arg8[%c8_616, %c0_617] : memref<32x8xf32, #tpu.memory_space<vmem>>, vector<4x8xf32>
    tpu.vector_store %arg8[%c8_616, %c0_617], %379 {strides = array<i32>} : memref<32x8xf32, #tpu.memory_space<vmem>>, vector<4x8xf32>,
    %c0_618 = arith.constant 0 : index
    %c4_619 = arith.constant 4 : index
    %c0_620 = arith.constant 0 : index
    %c0_621 = arith.constant 0 : index
    %381 = vector.load %arg7[%c0_618, %c4_619, %c0_620, %c0_621] : memref<8x5x5x8xf32, #tpu.memory_space<vmem>>, vector<1x1x4x8xf32>
    %382 = vector.shape_cast %381 : vector<1x1x4x8xf32> to vector<4x8xf32>
    %c12_622 = arith.constant 12 : index
    %c0_623 = arith.constant 0 : index
    %383 = vector.load %arg8[%c12_622, %c0_623] : memref<32x8xf32, #tpu.memory_space<vmem>>, vector<4x8xf32>
    tpu.vector_store %arg8[%c12_622, %c0_623], %382 {strides = array<i32>} : memref<32x8xf32, #tpu.memory_space<vmem>>, vector<4x8xf32>,
    %c1_624 = arith.constant 1 : index
    %c1_625 = arith.constant 1 : index
    %c0_626 = arith.constant 0 : index
    %c0_627 = arith.constant 0 : index
    %384 = vector.load %arg7[%c1_624, %c1_625, %c0_626, %c0_627] : memref<8x5x5x8xf32, #tpu.memory_space<vmem>>, vector<1x1x4x8xf32>
    %385 = vector.shape_cast %384 : vector<1x1x4x8xf32> to vector<4x8xf32>
    %c16_628 = arith.constant 16 : index
    %c0_629 = arith.constant 0 : index
    %386 = vector.load %arg8[%c16_628, %c0_629] : memref<32x8xf32, #tpu.memory_space<vmem>>, vector<4x8xf32>
    tpu.vector_store %arg8[%c16_628, %c0_629], %385 {strides = array<i32>} : memref<32x8xf32, #tpu.memory_space<vmem>>, vector<4x8xf32>,
    %c1_630 = arith.constant 1 : index
    %c2_631 = arith.constant 2 : index
    %c0_632 = arith.constant 0 : index
    %c0_633 = arith.constant 0 : index
    %387 = vector.load %arg7[%c1_630, %c2_631, %c0_632, %c0_633] : memref<8x5x5x8xf32, #tpu.memory_space<vmem>>, vector<1x1x4x8xf32>
    %388 = vector.shape_cast %387 : vector<1x1x4x8xf32> to vector<4x8xf32>
    %c20_634 = arith.constant 20 : index
    %c0_635 = arith.constant 0 : index
    %389 = vector.load %arg8[%c20_634, %c0_635] : memref<32x8xf32, #tpu.memory_space<vmem>>, vector<4x8xf32>
    tpu.vector_store %arg8[%c20_634, %c0_635], %388 {strides = array<i32>} : memref<32x8xf32, #tpu.memory_space<vmem>>, vector<4x8xf32>,
    %c1_636 = arith.constant 1 : index
    %c3_637 = arith.constant 3 : index
    %c0_638 = arith.constant 0 : index
    %c0_639 = arith.constant 0 : index
    %390 = vector.load %arg7[%c1_636, %c3_637, %c0_638, %c0_639] : memref<8x5x5x8xf32, #tpu.memory_space<vmem>>, vector<1x1x4x8xf32>
    %391 = vector.shape_cast %390 : vector<1x1x4x8xf32> to vector<4x8xf32>
    %c24_640 = arith.constant 24 : index
    %c0_641 = arith.constant 0 : index
    %392 = vector.load %arg8[%c24_640, %c0_641] : memref<32x8xf32, #tpu.memory_space<vmem>>, vector<4x8xf32>
    tpu.vector_store %arg8[%c24_640, %c0_641], %391 {strides = array<i32>} : memref<32x8xf32, #tpu.memory_space<vmem>>, vector<4x8xf32>,
    %c1_642 = arith.constant 1 : index
    %c4_643 = arith.constant 4 : index
    %c0_644 = arith.constant 0 : index
    %c0_645 = arith.constant 0 : index
    %393 = vector.load %arg7[%c1_642, %c4_643, %c0_644, %c0_645] : memref<8x5x5x8xf32, #tpu.memory_space<vmem>>, vector<1x1x4x8xf32>
    %394 = vector.shape_cast %393 : vector<1x1x4x8xf32> to vector<4x8xf32>
    %c28_646 = arith.constant 28 : index
    %c0_647 = arith.constant 0 : index
    %395 = vector.load %arg8[%c28_646, %c0_647] : memref<32x8xf32, #tpu.memory_space<vmem>>, vector<4x8xf32>
    tpu.vector_store %arg8[%c28_646, %c0_647], %394 {strides = array<i32>} : memref<32x8xf32, #tpu.memory_space<vmem>>, vector<4x8xf32>,
    %c0_648 = arith.constant 0 : index
    %c0_649 = arith.constant 0 : index
    %396 = vector.load %arg8[%c0_648, %c0_649] : memref<32x8xf32, #tpu.memory_space<vmem>>, vector<32x8xf32>
    %c8_650 = arith.constant 8 : index
    %c0_651 = arith.constant 0 : index
    %c0_652 = arith.constant 0 : index
    %397 = vector.load %arg3[%c8_650, %c0_651, %c0_652] : memref<16x8x16xf32, #tpu.memory_space<vmem>>, vector<1x8x16xf32>
    %398 = vector.shape_cast %397 : vector<1x8x16xf32> to vector<8x16xf32>
    %cst_653 = arith.constant dense<0.000000e+00> : vector<32x16xf32>
    %399 = tpu.matmul %396, %398, %cst_653 {dimension_numbers = #tpu.dot_dimension_numbers<[1], [0], [0], [1], [0, 0, 1, 1], [], []>} : vector<32x8xf32>, vector<8x16xf32>, vector<32x16xf32> -> vector<32x16xf32>
    %400 = arith.addf %371, %399 : vector<32x16xf32>
    %c2_654 = arith.constant 2 : index
    %c1_655 = arith.constant 1 : index
    %c0_656 = arith.constant 0 : index
    %c0_657 = arith.constant 0 : index
    %401 = vector.load %arg7[%c2_654, %c1_655, %c0_656, %c0_657] : memref<8x5x5x8xf32, #tpu.memory_space<vmem>>, vector<1x1x4x8xf32>
    %402 = vector.shape_cast %401 : vector<1x1x4x8xf32> to vector<4x8xf32>
    %c0_658 = arith.constant 0 : index
    %c0_659 = arith.constant 0 : index
    %403 = vector.load %arg8[%c0_658, %c0_659] : memref<32x8xf32, #tpu.memory_space<vmem>>, vector<4x8xf32>
    tpu.vector_store %arg8[%c0_658, %c0_659], %402 {strides = array<i32>} : memref<32x8xf32, #tpu.memory_space<vmem>>, vector<4x8xf32>,
    %c2_660 = arith.constant 2 : index
    %c2_661 = arith.constant 2 : index
    %c0_662 = arith.constant 0 : index
    %c0_663 = arith.constant 0 : index
    %404 = vector.load %arg7[%c2_660, %c2_661, %c0_662, %c0_663] : memref<8x5x5x8xf32, #tpu.memory_space<vmem>>, vector<1x1x4x8xf32>
    %405 = vector.shape_cast %404 : vector<1x1x4x8xf32> to vector<4x8xf32>
    %c4_664 = arith.constant 4 : index
    %c0_665 = arith.constant 0 : index
    %406 = vector.load %arg8[%c4_664, %c0_665] : memref<32x8xf32, #tpu.memory_space<vmem>>, vector<4x8xf32>
    tpu.vector_store %arg8[%c4_664, %c0_665], %405 {strides = array<i32>} : memref<32x8xf32, #tpu.memory_space<vmem>>, vector<4x8xf32>,
    %c2_666 = arith.constant 2 : index
    %c3_667 = arith.constant 3 : index
    %c0_668 = arith.constant 0 : index
    %c0_669 = arith.constant 0 : index
    %407 = vector.load %arg7[%c2_666, %c3_667, %c0_668, %c0_669] : memref<8x5x5x8xf32, #tpu.memory_space<vmem>>, vector<1x1x4x8xf32>
    %408 = vector.shape_cast %407 : vector<1x1x4x8xf32> to vector<4x8xf32>
    %c8_670 = arith.constant 8 : index
    %c0_671 = arith.constant 0 : index
    %409 = vector.load %arg8[%c8_670, %c0_671] : memref<32x8xf32, #tpu.memory_space<vmem>>, vector<4x8xf32>
    tpu.vector_store %arg8[%c8_670, %c0_671], %408 {strides = array<i32>} : memref<32x8xf32, #tpu.memory_space<vmem>>, vector<4x8xf32>,
    %c2_672 = arith.constant 2 : index
    %c4_673 = arith.constant 4 : index
    %c0_674 = arith.constant 0 : index
    %c0_675 = arith.constant 0 : index
    %410 = vector.load %arg7[%c2_672, %c4_673, %c0_674, %c0_675] : memref<8x5x5x8xf32, #tpu.memory_space<vmem>>, vector<1x1x4x8xf32>
    %411 = vector.shape_cast %410 : vector<1x1x4x8xf32> to vector<4x8xf32>
    %c12_676 = arith.constant 12 : index
    %c0_677 = arith.constant 0 : index
    %412 = vector.load %arg8[%c12_676, %c0_677] : memref<32x8xf32, #tpu.memory_space<vmem>>, vector<4x8xf32>
    tpu.vector_store %arg8[%c12_676, %c0_677], %411 {strides = array<i32>} : memref<32x8xf32, #tpu.memory_space<vmem>>, vector<4x8xf32>,
    %c3_678 = arith.constant 3 : index
    %c1_679 = arith.constant 1 : index
    %c0_680 = arith.constant 0 : index
    %c0_681 = arith.constant 0 : index
    %413 = vector.load %arg7[%c3_678, %c1_679, %c0_680, %c0_681] : memref<8x5x5x8xf32, #tpu.memory_space<vmem>>, vector<1x1x4x8xf32>
    %414 = vector.shape_cast %413 : vector<1x1x4x8xf32> to vector<4x8xf32>
    %c16_682 = arith.constant 16 : index
    %c0_683 = arith.constant 0 : index
    %415 = vector.load %arg8[%c16_682, %c0_683] : memref<32x8xf32, #tpu.memory_space<vmem>>, vector<4x8xf32>
    tpu.vector_store %arg8[%c16_682, %c0_683], %414 {strides = array<i32>} : memref<32x8xf32, #tpu.memory_space<vmem>>, vector<4x8xf32>,
    %c3_684 = arith.constant 3 : index
    %c2_685 = arith.constant 2 : index
    %c0_686 = arith.constant 0 : index
    %c0_687 = arith.constant 0 : index
    %416 = vector.load %arg7[%c3_684, %c2_685, %c0_686, %c0_687] : memref<8x5x5x8xf32, #tpu.memory_space<vmem>>, vector<1x1x4x8xf32>
    %417 = vector.shape_cast %416 : vector<1x1x4x8xf32> to vector<4x8xf32>
    %c20_688 = arith.constant 20 : index
    %c0_689 = arith.constant 0 : index
    %418 = vector.load %arg8[%c20_688, %c0_689] : memref<32x8xf32, #tpu.memory_space<vmem>>, vector<4x8xf32>
    tpu.vector_store %arg8[%c20_688, %c0_689], %417 {strides = array<i32>} : memref<32x8xf32, #tpu.memory_space<vmem>>, vector<4x8xf32>,
    %c3_690 = arith.constant 3 : index
    %c3_691 = arith.constant 3 : index
    %c0_692 = arith.constant 0 : index
    %c0_693 = arith.constant 0 : index
    %419 = vector.load %arg7[%c3_690, %c3_691, %c0_692, %c0_693] : memref<8x5x5x8xf32, #tpu.memory_space<vmem>>, vector<1x1x4x8xf32>
    %420 = vector.shape_cast %419 : vector<1x1x4x8xf32> to vector<4x8xf32>
    %c24_694 = arith.constant 24 : index
    %c0_695 = arith.constant 0 : index
    %421 = vector.load %arg8[%c24_694, %c0_695] : memref<32x8xf32, #tpu.memory_space<vmem>>, vector<4x8xf32>
    tpu.vector_store %arg8[%c24_694, %c0_695], %420 {strides = array<i32>} : memref<32x8xf32, #tpu.memory_space<vmem>>, vector<4x8xf32>,
    %c3_696 = arith.constant 3 : index
    %c4_697 = arith.constant 4 : index
    %c0_698 = arith.constant 0 : index
    %c0_699 = arith.constant 0 : index
    %422 = vector.load %arg7[%c3_696, %c4_697, %c0_698, %c0_699] : memref<8x5x5x8xf32, #tpu.memory_space<vmem>>, vector<1x1x4x8xf32>
    %423 = vector.shape_cast %422 : vector<1x1x4x8xf32> to vector<4x8xf32>
    %c28_700 = arith.constant 28 : index
    %c0_701 = arith.constant 0 : index
    %424 = vector.load %arg8[%c28_700, %c0_701] : memref<32x8xf32, #tpu.memory_space<vmem>>, vector<4x8xf32>
    tpu.vector_store %arg8[%c28_700, %c0_701], %423 {strides = array<i32>} : memref<32x8xf32, #tpu.memory_space<vmem>>, vector<4x8xf32>,
    %c0_702 = arith.constant 0 : index
    %c0_703 = arith.constant 0 : index
    %425 = vector.load %arg8[%c0_702, %c0_703] : memref<32x8xf32, #tpu.memory_space<vmem>>, vector<32x8xf32>
    %c9 = arith.constant 9 : index
    %c0_704 = arith.constant 0 : index
    %c0_705 = arith.constant 0 : index
    %426 = vector.load %arg3[%c9, %c0_704, %c0_705] : memref<16x8x16xf32, #tpu.memory_space<vmem>>, vector<1x8x16xf32>
    %427 = vector.shape_cast %426 : vector<1x8x16xf32> to vector<8x16xf32>
    %cst_706 = arith.constant dense<0.000000e+00> : vector<32x16xf32>
    %428 = tpu.matmul %425, %427, %cst_706 {dimension_numbers = #tpu.dot_dimension_numbers<[1], [0], [0], [1], [0, 0, 1, 1], [], []>} : vector<32x8xf32>, vector<8x16xf32>, vector<32x16xf32> -> vector<32x16xf32>
    %429 = arith.addf %400, %428 : vector<32x16xf32>
    %c0_707 = arith.constant 0 : index
    %c1_708 = arith.constant 1 : index
    %c1_709 = arith.constant 1 : index
    %c0_710 = arith.constant 0 : index
    %430 = vector.load %arg7[%c0_707, %c1_708, %c1_709, %c0_710] : memref<8x5x5x8xf32, #tpu.memory_space<vmem>>, vector<1x1x4x8xf32>
    %431 = vector.shape_cast %430 : vector<1x1x4x8xf32> to vector<4x8xf32>
    %c0_711 = arith.constant 0 : index
    %c0_712 = arith.constant 0 : index
    %432 = vector.load %arg8[%c0_711, %c0_712] : memref<32x8xf32, #tpu.memory_space<vmem>>, vector<4x8xf32>
    tpu.vector_store %arg8[%c0_711, %c0_712], %431 {strides = array<i32>} : memref<32x8xf32, #tpu.memory_space<vmem>>, vector<4x8xf32>,
    %c0_713 = arith.constant 0 : index
    %c2_714 = arith.constant 2 : index
    %c1_715 = arith.constant 1 : index
    %c0_716 = arith.constant 0 : index
    %433 = vector.load %arg7[%c0_713, %c2_714, %c1_715, %c0_716] : memref<8x5x5x8xf32, #tpu.memory_space<vmem>>, vector<1x1x4x8xf32>
    %434 = vector.shape_cast %433 : vector<1x1x4x8xf32> to vector<4x8xf32>
    %c4_717 = arith.constant 4 : index
    %c0_718 = arith.constant 0 : index
    %435 = vector.load %arg8[%c4_717, %c0_718] : memref<32x8xf32, #tpu.memory_space<vmem>>, vector<4x8xf32>
    tpu.vector_store %arg8[%c4_717, %c0_718], %434 {strides = array<i32>} : memref<32x8xf32, #tpu.memory_space<vmem>>, vector<4x8xf32>,
    %c0_719 = arith.constant 0 : index
    %c3_720 = arith.constant 3 : index
    %c1_721 = arith.constant 1 : index
    %c0_722 = arith.constant 0 : index
    %436 = vector.load %arg7[%c0_719, %c3_720, %c1_721, %c0_722] : memref<8x5x5x8xf32, #tpu.memory_space<vmem>>, vector<1x1x4x8xf32>
    %437 = vector.shape_cast %436 : vector<1x1x4x8xf32> to vector<4x8xf32>
    %c8_723 = arith.constant 8 : index
    %c0_724 = arith.constant 0 : index
    %438 = vector.load %arg8[%c8_723, %c0_724] : memref<32x8xf32, #tpu.memory_space<vmem>>, vector<4x8xf32>
    tpu.vector_store %arg8[%c8_723, %c0_724], %437 {strides = array<i32>} : memref<32x8xf32, #tpu.memory_space<vmem>>, vector<4x8xf32>,
    %c0_725 = arith.constant 0 : index
    %c4_726 = arith.constant 4 : index
    %c1_727 = arith.constant 1 : index
    %c0_728 = arith.constant 0 : index
    %439 = vector.load %arg7[%c0_725, %c4_726, %c1_727, %c0_728] : memref<8x5x5x8xf32, #tpu.memory_space<vmem>>, vector<1x1x4x8xf32>
    %440 = vector.shape_cast %439 : vector<1x1x4x8xf32> to vector<4x8xf32>
    %c12_729 = arith.constant 12 : index
    %c0_730 = arith.constant 0 : index
    %441 = vector.load %arg8[%c12_729, %c0_730] : memref<32x8xf32, #tpu.memory_space<vmem>>, vector<4x8xf32>
    tpu.vector_store %arg8[%c12_729, %c0_730], %440 {strides = array<i32>} : memref<32x8xf32, #tpu.memory_space<vmem>>, vector<4x8xf32>,
    %c1_731 = arith.constant 1 : index
    %c1_732 = arith.constant 1 : index
    %c1_733 = arith.constant 1 : index
    %c0_734 = arith.constant 0 : index
    %442 = vector.load %arg7[%c1_731, %c1_732, %c1_733, %c0_734] : memref<8x5x5x8xf32, #tpu.memory_space<vmem>>, vector<1x1x4x8xf32>
    %443 = vector.shape_cast %442 : vector<1x1x4x8xf32> to vector<4x8xf32>
    %c16_735 = arith.constant 16 : index
    %c0_736 = arith.constant 0 : index
    %444 = vector.load %arg8[%c16_735, %c0_736] : memref<32x8xf32, #tpu.memory_space<vmem>>, vector<4x8xf32>
    tpu.vector_store %arg8[%c16_735, %c0_736], %443 {strides = array<i32>} : memref<32x8xf32, #tpu.memory_space<vmem>>, vector<4x8xf32>,
    %c1_737 = arith.constant 1 : index
    %c2_738 = arith.constant 2 : index
    %c1_739 = arith.constant 1 : index
    %c0_740 = arith.constant 0 : index
    %445 = vector.load %arg7[%c1_737, %c2_738, %c1_739, %c0_740] : memref<8x5x5x8xf32, #tpu.memory_space<vmem>>, vector<1x1x4x8xf32>
    %446 = vector.shape_cast %445 : vector<1x1x4x8xf32> to vector<4x8xf32>
    %c20_741 = arith.constant 20 : index
    %c0_742 = arith.constant 0 : index
    %447 = vector.load %arg8[%c20_741, %c0_742] : memref<32x8xf32, #tpu.memory_space<vmem>>, vector<4x8xf32>
    tpu.vector_store %arg8[%c20_741, %c0_742], %446 {strides = array<i32>} : memref<32x8xf32, #tpu.memory_space<vmem>>, vector<4x8xf32>,
    %c1_743 = arith.constant 1 : index
    %c3_744 = arith.constant 3 : index
    %c1_745 = arith.constant 1 : index
    %c0_746 = arith.constant 0 : index
    %448 = vector.load %arg7[%c1_743, %c3_744, %c1_745, %c0_746] : memref<8x5x5x8xf32, #tpu.memory_space<vmem>>, vector<1x1x4x8xf32>
    %449 = vector.shape_cast %448 : vector<1x1x4x8xf32> to vector<4x8xf32>
    %c24_747 = arith.constant 24 : index
    %c0_748 = arith.constant 0 : index
    %450 = vector.load %arg8[%c24_747, %c0_748] : memref<32x8xf32, #tpu.memory_space<vmem>>, vector<4x8xf32>
    tpu.vector_store %arg8[%c24_747, %c0_748], %449 {strides = array<i32>} : memref<32x8xf32, #tpu.memory_space<vmem>>, vector<4x8xf32>,
    %c1_749 = arith.constant 1 : index
    %c4_750 = arith.constant 4 : index
    %c1_751 = arith.constant 1 : index
    %c0_752 = arith.constant 0 : index
    %451 = vector.load %arg7[%c1_749, %c4_750, %c1_751, %c0_752] : memref<8x5x5x8xf32, #tpu.memory_space<vmem>>, vector<1x1x4x8xf32>
    %452 = vector.shape_cast %451 : vector<1x1x4x8xf32> to vector<4x8xf32>
    %c28_753 = arith.constant 28 : index
    %c0_754 = arith.constant 0 : index
    %453 = vector.load %arg8[%c28_753, %c0_754] : memref<32x8xf32, #tpu.memory_space<vmem>>, vector<4x8xf32>
    tpu.vector_store %arg8[%c28_753, %c0_754], %452 {strides = array<i32>} : memref<32x8xf32, #tpu.memory_space<vmem>>, vector<4x8xf32>,
    %c0_755 = arith.constant 0 : index
    %c0_756 = arith.constant 0 : index
    %454 = vector.load %arg8[%c0_755, %c0_756] : memref<32x8xf32, #tpu.memory_space<vmem>>, vector<32x8xf32>
    %c10 = arith.constant 10 : index
    %c0_757 = arith.constant 0 : index
    %c0_758 = arith.constant 0 : index
    %455 = vector.load %arg3[%c10, %c0_757, %c0_758] : memref<16x8x16xf32, #tpu.memory_space<vmem>>, vector<1x8x16xf32>
    %456 = vector.shape_cast %455 : vector<1x8x16xf32> to vector<8x16xf32>
    %cst_759 = arith.constant dense<0.000000e+00> : vector<32x16xf32>
    %457 = tpu.matmul %454, %456, %cst_759 {dimension_numbers = #tpu.dot_dimension_numbers<[1], [0], [0], [1], [0, 0, 1, 1], [], []>} : vector<32x8xf32>, vector<8x16xf32>, vector<32x16xf32> -> vector<32x16xf32>
    %458 = arith.addf %429, %457 : vector<32x16xf32>
    %c2_760 = arith.constant 2 : index
    %c1_761 = arith.constant 1 : index
    %c1_762 = arith.constant 1 : index
    %c0_763 = arith.constant 0 : index
    %459 = vector.load %arg7[%c2_760, %c1_761, %c1_762, %c0_763] : memref<8x5x5x8xf32, #tpu.memory_space<vmem>>, vector<1x1x4x8xf32>
    %460 = vector.shape_cast %459 : vector<1x1x4x8xf32> to vector<4x8xf32>
    %c0_764 = arith.constant 0 : index
    %c0_765 = arith.constant 0 : index
    %461 = vector.load %arg8[%c0_764, %c0_765] : memref<32x8xf32, #tpu.memory_space<vmem>>, vector<4x8xf32>
    tpu.vector_store %arg8[%c0_764, %c0_765], %460 {strides = array<i32>} : memref<32x8xf32, #tpu.memory_space<vmem>>, vector<4x8xf32>,
    %c2_766 = arith.constant 2 : index
    %c2_767 = arith.constant 2 : index
    %c1_768 = arith.constant 1 : index
    %c0_769 = arith.constant 0 : index
    %462 = vector.load %arg7[%c2_766, %c2_767, %c1_768, %c0_769] : memref<8x5x5x8xf32, #tpu.memory_space<vmem>>, vector<1x1x4x8xf32>
    %463 = vector.shape_cast %462 : vector<1x1x4x8xf32> to vector<4x8xf32>
    %c4_770 = arith.constant 4 : index
    %c0_771 = arith.constant 0 : index
    %464 = vector.load %arg8[%c4_770, %c0_771] : memref<32x8xf32, #tpu.memory_space<vmem>>, vector<4x8xf32>
    tpu.vector_store %arg8[%c4_770, %c0_771], %463 {strides = array<i32>} : memref<32x8xf32, #tpu.memory_space<vmem>>, vector<4x8xf32>,
    %c2_772 = arith.constant 2 : index
    %c3_773 = arith.constant 3 : index
    %c1_774 = arith.constant 1 : index
    %c0_775 = arith.constant 0 : index
    %465 = vector.load %arg7[%c2_772, %c3_773, %c1_774, %c0_775] : memref<8x5x5x8xf32, #tpu.memory_space<vmem>>, vector<1x1x4x8xf32>
    %466 = vector.shape_cast %465 : vector<1x1x4x8xf32> to vector<4x8xf32>
    %c8_776 = arith.constant 8 : index
    %c0_777 = arith.constant 0 : index
    %467 = vector.load %arg8[%c8_776, %c0_777] : memref<32x8xf32, #tpu.memory_space<vmem>>, vector<4x8xf32>
    tpu.vector_store %arg8[%c8_776, %c0_777], %466 {strides = array<i32>} : memref<32x8xf32, #tpu.memory_space<vmem>>, vector<4x8xf32>,
    %c2_778 = arith.constant 2 : index
    %c4_779 = arith.constant 4 : index
    %c1_780 = arith.constant 1 : index
    %c0_781 = arith.constant 0 : index
    %468 = vector.load %arg7[%c2_778, %c4_779, %c1_780, %c0_781] : memref<8x5x5x8xf32, #tpu.memory_space<vmem>>, vector<1x1x4x8xf32>
    %469 = vector.shape_cast %468 : vector<1x1x4x8xf32> to vector<4x8xf32>
    %c12_782 = arith.constant 12 : index
    %c0_783 = arith.constant 0 : index
    %470 = vector.load %arg8[%c12_782, %c0_783] : memref<32x8xf32, #tpu.memory_space<vmem>>, vector<4x8xf32>
    tpu.vector_store %arg8[%c12_782, %c0_783], %469 {strides = array<i32>} : memref<32x8xf32, #tpu.memory_space<vmem>>, vector<4x8xf32>,
    %c3_784 = arith.constant 3 : index
    %c1_785 = arith.constant 1 : index
    %c1_786 = arith.constant 1 : index
    %c0_787 = arith.constant 0 : index
    %471 = vector.load %arg7[%c3_784, %c1_785, %c1_786, %c0_787] : memref<8x5x5x8xf32, #tpu.memory_space<vmem>>, vector<1x1x4x8xf32>
    %472 = vector.shape_cast %471 : vector<1x1x4x8xf32> to vector<4x8xf32>
    %c16_788 = arith.constant 16 : index
    %c0_789 = arith.constant 0 : index
    %473 = vector.load %arg8[%c16_788, %c0_789] : memref<32x8xf32, #tpu.memory_space<vmem>>, vector<4x8xf32>
    tpu.vector_store %arg8[%c16_788, %c0_789], %472 {strides = array<i32>} : memref<32x8xf32, #tpu.memory_space<vmem>>, vector<4x8xf32>,
    %c3_790 = arith.constant 3 : index
    %c2_791 = arith.constant 2 : index
    %c1_792 = arith.constant 1 : index
    %c0_793 = arith.constant 0 : index
    %474 = vector.load %arg7[%c3_790, %c2_791, %c1_792, %c0_793] : memref<8x5x5x8xf32, #tpu.memory_space<vmem>>, vector<1x1x4x8xf32>
    %475 = vector.shape_cast %474 : vector<1x1x4x8xf32> to vector<4x8xf32>
    %c20_794 = arith.constant 20 : index
    %c0_795 = arith.constant 0 : index
    %476 = vector.load %arg8[%c20_794, %c0_795] : memref<32x8xf32, #tpu.memory_space<vmem>>, vector<4x8xf32>
    tpu.vector_store %arg8[%c20_794, %c0_795], %475 {strides = array<i32>} : memref<32x8xf32, #tpu.memory_space<vmem>>, vector<4x8xf32>,
    %c3_796 = arith.constant 3 : index
    %c3_797 = arith.constant 3 : index
    %c1_798 = arith.constant 1 : index
    %c0_799 = arith.constant 0 : index
    %477 = vector.load %arg7[%c3_796, %c3_797, %c1_798, %c0_799] : memref<8x5x5x8xf32, #tpu.memory_space<vmem>>, vector<1x1x4x8xf32>
    %478 = vector.shape_cast %477 : vector<1x1x4x8xf32> to vector<4x8xf32>
    %c24_800 = arith.constant 24 : index
    %c0_801 = arith.constant 0 : index
    %479 = vector.load %arg8[%c24_800, %c0_801] : memref<32x8xf32, #tpu.memory_space<vmem>>, vector<4x8xf32>
    tpu.vector_store %arg8[%c24_800, %c0_801], %478 {strides = array<i32>} : memref<32x8xf32, #tpu.memory_space<vmem>>, vector<4x8xf32>,
    %c3_802 = arith.constant 3 : index
    %c4_803 = arith.constant 4 : index
    %c1_804 = arith.constant 1 : index
    %c0_805 = arith.constant 0 : index
    %480 = vector.load %arg7[%c3_802, %c4_803, %c1_804, %c0_805] : memref<8x5x5x8xf32, #tpu.memory_space<vmem>>, vector<1x1x4x8xf32>
    %481 = vector.shape_cast %480 : vector<1x1x4x8xf32> to vector<4x8xf32>
    %c28_806 = arith.constant 28 : index
    %c0_807 = arith.constant 0 : index
    %482 = vector.load %arg8[%c28_806, %c0_807] : memref<32x8xf32, #tpu.memory_space<vmem>>, vector<4x8xf32>
    tpu.vector_store %arg8[%c28_806, %c0_807], %481 {strides = array<i32>} : memref<32x8xf32, #tpu.memory_space<vmem>>, vector<4x8xf32>,
    %c0_808 = arith.constant 0 : index
    %c0_809 = arith.constant 0 : index
    %483 = vector.load %arg8[%c0_808, %c0_809] : memref<32x8xf32, #tpu.memory_space<vmem>>, vector<32x8xf32>
    %c11 = arith.constant 11 : index
    %c0_810 = arith.constant 0 : index
    %c0_811 = arith.constant 0 : index
    %484 = vector.load %arg3[%c11, %c0_810, %c0_811] : memref<16x8x16xf32, #tpu.memory_space<vmem>>, vector<1x8x16xf32>
    %485 = vector.shape_cast %484 : vector<1x8x16xf32> to vector<8x16xf32>
    %cst_812 = arith.constant dense<0.000000e+00> : vector<32x16xf32>
    %486 = tpu.matmul %483, %485, %cst_812 {dimension_numbers = #tpu.dot_dimension_numbers<[1], [0], [0], [1], [0, 0, 1, 1], [], []>} : vector<32x8xf32>, vector<8x16xf32>, vector<32x16xf32> -> vector<32x16xf32>
    %487 = arith.addf %458, %486 : vector<32x16xf32>
    %c4_813 = arith.constant 4 : index
    %c1_814 = arith.constant 1 : index
    %c0_815 = arith.constant 0 : index
    %c0_816 = arith.constant 0 : index
    %488 = vector.load %arg7[%c4_813, %c1_814, %c0_815, %c0_816] : memref<8x5x5x8xf32, #tpu.memory_space<vmem>>, vector<1x1x4x8xf32>
    %489 = vector.shape_cast %488 : vector<1x1x4x8xf32> to vector<4x8xf32>
    %c0_817 = arith.constant 0 : index
    %c0_818 = arith.constant 0 : index
    %490 = vector.load %arg8[%c0_817, %c0_818] : memref<32x8xf32, #tpu.memory_space<vmem>>, vector<4x8xf32>
    tpu.vector_store %arg8[%c0_817, %c0_818], %489 {strides = array<i32>} : memref<32x8xf32, #tpu.memory_space<vmem>>, vector<4x8xf32>,
    %c4_819 = arith.constant 4 : index
    %c2_820 = arith.constant 2 : index
    %c0_821 = arith.constant 0 : index
    %c0_822 = arith.constant 0 : index
    %491 = vector.load %arg7[%c4_819, %c2_820, %c0_821, %c0_822] : memref<8x5x5x8xf32, #tpu.memory_space<vmem>>, vector<1x1x4x8xf32>
    %492 = vector.shape_cast %491 : vector<1x1x4x8xf32> to vector<4x8xf32>
    %c4_823 = arith.constant 4 : index
    %c0_824 = arith.constant 0 : index
    %493 = vector.load %arg8[%c4_823, %c0_824] : memref<32x8xf32, #tpu.memory_space<vmem>>, vector<4x8xf32>
    tpu.vector_store %arg8[%c4_823, %c0_824], %492 {strides = array<i32>} : memref<32x8xf32, #tpu.memory_space<vmem>>, vector<4x8xf32>,
    %c4_825 = arith.constant 4 : index
    %c3_826 = arith.constant 3 : index
    %c0_827 = arith.constant 0 : index
    %c0_828 = arith.constant 0 : index
    %494 = vector.load %arg7[%c4_825, %c3_826, %c0_827, %c0_828] : memref<8x5x5x8xf32, #tpu.memory_space<vmem>>, vector<1x1x4x8xf32>
    %495 = vector.shape_cast %494 : vector<1x1x4x8xf32> to vector<4x8xf32>
    %c8_829 = arith.constant 8 : index
    %c0_830 = arith.constant 0 : index
    %496 = vector.load %arg8[%c8_829, %c0_830] : memref<32x8xf32, #tpu.memory_space<vmem>>, vector<4x8xf32>
    tpu.vector_store %arg8[%c8_829, %c0_830], %495 {strides = array<i32>} : memref<32x8xf32, #tpu.memory_space<vmem>>, vector<4x8xf32>,
    %c4_831 = arith.constant 4 : index
    %c4_832 = arith.constant 4 : index
    %c0_833 = arith.constant 0 : index
    %c0_834 = arith.constant 0 : index
    %497 = vector.load %arg7[%c4_831, %c4_832, %c0_833, %c0_834] : memref<8x5x5x8xf32, #tpu.memory_space<vmem>>, vector<1x1x4x8xf32>
    %498 = vector.shape_cast %497 : vector<1x1x4x8xf32> to vector<4x8xf32>
    %c12_835 = arith.constant 12 : index
    %c0_836 = arith.constant 0 : index
    %499 = vector.load %arg8[%c12_835, %c0_836] : memref<32x8xf32, #tpu.memory_space<vmem>>, vector<4x8xf32>
    tpu.vector_store %arg8[%c12_835, %c0_836], %498 {strides = array<i32>} : memref<32x8xf32, #tpu.memory_space<vmem>>, vector<4x8xf32>,
    %c5_837 = arith.constant 5 : index
    %c1_838 = arith.constant 1 : index
    %c0_839 = arith.constant 0 : index
    %c0_840 = arith.constant 0 : index
    %500 = vector.load %arg7[%c5_837, %c1_838, %c0_839, %c0_840] : memref<8x5x5x8xf32, #tpu.memory_space<vmem>>, vector<1x1x4x8xf32>
    %501 = vector.shape_cast %500 : vector<1x1x4x8xf32> to vector<4x8xf32>
    %c16_841 = arith.constant 16 : index
    %c0_842 = arith.constant 0 : index
    %502 = vector.load %arg8[%c16_841, %c0_842] : memref<32x8xf32, #tpu.memory_space<vmem>>, vector<4x8xf32>
    tpu.vector_store %arg8[%c16_841, %c0_842], %501 {strides = array<i32>} : memref<32x8xf32, #tpu.memory_space<vmem>>, vector<4x8xf32>,
    %c5_843 = arith.constant 5 : index
    %c2_844 = arith.constant 2 : index
    %c0_845 = arith.constant 0 : index
    %c0_846 = arith.constant 0 : index
    %503 = vector.load %arg7[%c5_843, %c2_844, %c0_845, %c0_846] : memref<8x5x5x8xf32, #tpu.memory_space<vmem>>, vector<1x1x4x8xf32>
    %504 = vector.shape_cast %503 : vector<1x1x4x8xf32> to vector<4x8xf32>
    %c20_847 = arith.constant 20 : index
    %c0_848 = arith.constant 0 : index
    %505 = vector.load %arg8[%c20_847, %c0_848] : memref<32x8xf32, #tpu.memory_space<vmem>>, vector<4x8xf32>
    tpu.vector_store %arg8[%c20_847, %c0_848], %504 {strides = array<i32>} : memref<32x8xf32, #tpu.memory_space<vmem>>, vector<4x8xf32>,
    %c5_849 = arith.constant 5 : index
    %c3_850 = arith.constant 3 : index
    %c0_851 = arith.constant 0 : index
    %c0_852 = arith.constant 0 : index
    %506 = vector.load %arg7[%c5_849, %c3_850, %c0_851, %c0_852] : memref<8x5x5x8xf32, #tpu.memory_space<vmem>>, vector<1x1x4x8xf32>
    %507 = vector.shape_cast %506 : vector<1x1x4x8xf32> to vector<4x8xf32>
    %c24_853 = arith.constant 24 : index
    %c0_854 = arith.constant 0 : index
    %508 = vector.load %arg8[%c24_853, %c0_854] : memref<32x8xf32, #tpu.memory_space<vmem>>, vector<4x8xf32>
    tpu.vector_store %arg8[%c24_853, %c0_854], %507 {strides = array<i32>} : memref<32x8xf32, #tpu.memory_space<vmem>>, vector<4x8xf32>,
    %c5_855 = arith.constant 5 : index
    %c4_856 = arith.constant 4 : index
    %c0_857 = arith.constant 0 : index
    %c0_858 = arith.constant 0 : index
    %509 = vector.load %arg7[%c5_855, %c4_856, %c0_857, %c0_858] : memref<8x5x5x8xf32, #tpu.memory_space<vmem>>, vector<1x1x4x8xf32>
    %510 = vector.shape_cast %509 : vector<1x1x4x8xf32> to vector<4x8xf32>
    %c28_859 = arith.constant 28 : index
    %c0_860 = arith.constant 0 : index
    %511 = vector.load %arg8[%c28_859, %c0_860] : memref<32x8xf32, #tpu.memory_space<vmem>>, vector<4x8xf32>
    tpu.vector_store %arg8[%c28_859, %c0_860], %510 {strides = array<i32>} : memref<32x8xf32, #tpu.memory_space<vmem>>, vector<4x8xf32>,
    %c0_861 = arith.constant 0 : index
    %c0_862 = arith.constant 0 : index
    %512 = vector.load %arg8[%c0_861, %c0_862] : memref<32x8xf32, #tpu.memory_space<vmem>>, vector<32x8xf32>
    %c12_863 = arith.constant 12 : index
    %c0_864 = arith.constant 0 : index
    %c0_865 = arith.constant 0 : index
    %513 = vector.load %arg3[%c12_863, %c0_864, %c0_865] : memref<16x8x16xf32, #tpu.memory_space<vmem>>, vector<1x8x16xf32>
    %514 = vector.shape_cast %513 : vector<1x8x16xf32> to vector<8x16xf32>
    %cst_866 = arith.constant dense<0.000000e+00> : vector<32x16xf32>
    %515 = tpu.matmul %512, %514, %cst_866 {dimension_numbers = #tpu.dot_dimension_numbers<[1], [0], [0], [1], [0, 0, 1, 1], [], []>} : vector<32x8xf32>, vector<8x16xf32>, vector<32x16xf32> -> vector<32x16xf32>
    %516 = arith.addf %487, %515 : vector<32x16xf32>
    %c6_867 = arith.constant 6 : index
    %c1_868 = arith.constant 1 : index
    %c0_869 = arith.constant 0 : index
    %c0_870 = arith.constant 0 : index
    %517 = vector.load %arg7[%c6_867, %c1_868, %c0_869, %c0_870] : memref<8x5x5x8xf32, #tpu.memory_space<vmem>>, vector<1x1x4x8xf32>
    %518 = vector.shape_cast %517 : vector<1x1x4x8xf32> to vector<4x8xf32>
    %c0_871 = arith.constant 0 : index
    %c0_872 = arith.constant 0 : index
    %519 = vector.load %arg8[%c0_871, %c0_872] : memref<32x8xf32, #tpu.memory_space<vmem>>, vector<4x8xf32>
    tpu.vector_store %arg8[%c0_871, %c0_872], %518 {strides = array<i32>} : memref<32x8xf32, #tpu.memory_space<vmem>>, vector<4x8xf32>,
    %c6_873 = arith.constant 6 : index
    %c2_874 = arith.constant 2 : index
    %c0_875 = arith.constant 0 : index
    %c0_876 = arith.constant 0 : index
    %520 = vector.load %arg7[%c6_873, %c2_874, %c0_875, %c0_876] : memref<8x5x5x8xf32, #tpu.memory_space<vmem>>, vector<1x1x4x8xf32>
    %521 = vector.shape_cast %520 : vector<1x1x4x8xf32> to vector<4x8xf32>
    %c4_877 = arith.constant 4 : index
    %c0_878 = arith.constant 0 : index
    %522 = vector.load %arg8[%c4_877, %c0_878] : memref<32x8xf32, #tpu.memory_space<vmem>>, vector<4x8xf32>
    tpu.vector_store %arg8[%c4_877, %c0_878], %521 {strides = array<i32>} : memref<32x8xf32, #tpu.memory_space<vmem>>, vector<4x8xf32>,
    %c6_879 = arith.constant 6 : index
    %c3_880 = arith.constant 3 : index
    %c0_881 = arith.constant 0 : index
    %c0_882 = arith.constant 0 : index
    %523 = vector.load %arg7[%c6_879, %c3_880, %c0_881, %c0_882] : memref<8x5x5x8xf32, #tpu.memory_space<vmem>>, vector<1x1x4x8xf32>
    %524 = vector.shape_cast %523 : vector<1x1x4x8xf32> to vector<4x8xf32>
    %c8_883 = arith.constant 8 : index
    %c0_884 = arith.constant 0 : index
    %525 = vector.load %arg8[%c8_883, %c0_884] : memref<32x8xf32, #tpu.memory_space<vmem>>, vector<4x8xf32>
    tpu.vector_store %arg8[%c8_883, %c0_884], %524 {strides = array<i32>} : memref<32x8xf32, #tpu.memory_space<vmem>>, vector<4x8xf32>,
    %c6_885 = arith.constant 6 : index
    %c4_886 = arith.constant 4 : index
    %c0_887 = arith.constant 0 : index
    %c0_888 = arith.constant 0 : index
    %526 = vector.load %arg7[%c6_885, %c4_886, %c0_887, %c0_888] : memref<8x5x5x8xf32, #tpu.memory_space<vmem>>, vector<1x1x4x8xf32>
    %527 = vector.shape_cast %526 : vector<1x1x4x8xf32> to vector<4x8xf32>
    %c12_889 = arith.constant 12 : index
    %c0_890 = arith.constant 0 : index
    %528 = vector.load %arg8[%c12_889, %c0_890] : memref<32x8xf32, #tpu.memory_space<vmem>>, vector<4x8xf32>
    tpu.vector_store %arg8[%c12_889, %c0_890], %527 {strides = array<i32>} : memref<32x8xf32, #tpu.memory_space<vmem>>, vector<4x8xf32>,
    %c7_891 = arith.constant 7 : index
    %c1_892 = arith.constant 1 : index
    %c0_893 = arith.constant 0 : index
    %c0_894 = arith.constant 0 : index
    %529 = vector.load %arg7[%c7_891, %c1_892, %c0_893, %c0_894] : memref<8x5x5x8xf32, #tpu.memory_space<vmem>>, vector<1x1x4x8xf32>
    %530 = vector.shape_cast %529 : vector<1x1x4x8xf32> to vector<4x8xf32>
    %c16_895 = arith.constant 16 : index
    %c0_896 = arith.constant 0 : index
    %531 = vector.load %arg8[%c16_895, %c0_896] : memref<32x8xf32, #tpu.memory_space<vmem>>, vector<4x8xf32>
    tpu.vector_store %arg8[%c16_895, %c0_896], %530 {strides = array<i32>} : memref<32x8xf32, #tpu.memory_space<vmem>>, vector<4x8xf32>,
    %c7_897 = arith.constant 7 : index
    %c2_898 = arith.constant 2 : index
    %c0_899 = arith.constant 0 : index
    %c0_900 = arith.constant 0 : index
    %532 = vector.load %arg7[%c7_897, %c2_898, %c0_899, %c0_900] : memref<8x5x5x8xf32, #tpu.memory_space<vmem>>, vector<1x1x4x8xf32>
    %533 = vector.shape_cast %532 : vector<1x1x4x8xf32> to vector<4x8xf32>
    %c20_901 = arith.constant 20 : index
    %c0_902 = arith.constant 0 : index
    %534 = vector.load %arg8[%c20_901, %c0_902] : memref<32x8xf32, #tpu.memory_space<vmem>>, vector<4x8xf32>
    tpu.vector_store %arg8[%c20_901, %c0_902], %533 {strides = array<i32>} : memref<32x8xf32, #tpu.memory_space<vmem>>, vector<4x8xf32>,
    %c7_903 = arith.constant 7 : index
    %c3_904 = arith.constant 3 : index
    %c0_905 = arith.constant 0 : index
    %c0_906 = arith.constant 0 : index
    %535 = vector.load %arg7[%c7_903, %c3_904, %c0_905, %c0_906] : memref<8x5x5x8xf32, #tpu.memory_space<vmem>>, vector<1x1x4x8xf32>
    %536 = vector.shape_cast %535 : vector<1x1x4x8xf32> to vector<4x8xf32>
    %c24_907 = arith.constant 24 : index
    %c0_908 = arith.constant 0 : index
    %537 = vector.load %arg8[%c24_907, %c0_908] : memref<32x8xf32, #tpu.memory_space<vmem>>, vector<4x8xf32>
    tpu.vector_store %arg8[%c24_907, %c0_908], %536 {strides = array<i32>} : memref<32x8xf32, #tpu.memory_space<vmem>>, vector<4x8xf32>,
    %c7_909 = arith.constant 7 : index
    %c4_910 = arith.constant 4 : index
    %c0_911 = arith.constant 0 : index
    %c0_912 = arith.constant 0 : index
    %538 = vector.load %arg7[%c7_909, %c4_910, %c0_911, %c0_912] : memref<8x5x5x8xf32, #tpu.memory_space<vmem>>, vector<1x1x4x8xf32>
    %539 = vector.shape_cast %538 : vector<1x1x4x8xf32> to vector<4x8xf32>
    %c28_913 = arith.constant 28 : index
    %c0_914 = arith.constant 0 : index
    %540 = vector.load %arg8[%c28_913, %c0_914] : memref<32x8xf32, #tpu.memory_space<vmem>>, vector<4x8xf32>
    tpu.vector_store %arg8[%c28_913, %c0_914], %539 {strides = array<i32>} : memref<32x8xf32, #tpu.memory_space<vmem>>, vector<4x8xf32>,
    %c0_915 = arith.constant 0 : index
    %c0_916 = arith.constant 0 : index
    %541 = vector.load %arg8[%c0_915, %c0_916] : memref<32x8xf32, #tpu.memory_space<vmem>>, vector<32x8xf32>
    %c13 = arith.constant 13 : index
    %c0_917 = arith.constant 0 : index
    %c0_918 = arith.constant 0 : index
    %542 = vector.load %arg3[%c13, %c0_917, %c0_918] : memref<16x8x16xf32, #tpu.memory_space<vmem>>, vector<1x8x16xf32>
    %543 = vector.shape_cast %542 : vector<1x8x16xf32> to vector<8x16xf32>
    %cst_919 = arith.constant dense<0.000000e+00> : vector<32x16xf32>
    %544 = tpu.matmul %541, %543, %cst_919 {dimension_numbers = #tpu.dot_dimension_numbers<[1], [0], [0], [1], [0, 0, 1, 1], [], []>} : vector<32x8xf32>, vector<8x16xf32>, vector<32x16xf32> -> vector<32x16xf32>
    %545 = arith.addf %516, %544 : vector<32x16xf32>
    %c4_920 = arith.constant 4 : index
    %c1_921 = arith.constant 1 : index
    %c1_922 = arith.constant 1 : index
    %c0_923 = arith.constant 0 : index
    %546 = vector.load %arg7[%c4_920, %c1_921, %c1_922, %c0_923] : memref<8x5x5x8xf32, #tpu.memory_space<vmem>>, vector<1x1x4x8xf32>
    %547 = vector.shape_cast %546 : vector<1x1x4x8xf32> to vector<4x8xf32>
    %c0_924 = arith.constant 0 : index
    %c0_925 = arith.constant 0 : index
    %548 = vector.load %arg8[%c0_924, %c0_925] : memref<32x8xf32, #tpu.memory_space<vmem>>, vector<4x8xf32>
    tpu.vector_store %arg8[%c0_924, %c0_925], %547 {strides = array<i32>} : memref<32x8xf32, #tpu.memory_space<vmem>>, vector<4x8xf32>,
    %c4_926 = arith.constant 4 : index
    %c2_927 = arith.constant 2 : index
    %c1_928 = arith.constant 1 : index
    %c0_929 = arith.constant 0 : index
    %549 = vector.load %arg7[%c4_926, %c2_927, %c1_928, %c0_929] : memref<8x5x5x8xf32, #tpu.memory_space<vmem>>, vector<1x1x4x8xf32>
    %550 = vector.shape_cast %549 : vector<1x1x4x8xf32> to vector<4x8xf32>
    %c4_930 = arith.constant 4 : index
    %c0_931 = arith.constant 0 : index
    %551 = vector.load %arg8[%c4_930, %c0_931] : memref<32x8xf32, #tpu.memory_space<vmem>>, vector<4x8xf32>
    tpu.vector_store %arg8[%c4_930, %c0_931], %550 {strides = array<i32>} : memref<32x8xf32, #tpu.memory_space<vmem>>, vector<4x8xf32>,
    %c4_932 = arith.constant 4 : index
    %c3_933 = arith.constant 3 : index
    %c1_934 = arith.constant 1 : index
    %c0_935 = arith.constant 0 : index
    %552 = vector.load %arg7[%c4_932, %c3_933, %c1_934, %c0_935] : memref<8x5x5x8xf32, #tpu.memory_space<vmem>>, vector<1x1x4x8xf32>
    %553 = vector.shape_cast %552 : vector<1x1x4x8xf32> to vector<4x8xf32>
    %c8_936 = arith.constant 8 : index
    %c0_937 = arith.constant 0 : index
    %554 = vector.load %arg8[%c8_936, %c0_937] : memref<32x8xf32, #tpu.memory_space<vmem>>, vector<4x8xf32>
    tpu.vector_store %arg8[%c8_936, %c0_937], %553 {strides = array<i32>} : memref<32x8xf32, #tpu.memory_space<vmem>>, vector<4x8xf32>,
    %c4_938 = arith.constant 4 : index
    %c4_939 = arith.constant 4 : index
    %c1_940 = arith.constant 1 : index
    %c0_941 = arith.constant 0 : index
    %555 = vector.load %arg7[%c4_938, %c4_939, %c1_940, %c0_941] : memref<8x5x5x8xf32, #tpu.memory_space<vmem>>, vector<1x1x4x8xf32>
    %556 = vector.shape_cast %555 : vector<1x1x4x8xf32> to vector<4x8xf32>
    %c12_942 = arith.constant 12 : index
    %c0_943 = arith.constant 0 : index
    %557 = vector.load %arg8[%c12_942, %c0_943] : memref<32x8xf32, #tpu.memory_space<vmem>>, vector<4x8xf32>
    tpu.vector_store %arg8[%c12_942, %c0_943], %556 {strides = array<i32>} : memref<32x8xf32, #tpu.memory_space<vmem>>, vector<4x8xf32>,
    %c5_944 = arith.constant 5 : index
    %c1_945 = arith.constant 1 : index
    %c1_946 = arith.constant 1 : index
    %c0_947 = arith.constant 0 : index
    %558 = vector.load %arg7[%c5_944, %c1_945, %c1_946, %c0_947] : memref<8x5x5x8xf32, #tpu.memory_space<vmem>>, vector<1x1x4x8xf32>
    %559 = vector.shape_cast %558 : vector<1x1x4x8xf32> to vector<4x8xf32>
    %c16_948 = arith.constant 16 : index
    %c0_949 = arith.constant 0 : index
    %560 = vector.load %arg8[%c16_948, %c0_949] : memref<32x8xf32, #tpu.memory_space<vmem>>, vector<4x8xf32>
    tpu.vector_store %arg8[%c16_948, %c0_949], %559 {strides = array<i32>} : memref<32x8xf32, #tpu.memory_space<vmem>>, vector<4x8xf32>,
    %c5_950 = arith.constant 5 : index
    %c2_951 = arith.constant 2 : index
    %c1_952 = arith.constant 1 : index
    %c0_953 = arith.constant 0 : index
    %561 = vector.load %arg7[%c5_950, %c2_951, %c1_952, %c0_953] : memref<8x5x5x8xf32, #tpu.memory_space<vmem>>, vector<1x1x4x8xf32>
    %562 = vector.shape_cast %561 : vector<1x1x4x8xf32> to vector<4x8xf32>
    %c20_954 = arith.constant 20 : index
    %c0_955 = arith.constant 0 : index
    %563 = vector.load %arg8[%c20_954, %c0_955] : memref<32x8xf32, #tpu.memory_space<vmem>>, vector<4x8xf32>
    tpu.vector_store %arg8[%c20_954, %c0_955], %562 {strides = array<i32>} : memref<32x8xf32, #tpu.memory_space<vmem>>, vector<4x8xf32>,
    %c5_956 = arith.constant 5 : index
    %c3_957 = arith.constant 3 : index
    %c1_958 = arith.constant 1 : index
    %c0_959 = arith.constant 0 : index
    %564 = vector.load %arg7[%c5_956, %c3_957, %c1_958, %c0_959] : memref<8x5x5x8xf32, #tpu.memory_space<vmem>>, vector<1x1x4x8xf32>
    %565 = vector.shape_cast %564 : vector<1x1x4x8xf32> to vector<4x8xf32>
    %c24_960 = arith.constant 24 : index
    %c0_961 = arith.constant 0 : index
    %566 = vector.load %arg8[%c24_960, %c0_961] : memref<32x8xf32, #tpu.memory_space<vmem>>, vector<4x8xf32>
    tpu.vector_store %arg8[%c24_960, %c0_961], %565 {strides = array<i32>} : memref<32x8xf32, #tpu.memory_space<vmem>>, vector<4x8xf32>,
    %c5_962 = arith.constant 5 : index
    %c4_963 = arith.constant 4 : index
    %c1_964 = arith.constant 1 : index
    %c0_965 = arith.constant 0 : index
    %567 = vector.load %arg7[%c5_962, %c4_963, %c1_964, %c0_965] : memref<8x5x5x8xf32, #tpu.memory_space<vmem>>, vector<1x1x4x8xf32>
    %568 = vector.shape_cast %567 : vector<1x1x4x8xf32> to vector<4x8xf32>
    %c28_966 = arith.constant 28 : index
    %c0_967 = arith.constant 0 : index
    %569 = vector.load %arg8[%c28_966, %c0_967] : memref<32x8xf32, #tpu.memory_space<vmem>>, vector<4x8xf32>
    tpu.vector_store %arg8[%c28_966, %c0_967], %568 {strides = array<i32>} : memref<32x8xf32, #tpu.memory_space<vmem>>, vector<4x8xf32>,
    %c0_968 = arith.constant 0 : index
    %c0_969 = arith.constant 0 : index
    %570 = vector.load %arg8[%c0_968, %c0_969] : memref<32x8xf32, #tpu.memory_space<vmem>>, vector<32x8xf32>
    %c14 = arith.constant 14 : index
    %c0_970 = arith.constant 0 : index
    %c0_971 = arith.constant 0 : index
    %571 = vector.load %arg3[%c14, %c0_970, %c0_971] : memref<16x8x16xf32, #tpu.memory_space<vmem>>, vector<1x8x16xf32>
    %572 = vector.shape_cast %571 : vector<1x8x16xf32> to vector<8x16xf32>
    %cst_972 = arith.constant dense<0.000000e+00> : vector<32x16xf32>
    %573 = tpu.matmul %570, %572, %cst_972 {dimension_numbers = #tpu.dot_dimension_numbers<[1], [0], [0], [1], [0, 0, 1, 1], [], []>} : vector<32x8xf32>, vector<8x16xf32>, vector<32x16xf32> -> vector<32x16xf32>
    %574 = arith.addf %545, %573 : vector<32x16xf32>
    %c6_973 = arith.constant 6 : index
    %c1_974 = arith.constant 1 : index
    %c1_975 = arith.constant 1 : index
    %c0_976 = arith.constant 0 : index
    %575 = vector.load %arg7[%c6_973, %c1_974, %c1_975, %c0_976] : memref<8x5x5x8xf32, #tpu.memory_space<vmem>>, vector<1x1x4x8xf32>
    %576 = vector.shape_cast %575 : vector<1x1x4x8xf32> to vector<4x8xf32>
    %c0_977 = arith.constant 0 : index
    %c0_978 = arith.constant 0 : index
    %577 = vector.load %arg8[%c0_977, %c0_978] : memref<32x8xf32, #tpu.memory_space<vmem>>, vector<4x8xf32>
    tpu.vector_store %arg8[%c0_977, %c0_978], %576 {strides = array<i32>} : memref<32x8xf32, #tpu.memory_space<vmem>>, vector<4x8xf32>,
    %c6_979 = arith.constant 6 : index
    %c2_980 = arith.constant 2 : index
    %c1_981 = arith.constant 1 : index
    %c0_982 = arith.constant 0 : index
    %578 = vector.load %arg7[%c6_979, %c2_980, %c1_981, %c0_982] : memref<8x5x5x8xf32, #tpu.memory_space<vmem>>, vector<1x1x4x8xf32>
    %579 = vector.shape_cast %578 : vector<1x1x4x8xf32> to vector<4x8xf32>
    %c4_983 = arith.constant 4 : index
    %c0_984 = arith.constant 0 : index
    %580 = vector.load %arg8[%c4_983, %c0_984] : memref<32x8xf32, #tpu.memory_space<vmem>>, vector<4x8xf32>
    tpu.vector_store %arg8[%c4_983, %c0_984], %579 {strides = array<i32>} : memref<32x8xf32, #tpu.memory_space<vmem>>, vector<4x8xf32>,
    %c6_985 = arith.constant 6 : index
    %c3_986 = arith.constant 3 : index
    %c1_987 = arith.constant 1 : index
    %c0_988 = arith.constant 0 : index
    %581 = vector.load %arg7[%c6_985, %c3_986, %c1_987, %c0_988] : memref<8x5x5x8xf32, #tpu.memory_space<vmem>>, vector<1x1x4x8xf32>
    %582 = vector.shape_cast %581 : vector<1x1x4x8xf32> to vector<4x8xf32>
    %c8_989 = arith.constant 8 : index
    %c0_990 = arith.constant 0 : index
    %583 = vector.load %arg8[%c8_989, %c0_990] : memref<32x8xf32, #tpu.memory_space<vmem>>, vector<4x8xf32>
    tpu.vector_store %arg8[%c8_989, %c0_990], %582 {strides = array<i32>} : memref<32x8xf32, #tpu.memory_space<vmem>>, vector<4x8xf32>,
    %c6_991 = arith.constant 6 : index
    %c4_992 = arith.constant 4 : index
    %c1_993 = arith.constant 1 : index
    %c0_994 = arith.constant 0 : index
    %584 = vector.load %arg7[%c6_991, %c4_992, %c1_993, %c0_994] : memref<8x5x5x8xf32, #tpu.memory_space<vmem>>, vector<1x1x4x8xf32>
    %585 = vector.shape_cast %584 : vector<1x1x4x8xf32> to vector<4x8xf32>
    %c12_995 = arith.constant 12 : index
    %c0_996 = arith.constant 0 : index
    %586 = vector.load %arg8[%c12_995, %c0_996] : memref<32x8xf32, #tpu.memory_space<vmem>>, vector<4x8xf32>
    tpu.vector_store %arg8[%c12_995, %c0_996], %585 {strides = array<i32>} : memref<32x8xf32, #tpu.memory_space<vmem>>, vector<4x8xf32>,
    %c7_997 = arith.constant 7 : index
    %c1_998 = arith.constant 1 : index
    %c1_999 = arith.constant 1 : index
    %c0_1000 = arith.constant 0 : index
    %587 = vector.load %arg7[%c7_997, %c1_998, %c1_999, %c0_1000] : memref<8x5x5x8xf32, #tpu.memory_space<vmem>>, vector<1x1x4x8xf32>
    %588 = vector.shape_cast %587 : vector<1x1x4x8xf32> to vector<4x8xf32>
    %c16_1001 = arith.constant 16 : index
    %c0_1002 = arith.constant 0 : index
    %589 = vector.load %arg8[%c16_1001, %c0_1002] : memref<32x8xf32, #tpu.memory_space<vmem>>, vector<4x8xf32>
    tpu.vector_store %arg8[%c16_1001, %c0_1002], %588 {strides = array<i32>} : memref<32x8xf32, #tpu.memory_space<vmem>>, vector<4x8xf32>,
    %c7_1003 = arith.constant 7 : index
    %c2_1004 = arith.constant 2 : index
    %c1_1005 = arith.constant 1 : index
    %c0_1006 = arith.constant 0 : index
    %590 = vector.load %arg7[%c7_1003, %c2_1004, %c1_1005, %c0_1006] : memref<8x5x5x8xf32, #tpu.memory_space<vmem>>, vector<1x1x4x8xf32>
    %591 = vector.shape_cast %590 : vector<1x1x4x8xf32> to vector<4x8xf32>
    %c20_1007 = arith.constant 20 : index
    %c0_1008 = arith.constant 0 : index
    %592 = vector.load %arg8[%c20_1007, %c0_1008] : memref<32x8xf32, #tpu.memory_space<vmem>>, vector<4x8xf32>
    tpu.vector_store %arg8[%c20_1007, %c0_1008], %591 {strides = array<i32>} : memref<32x8xf32, #tpu.memory_space<vmem>>, vector<4x8xf32>,
    %c7_1009 = arith.constant 7 : index
    %c3_1010 = arith.constant 3 : index
    %c1_1011 = arith.constant 1 : index
    %c0_1012 = arith.constant 0 : index
    %593 = vector.load %arg7[%c7_1009, %c3_1010, %c1_1011, %c0_1012] : memref<8x5x5x8xf32, #tpu.memory_space<vmem>>, vector<1x1x4x8xf32>
    %594 = vector.shape_cast %593 : vector<1x1x4x8xf32> to vector<4x8xf32>
    %c24_1013 = arith.constant 24 : index
    %c0_1014 = arith.constant 0 : index
    %595 = vector.load %arg8[%c24_1013, %c0_1014] : memref<32x8xf32, #tpu.memory_space<vmem>>, vector<4x8xf32>
    tpu.vector_store %arg8[%c24_1013, %c0_1014], %594 {strides = array<i32>} : memref<32x8xf32, #tpu.memory_space<vmem>>, vector<4x8xf32>,
    %c7_1015 = arith.constant 7 : index
    %c4_1016 = arith.constant 4 : index
    %c1_1017 = arith.constant 1 : index
    %c0_1018 = arith.constant 0 : index
    %596 = vector.load %arg7[%c7_1015, %c4_1016, %c1_1017, %c0_1018] : memref<8x5x5x8xf32, #tpu.memory_space<vmem>>, vector<1x1x4x8xf32>
    %597 = vector.shape_cast %596 : vector<1x1x4x8xf32> to vector<4x8xf32>
    %c28_1019 = arith.constant 28 : index
    %c0_1020 = arith.constant 0 : index
    %598 = vector.load %arg8[%c28_1019, %c0_1020] : memref<32x8xf32, #tpu.memory_space<vmem>>, vector<4x8xf32>
    tpu.vector_store %arg8[%c28_1019, %c0_1020], %597 {strides = array<i32>} : memref<32x8xf32, #tpu.memory_space<vmem>>, vector<4x8xf32>,
    %c0_1021 = arith.constant 0 : index
    %c0_1022 = arith.constant 0 : index
    %599 = vector.load %arg8[%c0_1021, %c0_1022] : memref<32x8xf32, #tpu.memory_space<vmem>>, vector<32x8xf32>
    %c15 = arith.constant 15 : index
    %c0_1023 = arith.constant 0 : index
    %c0_1024 = arith.constant 0 : index
    %600 = vector.load %arg3[%c15, %c0_1023, %c0_1024] : memref<16x8x16xf32, #tpu.memory_space<vmem>>, vector<1x8x16xf32>
    %601 = vector.shape_cast %600 : vector<1x8x16xf32> to vector<8x16xf32>
    %cst_1025 = arith.constant dense<0.000000e+00> : vector<32x16xf32>
    %602 = tpu.matmul %599, %601, %cst_1025 {dimension_numbers = #tpu.dot_dimension_numbers<[1], [0], [0], [1], [0, 0, 1, 1], [], []>} : vector<32x8xf32>, vector<8x16xf32>, vector<32x16xf32> -> vector<32x16xf32>
    %603 = arith.addf %574, %602 : vector<32x16xf32>
    %cst_1026 = arith.constant 0.000000e+00 : f32
    %604 = vector.broadcast %cst_1026 : f32 to vector<32x16xf32>
    %605 = arith.cmpf ogt, %603, %604 : vector<32x16xf32>
    %cst_1027 = arith.constant 2.000000e-01 : f32
    %606 = vector.broadcast %cst_1027 : f32 to vector<32x16xf32>
    %607 = arith.mulf %606, %603 : vector<32x16xf32>
    %608 = arith.select %605, %603, %607 : vector<32x16xi1>, vector<32x16xf32>
    %c0_1028 = arith.constant 0 : index
    %c0_1029 = arith.constant 0 : index
    %609 = vector.load %arg4[%c0_1028, %c0_1029] : memref<32x16xf32, #tpu.memory_space<vmem>>, vector<32x16xf32>
    %610 = arith.mulf %608, %609 : vector<32x16xf32>
    %cst_1030 = arith.constant dense<0.000000e+00> : vector<32xf32>
    %611 = vector.multi_reduction <add>, %610, %cst_1030 [1] : vector<32x16xf32> to vector<32xf32>
    %612 = vector.shape_cast %611 : vector<32xf32> to vector<32x1xf32>
    %cst_1031 = arith.constant dense<0.000000e+00> : vector<1xf32>
    %613 = vector.multi_reduction <add>, %612, %cst_1031 [0] : vector<32x1xf32> to vector<1xf32>
    %614 = vector.shape_cast %613 : vector<1xf32> to vector<1x1xf32>
    %cst_1032 = arith.constant 5.000000e-01 : f32
    %615 = vector.broadcast %cst_1032 : f32 to vector<1x1xf32>
    %616 = arith.mulf %614, %615 : vector<1x1xf32>
    %617 = vector.shape_cast %616 : vector<1x1xf32> to vector<1x1xf32>
    %618 = vector.broadcast %617 : vector<1x1xf32> to vector<1x128xf32>
    %c0_1033 = arith.constant 0 : index
    %c0_1034 = arith.constant 0 : index
    %619 = vector.load %arg5[%c0_1033, %c0_1034] : memref<1x128xf32, #tpu.memory_space<vmem>>, vector<1x128xf32>
    tpu.vector_store %arg5[%c0_1033, %c0_1034], %618 {strides = array<i32>} : memref<1x128xf32, #tpu.memory_space<vmem>>, vector<1x128xf32>,
    return
  }
  func.func @transform_0(%arg0: i32) -> (i32, i32) {
    %c0_i32 = arith.constant 0 : i32
    %c0_i32_0 = arith.constant 0 : i32
    %c0_i32_1 = arith.constant 0 : i32
    return %c0_i32, %c0_i32_0 : i32, i32
  }
  func.func @transform_1(%arg0: i32) -> (i32, i32) {
    %c0_i32 = arith.constant 0 : i32
    %c0_i32_0 = arith.constant 0 : i32
    %c0_i32_1 = arith.constant 0 : i32
    return %c0_i32, %c0_i32_0 : i32, i32
  }
  func.func @transform_2(%arg0: i32) -> (i32, i32, i32) {
    %c0_i32 = arith.constant 0 : i32
    %c0_i32_0 = arith.constant 0 : i32
    %c0_i32_1 = arith.constant 0 : i32
    %c0_i32_2 = arith.constant 0 : i32
    return %c0_i32, %c0_i32_0, %c0_i32_1 : i32, i32, i32
  }
  func.func @transform_3(%arg0: i32) -> (i32, i32) {
    %c0_i32 = arith.constant 0 : i32
    %c0_i32_0 = arith.constant 0 : i32
    %c0_i32_1 = arith.constant 0 : i32
    return %c0_i32, %c0_i32_0 : i32, i32
  }
  func.func @transform_4(%arg0: i32) -> (i32, i32) {
    %c0_i32 = arith.constant 0 : i32
    %c0_i32_0 = arith.constant 0 : i32
    %c0_i32_1 = arith.constant 0 : i32
    return %c0_i32, %c0_i32_0 : i32, i32
  }
}

</mosaic_0001>

<bundles_post_ra>
// kernel: dcgan_d_nobn_forward.1
= control target key start
LH: loop header
LB: loop body
LE: loop exit
PB: predicated region body
PF: predicated region fallthrough
CT: control target
= control target key end

     0   :  { %s2122_s0 = inlined_call_operand.vmem [shape: f32[128,64], index: 0, kind: input, shape index: {}]   ;;  %s2123_s1 = inlined_call_operand.vmem [shape: f32[64,8], index: 1, kind: input, shape index: {}]   ;;  %s2124_s2 = inlined_call_operand.vmem [shape: f32[16,8,16], index: 2, kind: input, shape index: {}]   ;;  %s2125_s3 = inlined_call_operand.vmem [shape: f32[32,16], index: 3, kind: input, shape index: {}]   ;;  %s2126_s4 = inlined_call_operand.hbm [shape: f32[1,128], index: 4, kind: output, shape index: {}]  }
   0x1   :  { %v41_v0 = vld [vmem:[%s2123_s1 + $0x38] sm:$0xff]  ;;  %v40_v1 = vld [vmem:[%s2123_s1 + $0x30] sm:$0xff]  ;;  %v39_v2 = vld [vmem:[%s2123_s1 + $0x28] sm:$0xff] }
   0x2   :  { %99 = vmatpush.msra.mxu0 %v41_v0  ;;  %v38_v3 = vld [vmem:[%s2123_s1 + $0x20] sm:$0xff] }
   0x4   :  { %100 = vmatpush.msra.mxu0 %v40_v1 }
   0x5   :  { %9 = vsyncpa [#allocation6], 0  ;;  %v37_v4 = vld [vmem:[%s2123_s1 + $0x18] sm:$0xff]  ;;  %v36_v5 = vld [vmem:[%s2123_s1 + $0x10] sm:$0xff]  ;;  %vm42_vm0 = vcmask 523264   ;;  %vm221_vm1 = vcmask 61440  }
   0x6   :  { %101 = vmatpush.msra.mxu0 %v39_v2  ;;  %v35_v6 = vld [vmem:[%s2123_s1 + $0x8] sm:$0xff]  ;;  %v34_v7 = vld [vmem:[%s2123_s1] sm:$0xff]  ;;  %v20_v10 = vld [vmem:[%s2122_s0 + $0x10] sm:$0xff]  ;;  %v1613_v21 = vmov 0.0   ;;  %vm264_vm2 = vcmask 60416   ;;  %vm204_vm3 = vcmask 64512  }
   0x7   :  { %v18_v8 = vld [vmem:[%s2122_s0] sm:$0xff]  ;;  %v19_v9 = vld [vmem:[%s2122_s0 + $0x8] sm:$0xff]  ;;  %v21_v11 = vld [vmem:[%s2122_s0 + $0x18] sm:$0xff]  ;;  %222 = vst.msk [vmem:[#allocation3] sm:$0x1f] %vm221_vm1, %v1613_v21  ;;  %s1614_s19 = smov [#allocation5]  }
   0x8   :  { %102 = vmatpush.msra.mxu0 %v38_v3  ;;  %v22_v12 = vld [vmem:[%s2122_s0 + $0x20] sm:$0xff]  ;;  %v23_v13 = vld [vmem:[%s2122_s0 + $0x28] sm:$0xff]  ;;  %v24_v14 = vld [vmem:[%s2122_s0 + $0x30] sm:$0xff]  ;;  %223 = vst.msk [vmem:[#allocation3 + $0x8] sm:$0x1f] %vm221_vm1, %v1613_v21  ;;  %s1478_s20 = sshll.u32 %s1614_s19, 4  ;;  %s1479_s20 = int_to_ptr.vmem [resolvable:$true] %s1478_s20 }
   0x9   :  { %v25_v15 = vld [vmem:[%s2122_s0 + $0x38] sm:$0xff]  ;;  %v26_v16 = vld [vmem:[%s2122_s0 + $0x40] sm:$0xff]  ;;  %v27_v17 = vld [vmem:[%s2122_s0 + $0x48] sm:$0xff]  ;;  %224 = vst.msk [vmem:[#allocation3 + $0x10] sm:$0x1f] %vm221_vm1, %v1613_v21  ;;  %s1480_s22 = sshll.u32 %s2126_s4, 4  ;;  %s1481_s22 = int_to_ptr.hbm [resolvable:$true] %s1480_s22 }
   0xa   :  { %103 = vmatpush.msra.mxu0 %v37_v4  ;;  %v28_v18 = vld [vmem:[%s2122_s0 + $0x50] sm:$0xff]  ;;  %v29_v19 = vld [vmem:[%s2122_s0 + $0x58] sm:$0xff]  ;;  %v30_v20 = vld [vmem:[%s2122_s0 + $0x60] sm:$0xff]  ;;  %225 = vst.msk [vmem:[#allocation3 + $0x18] sm:$0x1f] %vm221_vm1, %v1613_v21 }
   0xb   :  { %v31_v22 = vld [vmem:[%s2122_s0 + $0x68] sm:$0xff]  ;;  %226 = vst.msk [vmem:[#allocation3 + $0x20] sm:$0x1f] %vm221_vm1, %v1613_v21  ;;  %v32_v24 = vld [vmem:[%s2122_s0 + $0x70] sm:$0xff]  ;;  %v33_v25 = vld [vmem:[%s2122_s0 + $0x78] sm:$0xff] }
   0xc   :  { %104 = vmatpush.msra.mxu0 %v36_v5  ;;  %227 = vst.msk [vmem:[#allocation3 + $0x28] sm:$0x1f] %vm221_vm1, %v1613_v21  ;;  %v380_v28 = vld [vmem:[%s2124_s2] sm:$0xff]  ;;  %v1505_v54 = vld [vmem:[%s2124_s2 + $0x8] sm:$0xff] }
   0xd   :  { %228 = vst.msk [vmem:[#allocation3 + $0x30] sm:$0x1f] %vm221_vm1, %v1613_v21  ;;  %473 = vmatpush.msra.mxu2 %v380_v28  ;;  %432 = vmatpush.msra.mxu1 %v1505_v54 }
   0xe   :  { %105 = vmatpush.msra.mxu0 %v35_v6  ;;  %229 = vst.msk [vmem:[#allocation3 + $0x38] sm:$0x1f] %vm221_vm1, %v1613_v21  ;;  %v359_v23 = vld [vmem:[#allocation3] sm:$0xf] }
   0xf   :  { %230 = vst.msk [vmem:[#allocation3 + $0x40] sm:$0x1f] %vm221_vm1, %v1613_v21 }
  0x10   :  { %106 = vmatpush.msra.mxu0 %v34_v7  ;;  %360 = vst.msk [vmem:[#allocation4] sm:$0xf] %vm264_vm2, %v359_v23  ;;  %v1514_v7 = vld [vmem:[%s2124_s2 + $0x10] sm:$0xff] }
  0x11   :  { %1489 = vmatmul.msk.f32.vlgmr.msra.gmra.mxu0 %vm42_vm0, %v18_v8  ;;  %231 = vst.msk [vmem:[#allocation3 + $0x48] sm:$0x1f] %vm221_vm1, %v1613_v21  ;;  %536 = vmatpush.msra.mxu3 %v1514_v7 }
  0x12   :  { %232 = vst.msk [vmem:[#allocation3 + $0x50] sm:$0x1f] %vm221_vm1, %v1613_v21 }
  0x13   :  { %233 = vst.msk [vmem:[#allocation3 + $0x58] sm:$0x1f] %vm221_vm1, %v1613_v21  ;;  %v368_v35 = vld [vmem:[#allocation3 + $0x28] sm:$0xf] }
  0x14   :  { %234 = vst.msk [vmem:[#allocation3 + $0x60] sm:$0x1f] %vm221_vm1, %v1613_v21 }
  0x15   :  { %235 = vst.msk [vmem:[#allocation3 + $0x68] sm:$0x1f] %vm221_vm1, %v1613_v21 }
  0x16   :  { %236 = vst.msk [vmem:[#allocation3 + $0x70] sm:$0x1f] %vm221_vm1, %v1613_v21 }
  0x17   :  { %237 = vst.msk [vmem:[#allocation3 + $0x78] sm:$0x1f] %vm221_vm1, %v1613_v21 }
  0x18   :  { %238 = vst.msk [vmem:[#allocation3 + $0x80] sm:$0x1f] %vm221_vm1, %v1613_v21 }
  0x19   :  { %1490 = vmatmul.msk.f32.gmra.mxu0 %vm42_vm0, %v19_v9  ;;  %239 = vst.msk [vmem:[#allocation3 + $0x88] sm:$0x1f] %vm221_vm1, %v1613_v21  ;;  %v382_v45 = vld [vmem:[#allocation3 + $0x50] sm:$0xf] }
  0x1a   :  { %240 = vst.msk [vmem:[#allocation3 + $0x90] sm:$0x1f] %vm221_vm1, %v1613_v21 }
  0x1b   :  { %241 = vst.msk [vmem:[#allocation3 + $0x98] sm:$0x1f] %vm221_vm1, %v1613_v21 }
  0x1c   :  { %242 = vst.msk [vmem:[#allocation3 + $0xa0] sm:$0x1f] %vm221_vm1, %v1613_v21 }
  0x1d   :  { %243 = vst.msk [vmem:[#allocation3 + $0xa8] sm:$0x1f] %vm221_vm1, %v1613_v21 }
  0x1e   :  { %244 = vst.msk [vmem:[#allocation3 + $0xb0] sm:$0x1f] %vm221_vm1, %v1613_v21  ;;  %v391_v0 = vld [vmem:[#allocation3 + $0x78] sm:$0xf] }
  0x1f   :  { %245 = vst.msk [vmem:[#allocation3 + $0xb8] sm:$0x1f] %vm221_vm1, %v1613_v21 }
  0x20   :  { %246 = vst.msk [vmem:[#allocation3 + $0xc0] sm:$0x1f] %vm221_vm1, %v1613_v21 }
  0x21   :  { %1491 = vmatmul.msk.f32.gmra.mxu0 %vm42_vm0, %v20_v10  ;;  %247 = vst.msk [vmem:[#allocation3 + $0xc8] sm:$0x1f] %vm221_vm1, %v1613_v21 }
  0x22   :  { %248 = vst.msk [vmem:[#allocation3 + $0xd0] sm:$0x1f] %vm221_vm1, %v1613_v21 }
  0x23   :  { %249 = vst.msk [vmem:[#allocation3 + $0xd8] sm:$0x1f] %vm221_vm1, %v1613_v21 }
  0x24   :  { %250 = vst.msk [vmem:[#allocation3 + $0xe0] sm:$0x1f] %vm221_vm1, %v1613_v21 }
  0x25   :  { %251 = vst.msk [vmem:[#allocation3 + $0xe8] sm:$0x1f] %vm221_vm1, %v1613_v21 }
  0x26   :  { %252 = vst.msk [vmem:[#allocation3 + $0xf0] sm:$0x1f] %vm221_vm1, %v1613_v21 }
  0x27   :  { %253 = vst.msk [vmem:[#allocation3 + $0xf8] sm:$0x1f] %vm221_vm1, %v1613_v21 }
  0x28   :  { %254 = vst.msk [vmem:[#allocation3 + $0x100] sm:$0x1f] %vm221_vm1, %v1613_v21 }
  0x29   :  { %1492 = vmatmul.msk.f32.gmra.mxu0 %vm42_vm0, %v21_v11  ;;  %255 = vst.msk [vmem:[#allocation3 + $0x108] sm:$0x1f] %vm221_vm1, %v1613_v21 }
  0x2a   :  { %256 = vst.msk [vmem:[#allocation3 + $0x110] sm:$0x1f] %vm221_vm1, %v1613_v21 }
  0x2b   :  { %257 = vst.msk [vmem:[#allocation3 + $0x118] sm:$0x1f] %vm221_vm1, %v1613_v21 }
  0x2c   :  { %258 = vst.msk [vmem:[#allocation3 + $0x120] sm:$0x1f] %vm221_vm1, %v1613_v21 }
  0x2d   :  { %259 = vst.msk [vmem:[#allocation3 + $0x128] sm:$0x1f] %vm221_vm1, %v1613_v21 }
  0x2e   :  { %260 = vst.msk [vmem:[#allocation3 + $0x130] sm:$0x1f] %vm221_vm1, %v1613_v21 }
  0x2f   :  { %261 = vst.msk [vmem:[#allocation3 + $0x138] sm:$0x1f] %vm221_vm1, %v1613_v21 }
  0x30   :  { %369 = vst.msk [vmem:[#allocation4 + $0x10] sm:$0xf] %vm264_vm2, %v368_v35 }
  0x31   :  { %1493 = vmatmul.msk.f32.gmra.mxu0 %vm42_vm0, %v22_v12 }
  0x39   :  { %1494 = vmatmul.msk.f32.gmra.mxu0 %vm42_vm0, %v23_v13 }
  0x41   :  { %1495 = vmatmul.msk.f32.gmra.mxu0 %vm42_vm0, %v24_v14 }
  0x49   :  { %1496 = vmatmul.msk.f32.gmra.mxu0 %vm42_vm0, %v25_v15 }
  0x51   :  { %1497 = vmatmul.msk.f32.gmra.mxu0 %vm42_vm0, %v26_v16 }
  0x59   :  { %1498 = vmatmul.msk.f32.gmra.mxu0 %vm42_vm0, %v27_v17  ;;  %v487_v17 = vld [vmem:[#allocation3 + $0x1] sm:$0xf] }
  0x61   :  { %1499 = vmatmul.msk.f32.gmra.mxu0 %vm42_vm0, %v28_v18 }
  0x69   :  { %1500 = vmatmul.msk.f32.gmra.mxu0 %vm42_vm0, %v29_v19 }
  0x71   :  { %1501 = vmatmul.msk.f32.gmra.mxu0 %vm42_vm0, %v30_v20 }
  0x79   :  { %1502 = vmatmul.msk.f32.gmra.mxu0 %vm42_vm0, %v31_v22 }
  0x81   :  { %1503 = vmatmul.msk.f32.gmra.mxu0 %vm42_vm0, %v32_v24 }
  0x89   :  { %1504 = vmatmul.msk.f32.gmra.mxu0 %vm42_vm0, %v33_v25 }
  0x8e   :  { %v108_v26 = vpop.f32.mrf.mxu0 }
  0x8f   :  { %vm156_vm4 = vcmp.gt.f32.partialorder %v108_v26, 0.0  ;;  %v172_v27 = vmul.f32 0.2, %v108_v26 }
  0x91   :  { %v188_v29 = vsel %vm156_vm4, %v108_v26, %v172_v27 }
  0x92   :  { %205 = vst.msk [vmem:[#allocation2] sm:$0xff] %vm204_vm3, %v188_v29 }
  0x96   :  { %v111_v30 = vpop.f32.mrf.mxu0 }
  0x97   :  { %vm157_vm5 = vcmp.gt.f32.partialorder %v111_v30, 0.0  ;;  %v173_v31 = vmul.f32 0.2, %v111_v30 }
  0x99   :  { %v262_v32 = vld [vmem:[#allocation2] sm:$0xf]  ;;  %v266_v33 = vld [vmem:[#allocation2 + $0x4] sm:$0xf]  ;;  %v189_v34 = vsel %vm157_vm5, %v111_v30, %v173_v31 }
  0x9a   :  { %265 = vst.msk [vmem:[#allocation3 + $0x9] sm:$0xf] %vm264_vm2, %v262_v32 }
  0x9b   :  { %268 = vst.msk [vmem:[#allocation3 + $0x11] sm:$0xf] %vm264_vm2, %v266_v33 }
  0x9c   :  { %206 = vst.msk [vmem:[#allocation2 + $0x8] sm:$0xff] %vm204_vm3, %v189_v34 }
  0x9e   :  { %v114_v36 = vpop.f32.mrf.mxu0 }
  0x9f   :  { %vm158_vm6 = vcmp.gt.f32.partialorder %v114_v36, 0.0  ;;  %v174_v37 = vmul.f32 0.2, %v114_v36 }
  0xa1   :  { %v361_v38 = vld [vmem:[#allocation3 + $0x8] sm:$0xf]  ;;  %v190_v39 = vsel %vm158_vm6, %v114_v36, %v174_v37  ;;  %v1524_v37 = vld [vmem:[%s2124_s2 + $0x20] sm:$0xff] }
  0xa2   :  { %362 = vst.msk [vmem:[#allocation4 + $0x4] sm:$0xf] %vm264_vm2, %v361_v38  ;;  %v363_v40 = vld [vmem:[#allocation3 + $0x10] sm:$0xf]  ;;  %v489_v19 = vld [vmem:[#allocation3 + $0x9] sm:$0xf]  ;;  %670 = vmatpush.msrb.mxu2 %v1524_v37 }
  0xa3   :  { %364 = vst.msk [vmem:[#allocation4 + $0x8] sm:$0xf] %vm264_vm2, %v363_v40  ;;  %v269_v41 = vld [vmem:[#allocation2 + $0x8] sm:$0xf]  ;;  %v272_v42 = vld [vmem:[#allocation2 + $0xc] sm:$0xf] }
  0xa4   :  { %207 = vst.msk [vmem:[#allocation2 + $0x10] sm:$0xff] %vm204_vm3, %v190_v39  ;;  %v491_v25 = vld [vmem:[#allocation3 + $0x11] sm:$0xf]  ;;  %v495_v36 = vld [vmem:[#allocation3 + $0x29] sm:$0xf]  ;;  %v1519_v38 = vld [vmem:[%s2124_s2 + $0x18] sm:$0xff] }
  0xa5   :  { %271 = vst.msk [vmem:[#allocation3 + $0x19] sm:$0xf] %vm264_vm2, %v269_v41  ;;  %603 = vmatpush.msrb.mxu1 %v1519_v38 }
  0xa6   :  { %v117_v43 = vpop.f32.mrf.mxu0  ;;  %274 = vst.msk [vmem:[#allocation3 + $0x21] sm:$0xf] %vm264_vm2, %v272_v42 }
  0xa7   :  { %vm159_vm7 = vcmp.gt.f32.partialorder %v117_v43, 0.0  ;;  %v175_v44 = vmul.f32 0.2, %v117_v43 }
  0xa9   :  { %v376_v46 = vld [vmem:[#allocation4] sm:$0xff]  ;;  %v191_v47 = vsel %vm159_vm7, %v117_v43, %v175_v44 }
  0xaa   :  { %208 = vst.msk [vmem:[#allocation2 + $0x18] sm:$0xff] %vm204_vm3, %v191_v47  ;;  %1510 = vmatmul.msk.f32.vlgmr.msra.gmra.mxu2 %vm204_vm3, %v376_v46 }
  0xab   :  { %v275_v48 = vld [vmem:[#allocation2 + $0x10] sm:$0xf]  ;;  %v278_v49 = vld [vmem:[#allocation2 + $0x14] sm:$0xf]  ;;  %383 = vst.msk [vmem:[#allocation4] sm:$0xf] %vm264_vm2, %v382_v45 }
  0xac   :  { %277 = vst.msk [vmem:[#allocation3 + $0x31] sm:$0xf] %vm264_vm2, %v275_v48  ;;  %v365_v50 = vld [vmem:[#allocation3 + $0x18] sm:$0xf] }
  0xad   :  { %280 = vst.msk [vmem:[#allocation3 + $0x39] sm:$0xf] %vm264_vm2, %v278_v49  ;;  %v493_v27 = vld [vmem:[#allocation3 + $0x19] sm:$0xf]  ;;  %v554_v49 = vld [vmem:[#allocation3 + $0x51] sm:$0xf] }
  0xae   :  { %v120_v51 = vpop.f32.mrf.mxu0  ;;  %366 = vst.msk [vmem:[#allocation4 + $0xc] sm:$0xf] %vm264_vm2, %v365_v50 }
  0xaf   :  { %v176_v52 = vmul.f32 0.2, %v120_v51  ;;  %vm160_vm8 = vcmp.gt.f32.partialorder %v120_v51, 0.0 }
  0xb1   :  { %v281_v53 = vld [vmem:[#allocation2 + $0x18] sm:$0xf]  ;;  %v284_v56 = vld [vmem:[#allocation2 + $0x1c] sm:$0xf]  ;;  %v192_v58 = vsel %vm160_vm8, %v120_v51, %v176_v52 }
  0xb2   :  { %283 = vst.msk [vmem:[#allocation3 + $0x41] sm:$0xf] %vm264_vm2, %v281_v53  ;;  %v562_v52 = vld [vmem:[#allocation3 + $0x79] sm:$0xf] }
  0xb3   :  { %v370_v55 = vld [vmem:[#allocation3 + $0x30] sm:$0xf]  ;;  %286 = vst.msk [vmem:[#allocation3 + $0x49] sm:$0xf] %vm264_vm2, %v284_v56 }
  0xb4   :  { %371 = vst.msk [vmem:[#allocation4 + $0x14] sm:$0xf] %vm264_vm2, %v370_v55  ;;  %v372_v57 = vld [vmem:[#allocation3 + $0x38] sm:$0xf]  ;;  %v497_v43 = vld [vmem:[#allocation3 + $0x31] sm:$0xf] }
  0xb5   :  { %373 = vst.msk [vmem:[#allocation4 + $0x18] sm:$0xf] %vm264_vm2, %v372_v57  ;;  %v377_v59 = vld [vmem:[#allocation4 + $0x8] sm:$0xff]  ;;  %v499_v56 = vld [vmem:[#allocation3 + $0x39] sm:$0xf] }
  0xb6   :  { %v123_v60 = vpop.f32.mrf.mxu0  ;;  %209 = vst.msk [vmem:[#allocation2 + $0x20] sm:$0xff] %vm204_vm3, %v192_v58  ;;  %1511 = vmatmul.msk.f32.gmra.mxu2 %vm204_vm3, %v377_v59 }
  0xb7   :  { %vm161_vm9 = vcmp.gt.f32.partialorder %v123_v60, 0.0  ;;  %v177_v61 = vmul.f32 0.2, %v123_v60 }
  0xb9   :  { %v374_v62 = vld [vmem:[#allocation3 + $0x40] sm:$0xf]  ;;  %v193_v63 = vsel %vm161_vm9, %v123_v60, %v177_v61 }
  0xba   :  { %375 = vst.msk [vmem:[#allocation4 + $0x1c] sm:$0xf] %vm264_vm2, %v374_v62  ;;  %v501_v59 = vld [vmem:[#allocation3 + $0x41] sm:$0xf] }
  0xbb   :  { %v378_v1 = vld [vmem:[#allocation4 + $0x10] sm:$0xff]  ;;  %210 = vst.msk [vmem:[#allocation2 + $0x28] sm:$0xff] %vm204_vm3, %v193_v63 }
  0xbc   :  { %392 = vst.msk [vmem:[#allocation4 + $0x10] sm:$0xf] %vm264_vm2, %v391_v0 }
  0xbd   :  { %v287_v2 = vld [vmem:[#allocation2 + $0x20] sm:$0xf]  ;;  %v290_v3 = vld [vmem:[#allocation2 + $0x24] sm:$0xf] }
  0xbe   :  { %v126_v4 = vpop.f32.mrf.mxu0  ;;  %289 = vst.msk [vmem:[#allocation3 + $0x58] sm:$0xf] %vm264_vm2, %v287_v2  ;;  %1512 = vmatmul.msk.f32.gmra.mxu2 %vm204_vm3, %v378_v1 }
  0xbf   :  { %vm162_vm10 = vcmp.gt.f32.partialorder %v126_v4, 0.0  ;;  %v178_v5 = vmul.f32 0.2, %v126_v4  ;;  %292 = vst.msk [vmem:[#allocation3 + $0x60] sm:$0xf] %vm264_vm2, %v290_v3  ;;  %v1529_v3 = vld [vmem:[%s2124_s2 + $0x28] sm:$0xff] }
  0xc0   :  { %737 = vmatpush.msrb.mxu3 %v1529_v3 }
  0xc1   :  { %v194_v6 = vsel %vm162_vm10, %v126_v4, %v178_v5  ;;  %v379_v10 = vld [vmem:[#allocation4 + $0x18] sm:$0xff] }
  0xc2   :  { %v293_v8 = vld [vmem:[#allocation2 + $0x28] sm:$0xf]  ;;  %v296_v9 = vld [vmem:[#allocation2 + $0x2c] sm:$0xf]  ;;  %211 = vst.msk [vmem:[#allocation2 + $0x30] sm:$0xff] %vm204_vm3, %v194_v6 }
  0xc3   :  { %295 = vst.msk [vmem:[#allocation3 + $0x68] sm:$0xf] %vm264_vm2, %v293_v8 }
  0xc4   :  { %298 = vst.msk [vmem:[#allocation3 + $0x70] sm:$0xf] %vm264_vm2, %v296_v9 }
  0xc5   :  { %v384_v11 = vld [vmem:[#allocation3 + $0x58] sm:$0xf] }
  0xc6   :  { %v129_v12 = vpop.f32.mrf.mxu0  ;;  %385 = vst.msk [vmem:[#allocation4 + $0x4] sm:$0xf] %vm264_vm2, %v384_v11  ;;  %v386_v13 = vld [vmem:[#allocation3 + $0x60] sm:$0xf]  ;;  %1513 = vmatmul.msk.f32.gmra.mxu2 %vm204_vm3, %v379_v10  ;;  %v556_v32 = vld [vmem:[#allocation3 + $0x59] sm:$0xf] }
  0xc7   :  { %387 = vst.msk [vmem:[#allocation4 + $0x8] sm:$0xf] %vm264_vm2, %v386_v13  ;;  %vm163_vm11 = vcmp.gt.f32.partialorder %v129_v12, 0.0  ;;  %v179_v18 = vmul.f32 0.2, %v129_v12 }
  0xc8   :  { %v558_v41 = vld [vmem:[#allocation3 + $0x61] sm:$0xf] }
  0xc9   :  { %v299_v14 = vld [vmem:[#allocation2 + $0x30] sm:$0xf]  ;;  %v302_v16 = vld [vmem:[#allocation2 + $0x34] sm:$0xf]  ;;  %v195_v22 = vsel %vm163_vm11, %v129_v12, %v179_v18 }
  0xca   :  { %v388_v15 = vld [vmem:[#allocation3 + $0x68] sm:$0xf]  ;;  %301 = vst.msk [vmem:[#allocation3 + $0x80] sm:$0xf] %vm264_vm2, %v299_v14 }
  0xcb   :  { %389 = vst.msk [vmem:[#allocation4 + $0xc] sm:$0xf] %vm264_vm2, %v388_v15  ;;  %v560_v40 = vld [vmem:[#allocation3 + $0x69] sm:$0xf] }
  0xcc   :  { %304 = vst.msk [vmem:[#allocation3 + $0x88] sm:$0xf] %vm264_vm2, %v302_v16 }
  0xcd   :  { %v399_v20 = vld [vmem:[#allocation4] sm:$0xff]  ;;  %212 = vst.msk [vmem:[#allocation2 + $0x38] sm:$0xff] %vm204_vm3, %v195_v22 }
  0xce   :  { %v132_v21 = vpop.f32.mrf.mxu0  ;;  %488 = vst.msk [vmem:[#allocation4] sm:$0xf] %vm264_vm2, %v487_v17  ;;  %1506 = vmatmul.msk.f32.vlgmr.msra.gmra.mxu1 %vm204_vm3, %v399_v20 }
  0xcf   :  { %vm164_vm12 = vcmp.gt.f32.partialorder %v132_v21, 0.0  ;;  %v180_v23 = vmul.f32 0.2, %v132_v21  ;;  %490 = vst.msk [vmem:[#allocation4 + $0x4] sm:$0xf] %vm264_vm2, %v489_v19 }
  0xd1   :  { %v196_v24 = vsel %vm164_vm12, %v132_v21, %v180_v23  ;;  %v393_v28 = vld [vmem:[#allocation3 + $0x80] sm:$0xf]  ;;  %v1918_v21 = vld [vmem:[%s2124_s2 + $0x78] sm:$0xff] }
  0xd2   :  { %v400_v26 = vld [vmem:[#allocation4 + $0x8] sm:$0xff]  ;;  %213 = vst.msk [vmem:[#allocation2 + $0x40] sm:$0xff] %vm204_vm3, %v196_v24  ;;  %v564_v54 = vld [vmem:[#allocation3 + $0x81] sm:$0xf]  ;;  %1411 = vmatpush.msrb.mxu0 %v1918_v21 }
  0xd3   :  { %492 = vst.msk [vmem:[#allocation4 + $0x8] sm:$0xf] %vm264_vm2, %v491_v25  ;;  %v395_v29 = vld [vmem:[#allocation3 + $0x88] sm:$0xf] }
  0xd4   :  { %494 = vst.msk [vmem:[#allocation4 + $0xc] sm:$0xf] %vm264_vm2, %v493_v27  ;;  %v305_v33 = vld [vmem:[#allocation2 + $0x38] sm:$0xf]  ;;  %v308_v34 = vld [vmem:[#allocation2 + $0x3c] sm:$0xf] }
  0xd5   :  { %394 = vst.msk [vmem:[#allocation4 + $0x14] sm:$0xf] %vm264_vm2, %v393_v28  ;;  %v566_v8 = vld [vmem:[#allocation3 + $0x89] sm:$0xf]  ;;  %v1534_v28 = vld [vmem:[%s2124_s2 + $0x30] sm:$0xff] }
  0xd6   :  { %396 = vst.msk [vmem:[#allocation4 + $0x18] sm:$0xf] %vm264_vm2, %v395_v29  ;;  %v135_v30 = vpop.f32.mrf.mxu0  ;;  %v503_v31 = vld [vmem:[#allocation4] sm:$0xff]  ;;  %1507 = vmatmul.msk.f32.gmra.mxu1 %vm204_vm3, %v400_v26 }
  0xd7   :  { %557 = vst.msk [vmem:[#allocation4 + $0x4] sm:$0xf] %vm264_vm2, %v556_v32  ;;  %1515 = vmatmul.msk.f32.vlgmr.msra.gmra.mxu3 %vm204_vm3, %v503_v31  ;;  %v181_v44 = vmul.f32 0.2, %v135_v30  ;;  %vm165_vm13 = vcmp.gt.f32.partialorder %v135_v30, 0.0  ;;  %804 = vmatpush.msra.mxu1 %v1534_v28 }
  0xd8   :  { %307 = vst.msk [vmem:[#allocation3 + $0x90] sm:$0xf] %vm264_vm2, %v305_v33  ;;  %v958_v28 = vld [vmem:[#allocation3 + $0x60] sm:$0xf] }
  0xd9   :  { %v311_v35 = vld [vmem:[#allocation2 + $0x40] sm:$0xf]  ;;  %310 = vst.msk [vmem:[#allocation3 + $0x98] sm:$0xf] %vm264_vm2, %v308_v34  ;;  %v314_v45 = vld [vmem:[#allocation2 + $0x44] sm:$0xf]  ;;  %v197_v50 = vsel %vm165_vm13, %v135_v30, %v181_v44 }
  0xda   :  { %313 = vst.msk [vmem:[#allocation3 + $0xa1] sm:$0xf] %vm264_vm2, %v311_v35 }
  0xdb   :  { %v504_v39 = vld [vmem:[#allocation4 + $0x8] sm:$0xff]  ;;  %316 = vst.msk [vmem:[#allocation3 + $0xa9] sm:$0xf] %vm264_vm2, %v314_v45 }
  0xdc   :  { %561 = vst.msk [vmem:[#allocation4 + $0xc] sm:$0xf] %vm264_vm2, %v560_v40  ;;  %v401_v42 = vld [vmem:[#allocation4 + $0x10] sm:$0xff]  ;;  %v1539_v40 = vld [vmem:[%s2124_s2 + $0x38] sm:$0xff] }
  0xdd   :  { %559 = vst.msk [vmem:[#allocation4 + $0x8] sm:$0xf] %vm264_vm2, %v558_v41  ;;  %v1544_v41 = vld [vmem:[%s2124_s2 + $0x40] sm:$0xff]  ;;  %871 = vmatpush.msra.mxu2 %v1539_v40  ;;  %v1023_v40 = vld [vmem:[#allocation3 + $0x9] sm:$0xf] }
  0xde   :  { %496 = vst.msk [vmem:[#allocation4 + $0x10] sm:$0xf] %vm264_vm2, %v495_v36  ;;  %v138_v46 = vpop.f32.mrf.mxu0  ;;  %1508 = vmatmul.msk.f32.gmra.mxu1 %vm204_vm3, %v401_v42  ;;  %938 = vmatpush.msra.mxu3 %v1544_v41 }
  0xdf   :  { %498 = vst.msk [vmem:[#allocation4 + $0x14] sm:$0xf] %vm264_vm2, %v497_v43  ;;  %vm166_vm14 = vcmp.gt.f32.partialorder %v138_v46, 0.0  ;;  %v182_v47 = vmul.f32 0.2, %v138_v46  ;;  %1516 = vmatmul.msk.f32.gmra.mxu3 %vm204_vm3, %v504_v39 }
  0xe0   :  { %v397_v48 = vld [vmem:[#allocation3 + $0x90] sm:$0xf]  ;;  %555 = vst.msk [vmem:[#allocation4] sm:$0xf] %vm264_vm2, %v554_v49 }
  0xe1   :  { %398 = vst.msk [vmem:[#allocation4 + $0x1c] sm:$0xf] %vm264_vm2, %v397_v48  ;;  %v198_v51 = vsel %vm166_vm14, %v138_v46, %v182_v47  ;;  %v621_v58 = vld [vmem:[#allocation3 + $0xa0] sm:$0xf]  ;;  %v568_v7 = vld [vmem:[#allocation3 + $0x91] sm:$0xf] }
  0xe2   :  { %214 = vst.msk [vmem:[#allocation2 + $0x48] sm:$0xff] %vm204_vm3, %v197_v50  ;;  %v623_v60 = vld [vmem:[#allocation3 + $0xa8] sm:$0xf]  ;;  %v755_v50 = vld [vmem:[#allocation3 + $0xa1] sm:$0xf] }
  0xe3   :  { %215 = vst.msk [vmem:[#allocation2 + $0x50] sm:$0xff] %vm204_vm3, %v198_v51  ;;  %v1554_v51 = vld [vmem:[%s2124_s2 + $0x50] sm:$0xff] }
  0xe4   :  { %v571_v11 = vld [vmem:[#allocation4 + $0x8] sm:$0xff] }
  0xe6   :  { %v505_v53 = vld [vmem:[#allocation4 + $0x10] sm:$0xff]  ;;  %v141_v55 = vpop.f32.mrf.mxu0 }
  0xe7   :  { %565 = vst.msk [vmem:[#allocation4 + $0x14] sm:$0xf] %vm264_vm2, %v564_v54  ;;  %1517 = vmatmul.msk.f32.gmra.mxu3 %vm204_vm3, %v505_v53  ;;  %v570_v61 = vld [vmem:[#allocation4] sm:$0xff]  ;;  %v183_v62 = vmul.f32 0.2, %v141_v55  ;;  %vm167_vm15 = vcmp.gt.f32.partialorder %v141_v55, 0.0 }
  0xe8   :  { %v402_v57 = vld [vmem:[#allocation4 + $0x18] sm:$0xff]  ;;  %563 = vst.msk [vmem:[#allocation4 + $0x10] sm:$0xf] %vm264_vm2, %v562_v52  ;;  %v757_v54 = vld [vmem:[#allocation3 + $0xa9] sm:$0xf] }
  0xe9   :  { %500 = vst.msk [vmem:[#allocation4 + $0x18] sm:$0xf] %vm264_vm2, %v499_v56  ;;  %1509 = vmatmul.msk.f32.gmra.mxu1 %vm204_vm3, %v402_v57  ;;  %v317_v63 = vld [vmem:[#allocation2 + $0x48] sm:$0xf]  ;;  %v320_v0 = vld [vmem:[#allocation2 + $0x4c] sm:$0xf]  ;;  %v199_v4 = vsel %vm167_vm15, %v141_v55, %v183_v62 }
  0xea   :  { %502 = vst.msk [vmem:[#allocation4 + $0x1c] sm:$0xf] %vm264_vm2, %v501_v59  ;;  %v323_v1 = vld [vmem:[#allocation2 + $0x50] sm:$0xf]  ;;  %v326_v2 = vld [vmem:[#allocation2 + $0x54] sm:$0xf] }
  0xeb   :  { %622 = vst.msk [vmem:[#allocation4] sm:$0xf] %vm264_vm2, %v621_v58  ;;  %v1549_v62 = vld [vmem:[%s2124_s2 + $0x48] sm:$0xff] }
  0xec   :  { %624 = vst.msk [vmem:[#allocation4 + $0x4] sm:$0xf] %vm264_vm2, %v623_v60 }
  0xed   :  { %319 = vst.msk [vmem:[#allocation3 + $0xb1] sm:$0xf] %vm264_vm2, %v317_v63 }
  0xee   :  { %322 = vst.msk [vmem:[#allocation3 + $0xb9] sm:$0xf] %vm264_vm2, %v320_v0  ;;  %v144_v5 = vpop.f32.mrf.mxu0 }
  0xef   :  { %325 = vst.msk [vmem:[#allocation3 + $0xc9] sm:$0xf] %vm264_vm2, %v323_v1  ;;  %v184_v10 = vmul.f32 0.2, %v144_v5  ;;  %vm168_vm0 = vcmp.gt.f32.partialorder %v144_v5, 0.0  ;;  %v572_v15 = vld [vmem:[#allocation4 + $0x10] sm:$0xff] }
  0xf0   :  { %328 = vst.msk [vmem:[#allocation3 + $0xd1] sm:$0xf] %vm264_vm2, %v326_v2  ;;  %v1559_v1 = vld [vmem:[%s2124_s2 + $0x58] sm:$0xff] }
  0xf1   :  { %v506_v6 = vld [vmem:[#allocation4 + $0x18] sm:$0xff]  ;;  %216 = vst.msk [vmem:[#allocation2 + $0x58] sm:$0xff] %vm204_vm3, %v199_v4  ;;  %1520 = vmatmul.msk.f32.vlgmr.msrb.gmra.mxu1 %vm204_vm3, %v570_v61  ;;  %v200_v18 = vsel %vm168_vm0, %v144_v5, %v184_v10 }
  0xf2   :  { %569 = vst.msk [vmem:[#allocation4 + $0x1c] sm:$0xf] %vm264_vm2, %v568_v7  ;;  %1518 = vmatmul.msk.f32.gmra.mxu3 %vm204_vm3, %v506_v6  ;;  %1005 = vmatpush.msrb.mxu1 %v1549_v62 }
  0xf3   :  { %567 = vst.msk [vmem:[#allocation4 + $0x18] sm:$0xf] %vm264_vm2, %v566_v8  ;;  %v637_v9 = vld [vmem:[#allocation4] sm:$0xff] }
  0xf4   :  { %v625_v12 = vld [vmem:[#allocation3 + $0xb0] sm:$0xf]  ;;  %1525 = vmatmul.msk.f32.vlgmr.msrb.gmra.mxu2 %vm204_vm3, %v637_v9  ;;  %217 = vst.msk [vmem:[#allocation2 + $0x60] sm:$0xff] %vm204_vm3, %v200_v18 }
  0xf5   :  { %626 = vst.msk [vmem:[#allocation4 + $0x8] sm:$0xf] %vm264_vm2, %v625_v12  ;;  %v627_v13 = vld [vmem:[#allocation3 + $0xb8] sm:$0xf]  ;;  %1072 = vmatpush.msrb.mxu2 %v1554_v51  ;;  %v759_v55 = vld [vmem:[#allocation3 + $0xb1] sm:$0xf] }
  0xf6   :  { %628 = vst.msk [vmem:[#allocation4 + $0xc] sm:$0xf] %vm264_vm2, %v627_v13  ;;  %v147_v14 = vpop.f32.mrf.mxu0  ;;  %v629_v16 = vld [vmem:[#allocation3 + $0xc8] sm:$0xf]  ;;  %v761_v57 = vld [vmem:[#allocation3 + $0xb9] sm:$0xf] }
  0xf7   :  { %v631_v17 = vld [vmem:[#allocation3 + $0xd0] sm:$0xf]  ;;  %630 = vst.msk [vmem:[#allocation4 + $0x10] sm:$0xf] %vm264_vm2, %v629_v16  ;;  %vm169_vm1 = vcmp.gt.f32.partialorder %v147_v14, 0.0 }
  0xf8   :  { %632 = vst.msk [vmem:[#allocation4 + $0x14] sm:$0xf] %vm264_vm2, %v631_v17  ;;  %v329_v19 = vld [vmem:[#allocation2 + $0x58] sm:$0xf]  ;;  %v332_v20 = vld [vmem:[#allocation2 + $0x5c] sm:$0xf] }
  0xf9   :  { %1521 = vmatmul.msk.f32.gmra.mxu1 %vm204_vm3, %v571_v11  ;;  %331 = vst.msk [vmem:[#allocation3 + $0xd9] sm:$0xf] %vm264_vm2, %v329_v19  ;;  %v185_v22 = vmul.f32 0.2, %v147_v14  ;;  %v763_v5 = vld [vmem:[#allocation3 + $0xc9] sm:$0xf] }
  0xfa   :  { %334 = vst.msk [vmem:[#allocation3 + $0xe1] sm:$0xf] %vm264_vm2, %v332_v20  ;;  %v573_v26 = vld [vmem:[#allocation4 + $0x18] sm:$0xff]  ;;  %v765_v7 = vld [vmem:[#allocation3 + $0xd1] sm:$0xf] }
  0xfb   :  { %v201_v24 = vsel %vm169_vm1, %v147_v14, %v185_v22  ;;  %v335_v31 = vld [vmem:[#allocation2 + $0x60] sm:$0xf]  ;;  %v338_v33 = vld [vmem:[#allocation2 + $0x64] sm:$0xf]  ;;  %v889_v12 = vld [vmem:[#allocation3 + $0x8] sm:$0xf] }
  0xfc   :  { %218 = vst.msk [vmem:[#allocation2 + $0x68] sm:$0xff] %vm204_vm3, %v201_v24  ;;  %v891_v14 = vld [vmem:[#allocation3 + $0x10] sm:$0xf]  ;;  %v893_v19 = vld [vmem:[#allocation3 + $0x18] sm:$0xf] }
  0xfd   :  { %v638_v23 = vld [vmem:[#allocation4 + $0x8] sm:$0xff]  ;;  %337 = vst.msk [vmem:[#allocation3 + $0xf0] sm:$0xf] %vm264_vm2, %v335_v31  ;;  %v895_v20 = vld [vmem:[#allocation3 + $0x20] sm:$0xf] }
  0xfe   :  { %1526 = vmatmul.msk.f32.gmra.mxu2 %vm204_vm3, %v638_v23  ;;  %v150_v25 = vpop.f32.mrf.mxu0  ;;  %340 = vst.msk [vmem:[#allocation3 + $0xf8] sm:$0xf] %vm264_vm2, %v338_v33  ;;  %v899_v31 = vld [vmem:[#allocation3 + $0x38] sm:$0xf] }
  0xff   :  { %v186_v27 = vmul.f32 0.2, %v150_v25  ;;  %v639_v29 = vld [vmem:[#allocation4 + $0x10] sm:$0xff]  ;;  %vm170_vm4 = vcmp.gt.f32.partialorder %v150_v25, 0.0  ;;  %v970_v51 = vld [vmem:[#allocation3 + $0x98] sm:$0xf] }
 0x100   :  { %v633_v30 = vld [vmem:[#allocation3 + $0xd8] sm:$0xf] }
 0x101   :  { %1522 = vmatmul.msk.f32.gmra.mxu1 %vm204_vm3, %v572_v15  ;;  %634 = vst.msk [vmem:[#allocation4 + $0x18] sm:$0xf] %vm264_vm2, %v633_v30  ;;  %v635_v32 = vld [vmem:[#allocation3 + $0xe0] sm:$0xf]  ;;  %v202_v36 = vsel %vm170_vm4, %v150_v25, %v186_v27  ;;  %v767_v9 = vld [vmem:[#allocation3 + $0xd9] sm:$0xf] }
 0x102   :  { %636 = vst.msk [vmem:[#allocation4 + $0x1c] sm:$0xf] %vm264_vm2, %v635_v32  ;;  %v769_v11 = vld [vmem:[#allocation3 + $0xe1] sm:$0xf]  ;;  %v956_v25 = vld [vmem:[#allocation3 + $0x58] sm:$0xf] }
 0x103   :  { %v341_v34 = vld [vmem:[#allocation2 + $0x68] sm:$0xf]  ;;  %v344_v35 = vld [vmem:[#allocation2 + $0x6c] sm:$0xf]  ;;  %219 = vst.msk [vmem:[#allocation2 + $0x70] sm:$0xff] %vm204_vm3, %v202_v36 }
 0x104   :  { %343 = vst.msk [vmem:[#allocation3 + $0x100] sm:$0xf] %vm264_vm2, %v341_v34  ;;  %v688_v43 = vld [vmem:[#allocation3 + $0xf0] sm:$0xf]  ;;  %v1569_v27 = vld [vmem:[%s2124_s2 + $0x68] sm:$0xff] }
 0x105   :  { %346 = vst.msk [vmem:[#allocation3 + $0x108] sm:$0xf] %vm264_vm2, %v344_v35  ;;  %v690_v44 = vld [vmem:[#allocation3 + $0xf8] sm:$0xf]  ;;  %v822_v0 = vld [vmem:[#allocation3 + $0xf1] sm:$0xf] }
 0x106   :  { %1527 = vmatmul.msk.f32.gmra.mxu2 %vm204_vm3, %v639_v29  ;;  %v153_v37 = vpop.f32.mrf.mxu0  ;;  %689 = vst.msk [vmem:[#allocation4] sm:$0xf] %vm264_vm2, %v688_v43  ;;  %v824_v2 = vld [vmem:[#allocation3 + $0xf9] sm:$0xf]  ;;  %v897_v29 = vld [vmem:[#allocation3 + $0x30] sm:$0xf] }
 0x107   :  { %vm171_vm5 = vcmp.gt.f32.partialorder %v153_v37, 0.0  ;;  %v187_v38 = vmul.f32 0.2, %v153_v37  ;;  %691 = vst.msk [vmem:[#allocation4 + $0x4] sm:$0xf] %vm264_vm2, %v690_v44 }
 0x108   :  { %v960_v32 = vld [vmem:[#allocation3 + $0x68] sm:$0xf]  ;;  %v962_v34 = vld [vmem:[#allocation3 + $0x70] sm:$0xf]  ;;  %v901_v35 = vld [vmem:[#allocation3 + $0x40] sm:$0xf] }
 0x109   :  { %1523 = vmatmul.msk.f32.gmra.mxu1 %vm204_vm3, %v573_v26  ;;  %v203_v39 = vsel %vm171_vm5, %v153_v37, %v187_v38  ;;  %v640_v42 = vld [vmem:[#allocation4 + $0x18] sm:$0xff]  ;;  %v903_v37 = vld [vmem:[#allocation3 + $0x48] sm:$0xf]  ;;  %v1564_v38 = vld [vmem:[%s2124_s2 + $0x60] sm:$0xff] }
 0x10a   :  { %220 = vst.msk [vmem:[#allocation2 + $0x78] sm:$0xff] %vm204_vm3, %v203_v39  ;;  %v347_v47 = vld [vmem:[#allocation2 + $0x70] sm:$0xf]  ;;  %v350_v48 = vld [vmem:[#allocation2 + $0x74] sm:$0xf] }
 0x10b   :  { %v692_v45 = vld [vmem:[#allocation3 + $0x100] sm:$0xf]  ;;  %349 = vst.msk [vmem:[#allocation3 + $0x118] sm:$0xf] %vm264_vm2, %v347_v47  ;;  %v1574_v39 = vld [vmem:[%s2124_s2 + $0x70] sm:$0xff] }
 0x10c   :  { %v694_v46 = vld [vmem:[#allocation3 + $0x108] sm:$0xf]  ;;  %693 = vst.msk [vmem:[#allocation4 + $0x8] sm:$0xf] %vm264_vm2, %v692_v45  ;;  %v826_v4 = vld [vmem:[#allocation3 + $0x101] sm:$0xf] }
 0x10d   :  { %695 = vst.msk [vmem:[#allocation4 + $0xc] sm:$0xf] %vm264_vm2, %v694_v46  ;;  %v828_v8 = vld [vmem:[#allocation3 + $0x109] sm:$0xf]  ;;  %v964_v43 = vld [vmem:[#allocation3 + $0x80] sm:$0xf] }
 0x10e   :  { %1528 = vmatmul.msk.f32.gmra.mxu2 %vm204_vm3, %v640_v42  ;;  %352 = vst.msk [vmem:[#allocation3 + $0x120] sm:$0xf] %vm264_vm2, %v350_v48  ;;  %v704_v52 = vld [vmem:[#allocation4] sm:$0xff]  ;;  %v1025_v42 = vld [vmem:[#allocation3 + $0x11] sm:$0xf] }
 0x10f   :  { %756 = vst.msk [vmem:[#allocation4] sm:$0xf] %vm264_vm2, %v755_v50  ;;  %1530 = vmatmul.msk.f32.vlgmr.msrb.gmra.mxu3 %vm204_vm3, %v704_v52  ;;  %v966_v45 = vld [vmem:[#allocation3 + $0x88] sm:$0xf]  ;;  %v1027_v46 = vld [vmem:[#allocation3 + $0x19] sm:$0xf] }
 0x110   :  { %758 = vst.msk [vmem:[#allocation4 + $0x4] sm:$0xf] %vm264_vm2, %v757_v54  ;;  %1139 = vmatpush.msrb.mxu3 %v1559_v1  ;;  %v1029_v48 = vld [vmem:[#allocation3 + $0x21] sm:$0xf]  ;;  %v1090_v52 = vld [vmem:[#allocation3 + $0x59] sm:$0xf] }
 0x111   :  { %v353_v49 = vld [vmem:[#allocation2 + $0x78] sm:$0xf]  ;;  %v356_v53 = vld [vmem:[#allocation2 + $0x7c] sm:$0xf]  ;;  %v1092_v54 = vld [vmem:[#allocation3 + $0x61] sm:$0xf] }
 0x112   :  { %355 = vst.msk [vmem:[#allocation3 + $0x128] sm:$0xf] %vm264_vm2, %v353_v49  ;;  %v696_v58 = vld [vmem:[#allocation3 + $0x118] sm:$0xf]  ;;  %v968_v49 = vld [vmem:[#allocation3 + $0x90] sm:$0xf] }
 0x113   :  { %358 = vst.msk [vmem:[#allocation3 + $0x130] sm:$0xf] %vm264_vm2, %v356_v53  ;;  %v830_v15 = vld [vmem:[#allocation3 + $0x119] sm:$0xf]  ;;  %v1157_v1 = vld [vmem:[#allocation3 + $0xa8] sm:$0xf] }
 0x114   :  { %v705_v56 = vld [vmem:[#allocation4 + $0x8] sm:$0xff]  ;;  %697 = vst.msk [vmem:[#allocation4 + $0x10] sm:$0xf] %vm264_vm2, %v696_v58 }
 0x115   :  { %760 = vst.msk [vmem:[#allocation4 + $0x8] sm:$0xf] %vm264_vm2, %v759_v55  ;;  %v698_v59 = vld [vmem:[#allocation3 + $0x120] sm:$0xf]  ;;  %v1094_v58 = vld [vmem:[#allocation3 + $0x69] sm:$0xf] }
 0x116   :  { %762 = vst.msk [vmem:[#allocation4 + $0xc] sm:$0xf] %vm264_vm2, %v761_v57  ;;  %v832_v17 = vld [vmem:[#allocation3 + $0x121] sm:$0xf] }
 0x117   :  { %699 = vst.msk [vmem:[#allocation4 + $0x14] sm:$0xf] %vm264_vm2, %v698_v59  ;;  %1531 = vmatmul.msk.f32.gmra.mxu3 %vm204_vm3, %v705_v56  ;;  %v771_v61 = vld [vmem:[#allocation4] sm:$0xff]  ;;  %v1033_v56 = vld [vmem:[#allocation3 + $0x39] sm:$0xf] }
 0x118   :  { %1535 = vmatmul.msk.f32.vlgmr.msra.gmra.mxu1 %vm204_vm3, %v771_v61  ;;  %823 = vst.msk [vmem:[#allocation4] sm:$0xf] %vm264_vm2, %v822_v0  ;;  %v1035_v61 = vld [vmem:[#allocation3 + $0x41] sm:$0xf] }
 0x119   :  { %v700_v60 = vld [vmem:[#allocation3 + $0x128] sm:$0xf]  ;;  %825 = vst.msk [vmem:[#allocation4 + $0x4] sm:$0xf] %vm264_vm2, %v824_v2  ;;  %1208 = vmatpush.msra.mxu1 %v1564_v38  ;;  %v1235_v38 = vld [vmem:[#allocation3 + $0x120] sm:$0xf] }
 0x11a   :  { %701 = vst.msk [vmem:[#allocation4 + $0x18] sm:$0xf] %vm264_vm2, %v700_v60  ;;  %v702_v63 = vld [vmem:[#allocation3 + $0x130] sm:$0xf]  ;;  %v834_v22 = vld [vmem:[#allocation3 + $0x129] sm:$0xf] }
 0x11b   :  { %703 = vst.msk [vmem:[#allocation4 + $0x1c] sm:$0xf] %vm264_vm2, %v702_v63  ;;  %v836_v24 = vld [vmem:[#allocation3 + $0x131] sm:$0xf]  ;;  %v1037_v63 = vld [vmem:[#allocation3 + $0x49] sm:$0xf] }
 0x11c   :  { %v1096_v60 = vld [vmem:[#allocation3 + $0x71] sm:$0xf] }
 0x11d   :  { %v772_v3 = vld [vmem:[#allocation4 + $0x8] sm:$0xff] }
 0x11e   :  { %v706_v6 = vld [vmem:[#allocation4 + $0x10] sm:$0xff]  ;;  %827 = vst.msk [vmem:[#allocation4 + $0x8] sm:$0xf] %vm264_vm2, %v826_v4 }
 0x11f   :  { %764 = vst.msk [vmem:[#allocation4 + $0x10] sm:$0xf] %vm264_vm2, %v763_v5  ;;  %1532 = vmatmul.msk.f32.gmra.mxu3 %vm204_vm3, %v706_v6  ;;  %v1159_v4 = vld [vmem:[#allocation3 + $0xb0] sm:$0xf]  ;;  %v1098_v5 = vld [vmem:[#allocation3 + $0x81] sm:$0xf] }
 0x120   :  { %766 = vst.msk [vmem:[#allocation4 + $0x14] sm:$0xf] %vm264_vm2, %v765_v7  ;;  %1536 = vmatmul.msk.f32.gmra.mxu1 %vm204_vm3, %v772_v3  ;;  %v838_v13 = vld [vmem:[#allocation4] sm:$0xff]  ;;  %v1100_v7 = vld [vmem:[#allocation3 + $0x89] sm:$0xf] }
 0x121   :  { %829 = vst.msk [vmem:[#allocation4 + $0xc] sm:$0xf] %vm264_vm2, %v828_v8  ;;  %1540 = vmatmul.msk.f32.vlgmr.msra.gmra.mxu2 %vm204_vm3, %v838_v13  ;;  %v1164_v8 = vld [vmem:[#allocation3 + $0xc0] sm:$0xf] }
 0x122   :  { %v707_v10 = vld [vmem:[#allocation4 + $0x18] sm:$0xff]  ;;  %890 = vst.msk [vmem:[#allocation4] sm:$0xf] %vm264_vm2, %v889_v12  ;;  %1277 = vmatpush.msra.mxu2 %v1569_v27  ;;  %v1102_v12 = vld [vmem:[#allocation3 + $0x91] sm:$0xf] }
 0x123   :  { %768 = vst.msk [vmem:[#allocation4 + $0x18] sm:$0xf] %vm264_vm2, %v767_v9  ;;  %v1161_v9 = vld [vmem:[#allocation3 + $0xb8] sm:$0xf] }
 0x124   :  { %770 = vst.msk [vmem:[#allocation4 + $0x1c] sm:$0xf] %vm264_vm2, %v769_v11 }
 0x125   :  { %892 = vst.msk [vmem:[#allocation4 + $0x4] sm:$0xf] %vm264_vm2, %v891_v14 }
 0x127   :  { %v773_v16 = vld [vmem:[#allocation4 + $0x10] sm:$0xff]  ;;  %1533 = vmatmul.msk.f32.gmra.mxu3 %vm204_vm3, %v707_v10 }
 0x128   :  { %831 = vst.msk [vmem:[#allocation4 + $0x10] sm:$0xf] %vm264_vm2, %v830_v15  ;;  %v839_v18 = vld [vmem:[#allocation4 + $0x8] sm:$0xff]  ;;  %1537 = vmatmul.msk.f32.gmra.mxu1 %vm204_vm3, %v773_v16  ;;  %v1104_v15 = vld [vmem:[#allocation3 + $0x99] sm:$0xf] }
 0x129   :  { %833 = vst.msk [vmem:[#allocation4 + $0x14] sm:$0xf] %vm264_vm2, %v832_v17  ;;  %1541 = vmatmul.msk.f32.gmra.mxu2 %vm204_vm3, %v839_v18  ;;  %v1226_v17 = vld [vmem:[#allocation3 + $0xf8] sm:$0xf] }
 0x12a   :  { %894 = vst.msk [vmem:[#allocation4 + $0x8] sm:$0xf] %vm264_vm2, %v893_v19  ;;  %v1228_v19 = vld [vmem:[#allocation3 + $0x100] sm:$0xf] }
 0x12b   :  { %896 = vst.msk [vmem:[#allocation4 + $0xc] sm:$0xf] %vm264_vm2, %v895_v20  ;;  %v774_v23 = vld [vmem:[#allocation4 + $0x18] sm:$0xff]  ;;  %v1166_v20 = vld [vmem:[#allocation3 + $0xd0] sm:$0xf] }
 0x12c   :  { %835 = vst.msk [vmem:[#allocation4 + $0x18] sm:$0xf] %vm264_vm2, %v834_v22  ;;  %v905_v26 = vld [vmem:[#allocation4] sm:$0xff] }
 0x12d   :  { %837 = vst.msk [vmem:[#allocation4 + $0x1c] sm:$0xf] %vm264_vm2, %v836_v24  ;;  %v475_v57 = vpop.f32.mrf.mxu2  ;;  %v1233_v24 = vld [vmem:[#allocation3 + $0x110] sm:$0xf] }
 0x12e   :  { %957 = vst.msk [vmem:[#allocation4] sm:$0xf] %vm264_vm2, %v956_v25  ;;  %v1230_v25 = vld [vmem:[#allocation3 + $0x108] sm:$0xf] }
 0x12f   :  { %959 = vst.msk [vmem:[#allocation4 + $0x4] sm:$0xf] %vm264_vm2, %v958_v28  ;;  %1545 = vmatmul.msk.f32.vlgmr.msra.gmra.mxu3 %vm204_vm3, %v905_v26 }
 0x130   :  { %v840_v30 = vld [vmem:[#allocation4 + $0x10] sm:$0xff]  ;;  %1538 = vmatmul.msk.f32.gmra.mxu1 %vm204_vm3, %v774_v23  ;;  %1344 = vmatpush.msra.mxu3 %v1574_v39  ;;  %v1168_v23 = vld [vmem:[#allocation3 + $0xd8] sm:$0xf] }
 0x131   :  { %898 = vst.msk [vmem:[#allocation4 + $0x10] sm:$0xf] %vm264_vm2, %v897_v29  ;;  %1542 = vmatmul.msk.f32.gmra.mxu2 %vm204_vm3, %v840_v30 }
 0x132   :  { %900 = vst.msk [vmem:[#allocation4 + $0x14] sm:$0xf] %vm264_vm2, %v899_v31  ;;  %v906_v33 = vld [vmem:[#allocation4 + $0x8] sm:$0xff] }
 0x133   :  { %961 = vst.msk [vmem:[#allocation4 + $0x8] sm:$0xf] %vm264_vm2, %v960_v32  ;;  %v1173_v31 = vld [vmem:[#allocation3 + $0xe8] sm:$0xf]  ;;  %v1170_v32 = vld [vmem:[#allocation3 + $0xe0] sm:$0xf] }
 0x134   :  { %v841_v36 = vld [vmem:[#allocation4 + $0x18] sm:$0xff]  ;;  %963 = vst.msk [vmem:[#allocation4 + $0xc] sm:$0xf] %vm264_vm2, %v962_v34 }
 0x135   :  { %902 = vst.msk [vmem:[#allocation4 + $0x18] sm:$0xf] %vm264_vm2, %v901_v35  ;;  %v1295_v35 = vld [vmem:[#allocation3 + $0xa9] sm:$0xf] }
 0x136   :  { %904 = vst.msk [vmem:[#allocation4 + $0x1c] sm:$0xf] %vm264_vm2, %v903_v37  ;;  %v972_v41 = vld [vmem:[#allocation4] sm:$0xff]  ;;  %v1297_v37 = vld [vmem:[#allocation3 + $0xb1] sm:$0xf] }
 0x137   :  { %1024 = vst.msk [vmem:[#allocation4] sm:$0xf] %vm264_vm2, %v1023_v40  ;;  %1546 = vmatmul.msk.f32.gmra.mxu3 %vm204_vm3, %v906_v33  ;;  %v1237_v40 = vld [vmem:[#allocation3 + $0x128] sm:$0xf] }
 0x138   :  { %1026 = vst.msk [vmem:[#allocation4 + $0x4] sm:$0xf] %vm264_vm2, %v1025_v42  ;;  %1550 = vmatmul.msk.f32.vlgmr.msrb.gmra.mxu1 %vm204_vm3, %v972_v41  ;;  %v1301_v42 = vld [vmem:[#allocation3 + $0xc1] sm:$0xf] }
 0x139   :  { %v907_v44 = vld [vmem:[#allocation4 + $0x10] sm:$0xff]  ;;  %1584 = vmatpush.msrb.mxu1 %v1918_v21  ;;  %1543 = vmatmul.msk.f32.gmra.mxu2 %vm204_vm3, %v841_v36  ;;  %v478_v10 = vpop.f32.mrf.mxu2 }
 0x13a   :  { %965 = vst.msk [vmem:[#allocation4 + $0x10] sm:$0xf] %vm264_vm2, %v964_v43  ;;  %v1031_v21 = vld [vmem:[#allocation3 + $0x31] sm:$0xf]  ;;  %v1299_v43 = vld [vmem:[#allocation3 + $0xb9] sm:$0xf] }
 0x13b   :  { %967 = vst.msk [vmem:[#allocation4 + $0x14] sm:$0xf] %vm264_vm2, %v966_v45  ;;  %v973_v47 = vld [vmem:[#allocation4 + $0x8] sm:$0xff] }
 0x13c   :  { %1028 = vst.msk [vmem:[#allocation4 + $0x8] sm:$0xf] %vm264_vm2, %v1027_v46  ;;  %v1242_v46 = vld [vmem:[#allocation3 + $0x138] sm:$0xf] }
 0x13d   :  { %1030 = vst.msk [vmem:[#allocation4 + $0xc] sm:$0xf] %vm264_vm2, %v1029_v48  ;;  %v908_v50 = vld [vmem:[#allocation4 + $0x18] sm:$0xff] }
 0x13e   :  { %969 = vst.msk [vmem:[#allocation4 + $0x18] sm:$0xf] %vm264_vm2, %v968_v49 }
 0x13f   :  { %v1039_v53 = vld [vmem:[#allocation4] sm:$0xff]  ;;  %971 = vst.msk [vmem:[#allocation4 + $0x1c] sm:$0xf] %vm264_vm2, %v970_v51  ;;  %1547 = vmatmul.msk.f32.gmra.mxu3 %vm204_vm3, %v907_v44 }
 0x140   :  { %1091 = vst.msk [vmem:[#allocation4] sm:$0xf] %vm264_vm2, %v1090_v52  ;;  %1551 = vmatmul.msk.f32.gmra.mxu1 %vm204_vm3, %v973_v47  ;;  %v1239_v47 = vld [vmem:[#allocation3 + $0x130] sm:$0xf]  ;;  %v1362_v52 = vld [vmem:[#allocation3 + $0xf9] sm:$0xf] }
 0x141   :  { %1093 = vst.msk [vmem:[#allocation4 + $0x4] sm:$0xf] %vm264_vm2, %v1092_v54  ;;  %1555 = vmatmul.msk.f32.vlgmr.msrb.gmra.mxu2 %vm204_vm3, %v1039_v53  ;;  %v481_v28 = vpop.f32.mrf.mxu2  ;;  %v1364_v54 = vld [vmem:[#allocation3 + $0x101] sm:$0xf] }
 0x142   :  { %v974_v55 = vld [vmem:[#allocation4 + $0x10] sm:$0xff] }
 0x143   :  { %1032 = vst.msk [vmem:[#allocation4 + $0x10] sm:$0xf] %vm264_vm2, %v1031_v21  ;;  %v1303_v21 = vld [vmem:[#allocation3 + $0xd1] sm:$0xf] }
 0x144   :  { %1034 = vst.msk [vmem:[#allocation4 + $0x14] sm:$0xf] %vm264_vm2, %v1033_v56  ;;  %v1040_v59 = vld [vmem:[#allocation4 + $0x8] sm:$0xff] }
 0x145   :  { %1095 = vst.msk [vmem:[#allocation4 + $0x8] sm:$0xf] %vm264_vm2, %v1094_v58  ;;  %v1368_v58 = vld [vmem:[#allocation3 + $0x111] sm:$0xf] }
 0x146   :  { %1097 = vst.msk [vmem:[#allocation4 + $0xc] sm:$0xf] %vm264_vm2, %v1096_v60  ;;  %v975_v62 = vld [vmem:[#allocation4 + $0x18] sm:$0xff]  ;;  %v1366_v60 = vld [vmem:[#allocation3 + $0x109] sm:$0xf] }
 0x147   :  { %1036 = vst.msk [vmem:[#allocation4 + $0x18] sm:$0xf] %vm264_vm2, %v1035_v61  ;;  %1548 = vmatmul.msk.f32.gmra.mxu3 %vm204_vm3, %v908_v50 }
 0x148   :  { %1038 = vst.msk [vmem:[#allocation4 + $0x1c] sm:$0xf] %vm264_vm2, %v1037_v63  ;;  %v1106_v3 = vld [vmem:[#allocation4] sm:$0xff]  ;;  %1552 = vmatmul.msk.f32.gmra.mxu1 %vm204_vm3, %v974_v55  ;;  %v1309_v63 = vld [vmem:[#allocation3 + $0xe9] sm:$0xf] }
 0x149   :  { %1158 = vst.msk [vmem:[#allocation4] sm:$0xf] %vm264_vm2, %v1157_v1  ;;  %1556 = vmatmul.msk.f32.gmra.mxu2 %vm204_vm3, %v1040_v59  ;;  %v484_v48 = vpop.f32.mrf.mxu2 }
 0x14a   :  { %1160 = vst.msk [vmem:[#allocation4 + $0x4] sm:$0xf] %vm264_vm2, %v1159_v4  ;;  %v1370_v4 = vld [vmem:[#allocation3 + $0x121] sm:$0xf] }
 0x14b   :  { %v434_v0 = vpop.f32.mrf.mxu1  ;;  %v1041_v6 = vld [vmem:[#allocation4 + $0x10] sm:$0xff] }
 0x14c   :  { %v476_v2 = vadd.f32 %v475_v57, %v434_v0  ;;  %1099 = vst.msk [vmem:[#allocation4 + $0x10] sm:$0xf] %vm264_vm2, %v1098_v5  ;;  %v1305_v57 = vld [vmem:[#allocation3 + $0xd9] sm:$0xf]  ;;  %v1307_v0 = vld [vmem:[#allocation3 + $0xe1] sm:$0xf] }
 0x14d   :  { %1101 = vst.msk [vmem:[#allocation4 + $0x14] sm:$0xf] %vm264_vm2, %v1100_v7  ;;  %v1107_v11 = vld [vmem:[#allocation4 + $0x8] sm:$0xff] }
 0x14e   :  { %1162 = vst.msk [vmem:[#allocation4 + $0x8] sm:$0xf] %vm264_vm2, %v1161_v9 }
 0x14f   :  { %v1042_v14 = vld [vmem:[#allocation4 + $0x18] sm:$0xff]  ;;  %1165 = vst.msk [vmem:[#allocation4 + $0xc] sm:$0xf] %vm264_vm2, %v1164_v8  ;;  %1560 = vmatmul.msk.f32.vlgmr.msrb.gmra.mxu3 %vm204_vm3, %v1106_v3 }
 0x150   :  { %1103 = vst.msk [vmem:[#allocation4 + $0x18] sm:$0xf] %vm264_vm2, %v1102_v12  ;;  %1553 = vmatmul.msk.f32.gmra.mxu1 %vm204_vm3, %v975_v62 }
 0x151   :  { %1105 = vst.msk [vmem:[#allocation4 + $0x1c] sm:$0xf] %vm264_vm2, %v1104_v15  ;;  %v1175_v18 = vld [vmem:[#allocation4] sm:$0xff]  ;;  %1557 = vmatmul.msk.f32.gmra.mxu2 %vm204_vm3, %v1041_v6  ;;  %v1372_v6 = vld [vmem:[#allocation3 + $0x129] sm:$0xf] }
 0x152   :  { %1227 = vst.msk [vmem:[#allocation4] sm:$0xf] %vm264_vm2, %v1226_v17 }
 0x153   :  { %v437_v13 = vpop.f32.mrf.mxu1  ;;  %1229 = vst.msk [vmem:[#allocation4 + $0x4] sm:$0xf] %vm264_vm2, %v1228_v19 }
 0x154   :  { %v479_v16 = vadd.f32 %v478_v10, %v437_v13  ;;  %v1108_v22 = vld [vmem:[#allocation4 + $0x10] sm:$0xff]  ;;  %v1376_v13 = vld [vmem:[#allocation3 + $0x139] sm:$0xf] }
 0x155   :  { %1167 = vst.msk [vmem:[#allocation4 + $0x10] sm:$0xf] %vm264_vm2, %v1166_v20 }
 0x156   :  { %1169 = vst.msk [vmem:[#allocation4 + $0x14] sm:$0xf] %vm264_vm2, %v1168_v23  ;;  %v1176_v27 = vld [vmem:[#allocation4 + $0x8] sm:$0xff] }
 0x157   :  { %1231 = vst.msk [vmem:[#allocation4 + $0x8] sm:$0xf] %vm264_vm2, %v1230_v25  ;;  %1561 = vmatmul.msk.f32.gmra.mxu3 %vm204_vm3, %v1107_v11 }
 0x158   :  { %v1109_v34 = vld [vmem:[#allocation4 + $0x18] sm:$0xff]  ;;  %1234 = vst.msk [vmem:[#allocation4 + $0xc] sm:$0xf] %vm264_vm2, %v1233_v24  ;;  %1565 = vmatmul.msk.f32.vlgmr.msra.gmra.mxu1 %vm204_vm3, %v1175_v18 }
 0x159   :  { %1171 = vst.msk [vmem:[#allocation4 + $0x18] sm:$0xf] %vm264_vm2, %v1170_v32  ;;  %1558 = vmatmul.msk.f32.gmra.mxu2 %vm204_vm3, %v1042_v14  ;;  %v1374_v14 = vld [vmem:[#allocation3 + $0x131] sm:$0xf] }
 0x15a   :  { %v538_v26 = vpop.f32.mrf.mxu3  ;;  %v1244_v36 = vld [vmem:[#allocation4] sm:$0xff]  ;;  %1174 = vst.msk [vmem:[#allocation4 + $0x1c] sm:$0xf] %vm264_vm2, %v1173_v31 }
 0x15b   :  { %v2056_v29 = vadd.f32 %v538_v26, %v476_v2  ;;  %v440_v30 = vpop.f32.mrf.mxu1  ;;  %1296 = vst.msk [vmem:[#allocation4] sm:$0xf] %vm264_vm2, %v1295_v35 }
 0x15c   :  { %v482_v33 = vadd.f32 %v481_v28, %v440_v30  ;;  %1298 = vst.msk [vmem:[#allocation4 + $0x4] sm:$0xf] %vm264_vm2, %v1297_v37 }
 0x15d   :  { %v1177_v39 = vld [vmem:[#allocation4 + $0x10] sm:$0xff] }
 0x15e   :  { %1236 = vst.msk [vmem:[#allocation4 + $0x10] sm:$0xf] %vm264_vm2, %v1235_v38 }
 0x15f   :  { %1238 = vst.msk [vmem:[#allocation4 + $0x14] sm:$0xf] %vm264_vm2, %v1237_v40  ;;  %v1245_v45 = vld [vmem:[#allocation4 + $0x8] sm:$0xff]  ;;  %1562 = vmatmul.msk.f32.gmra.mxu3 %vm204_vm3, %v1108_v22 }
 0x160   :  { %1300 = vst.msk [vmem:[#allocation4 + $0x8] sm:$0xf] %vm264_vm2, %v1299_v43  ;;  %1566 = vmatmul.msk.f32.gmra.mxu1 %vm204_vm3, %v1176_v27 }
 0x161   :  { %1302 = vst.msk [vmem:[#allocation4 + $0xc] sm:$0xf] %vm264_vm2, %v1301_v42  ;;  %v1178_v50 = vld [vmem:[#allocation4 + $0x18] sm:$0xff]  ;;  %1570 = vmatmul.msk.f32.vlgmr.msra.gmra.mxu2 %vm204_vm3, %v1244_v36 }
 0x162   :  { %v541_v41 = vpop.f32.mrf.mxu3  ;;  %1240 = vst.msk [vmem:[#allocation4 + $0x18] sm:$0xf] %vm264_vm2, %v1239_v47 }
 0x163   :  { %v551_v44 = vadd.f32 %v541_v41, %v479_v16  ;;  %v1311_v53 = vld [vmem:[#allocation4] sm:$0xff]  ;;  %1243 = vst.msk [vmem:[#allocation4 + $0x1c] sm:$0xf] %vm264_vm2, %v1242_v46 }
 0x164   :  { %1363 = vst.msk [vmem:[#allocation4] sm:$0xf] %vm264_vm2, %v1362_v52 }
 0x165   :  { %1365 = vst.msk [vmem:[#allocation4 + $0x4] sm:$0xf] %vm264_vm2, %v1364_v54 }
 0x166   :  { %v443_v49 = vpop.f32.mrf.mxu1  ;;  %v1246_v56 = vld [vmem:[#allocation4 + $0x10] sm:$0xff] }
 0x167   :  { %v485_v51 = vadd.f32 %v484_v48, %v443_v49  ;;  %1304 = vst.msk [vmem:[#allocation4 + $0x10] sm:$0xf] %vm264_vm2, %v1303_v21  ;;  %1563 = vmatmul.msk.f32.gmra.mxu3 %vm204_vm3, %v1109_v34 }
 0x168   :  { %v1312_v61 = vld [vmem:[#allocation4 + $0x8] sm:$0xff]  ;;  %1306 = vst.msk [vmem:[#allocation4 + $0x14] sm:$0xf] %vm264_vm2, %v1305_v57  ;;  %1567 = vmatmul.msk.f32.gmra.mxu1 %vm204_vm3, %v1177_v39 }
 0x169   :  { %1367 = vst.msk [vmem:[#allocation4 + $0x8] sm:$0xf] %vm264_vm2, %v1366_v60  ;;  %1571 = vmatmul.msk.f32.gmra.mxu2 %vm204_vm3, %v1245_v45 }
 0x16a   :  { %v544_v55 = vpop.f32.mrf.mxu3  ;;  %1369 = vst.msk [vmem:[#allocation4 + $0xc] sm:$0xf] %vm264_vm2, %v1368_v58  ;;  %v1247_v2 = vld [vmem:[#allocation4 + $0x18] sm:$0xff] }
 0x16b   :  { %v552_v59 = vadd.f32 %v544_v55, %v482_v33  ;;  %1308 = vst.msk [vmem:[#allocation4 + $0x18] sm:$0xf] %vm264_vm2, %v1307_v0 }
 0x16c   :  { %v1378_v3 = vld [vmem:[#allocation4] sm:$0xff]  ;;  %1310 = vst.msk [vmem:[#allocation4 + $0x1c] sm:$0xf] %vm264_vm2, %v1309_v63 }
 0x16d   :  { %1580 = vmatmul.msk.f32.vlgmr.msrb.gmra.mxu0 %vm204_vm3, %v1378_v3 }
 0x16e   :  { %v605_v62 = vpop.f32.mrf.mxu1 }
 0x16f   :  { %v617_v1 = vadd.f32 %v605_v62, %v2056_v29  ;;  %v1313_v5 = vld [vmem:[#allocation4 + $0x10] sm:$0xff]  ;;  %1575 = vmatmul.msk.f32.vlgmr.msra.gmra.mxu3 %vm204_vm3, %v1311_v53 }
 0x170   :  { %1371 = vst.msk [vmem:[#allocation4 + $0x10] sm:$0xf] %vm264_vm2, %v1370_v4  ;;  %1568 = vmatmul.msk.f32.gmra.mxu1 %vm204_vm3, %v1178_v50 }
 0x171   :  { %1373 = vst.msk [vmem:[#allocation4 + $0x14] sm:$0xf] %vm264_vm2, %v1372_v6  ;;  %v1379_v10 = vld [vmem:[#allocation4 + $0x8] sm:$0xff]  ;;  %1572 = vmatmul.msk.f32.gmra.mxu2 %vm204_vm3, %v1246_v56 }
 0x173   :  { %v1314_v16 = vld [vmem:[#allocation4 + $0x18] sm:$0xff] }
 0x174   :  { %1375 = vst.msk [vmem:[#allocation4 + $0x18] sm:$0xf] %vm264_vm2, %v1374_v14 }
 0x175   :  { %v547_v7 = vpop.f32.mrf.mxu3  ;;  %1581 = vmatmul.msk.f32.gmra.mxu0 %vm204_vm3, %v1379_v10  ;;  %1377 = vst.msk [vmem:[#allocation4 + $0x1c] sm:$0xf] %vm264_vm2, %v1376_v13 }
 0x176   :  { %v553_v8 = vadd.f32 %v547_v7, %v485_v51  ;;  %v608_v9 = vpop.f32.mrf.mxu1 }
 0x177   :  { %v672_v11 = vpop.f32.mrf.mxu2  ;;  %v618_v12 = vadd.f32 %v608_v9, %v551_v44  ;;  %1576 = vmatmul.msk.f32.gmra.mxu3 %vm204_vm3, %v1312_v61 }
 0x178   :  { %v684_v15 = vadd.f32 %v672_v11, %v617_v1  ;;  %v1380_v18 = vld [vmem:[#allocation4 + $0x10] sm:$0xff] }
 0x179   :  { %1573 = vmatmul.msk.f32.gmra.mxu2 %vm204_vm3, %v1247_v2 }
 0x17c   :  { %v1381_v20 = vld [vmem:[#allocation4 + $0x18] sm:$0xff] }
 0x17d   :  { %1582 = vmatmul.msk.f32.gmra.mxu0 %vm204_vm3, %v1380_v18  ;;  %1583 = vmatmul.msk.f32.vlgmr.msrb.gmra.mxu1 %vm204_vm3, %v1381_v20 }
 0x17e   :  { %v611_v17 = vpop.f32.mrf.mxu1 }
 0x17f   :  { %v619_v19 = vadd.f32 %v611_v17, %v552_v59  ;;  %1577 = vmatmul.msk.f32.gmra.mxu3 %vm204_vm3, %v1313_v5 }
 0x181   :  { %v675_v22 = vpop.f32.mrf.mxu2 }
 0x182   :  { %v685_v23 = vadd.f32 %v675_v22, %v618_v12 }
 0x186   :  { %v614_v24 = vpop.f32.mrf.mxu1 }
 0x187   :  { %v620_v25 = vadd.f32 %v614_v24, %v553_v8  ;;  %1578 = vmatmul.msk.f32.gmra.mxu3 %vm204_vm3, %v1314_v16  ;;  %vm1449_vm3 = vcmask 130048  }
 0x189   :  { %v678_v26 = vpop.f32.mrf.mxu2 }
 0x18a   :  { %v686_v27 = vadd.f32 %v678_v26, %v619_v19 }
 0x191   :  { %v681_v28 = vpop.f32.mrf.mxu2 }
 0x192   :  { %v687_v29 = vadd.f32 %v681_v28, %v620_v25  ;;  %v739_v30 = vpop.f32.mrf.mxu3 }
 0x193   :  { %v751_v31 = vadd.f32 %v739_v30, %v684_v15 }
 0x195   :  { %v806_v32 = vpop.f32.mrf.mxu1 }
 0x196   :  { %v818_v59 = vadd.f32 %v806_v32, %v751_v31 }
 0x19a   :  { %v742_v33 = vpop.f32.mrf.mxu3 }
 0x19b   :  { %v752_v34 = vadd.f32 %v742_v33, %v685_v23 }
 0x19d   :  { %v809_v35 = vpop.f32.mrf.mxu1 }
 0x19e   :  { %v819_v0 = vadd.f32 %v809_v35, %v752_v34 }
 0x1a2   :  { %v745_v36 = vpop.f32.mrf.mxu3 }
 0x1a3   :  { %v753_v37 = vadd.f32 %v745_v36, %v686_v27  ;;  %v1441_v27 = vld [vmem:[%s2125_s3] sm:$0xff] }
 0x1a4   :  { %v873_v38 = vpop.f32.mrf.mxu2 }
 0x1a5   :  { %v812_v39 = vpop.f32.mrf.mxu1  ;;  %v885_v60 = vadd.f32 %v873_v38, %v818_v59 }
 0x1a6   :  { %v820_v9 = vadd.f32 %v812_v39, %v753_v37 }
 0x1aa   :  { %v748_v40 = vpop.f32.mrf.mxu3 }
 0x1ab   :  { %v754_v41 = vadd.f32 %v748_v40, %v687_v29 }
 0x1ac   :  { %v876_v42 = vpop.f32.mrf.mxu2 }
 0x1ad   :  { %v815_v43 = vpop.f32.mrf.mxu1  ;;  %v886_v3 = vadd.f32 %v876_v42, %v819_v0 }
 0x1ae   :  { %v821_v23 = vadd.f32 %v815_v43, %v754_v41 }
 0x1b2   :  { %v940_v44 = vpop.f32.mrf.mxu3 }
 0x1b3   :  { %v952_v62 = vadd.f32 %v940_v44, %v885_v60 }
 0x1b4   :  { %v879_v45 = vpop.f32.mrf.mxu2 }
 0x1b5   :  { %v1007_v47 = vpop.f32.mrf.mxu1  ;;  %v887_v13 = vadd.f32 %v879_v45, %v820_v9  ;;  %v1442_v45 = vld [vmem:[%s2125_s3 + $0x8] sm:$0xff] }
 0x1b6   :  { %v1019_v1 = vadd.f32 %v1007_v47, %v952_v62 }
 0x1ba   :  { %v943_v46 = vpop.f32.mrf.mxu3 }
 0x1bb   :  { %v953_v6 = vadd.f32 %v943_v46, %v886_v3 }
 0x1bc   :  { %v882_v48 = vpop.f32.mrf.mxu2 }
 0x1bd   :  { %v1010_v50 = vpop.f32.mrf.mxu1  ;;  %v888_v28 = vadd.f32 %v882_v48, %v821_v23 }
 0x1be   :  { %v1020_v10 = vadd.f32 %v1010_v50, %v953_v6 }
 0x1c2   :  { %v946_v49 = vpop.f32.mrf.mxu3 }
 0x1c3   :  { %v954_v18 = vadd.f32 %v946_v49, %v887_v13 }
 0x1c4   :  { %v1074_v51 = vpop.f32.mrf.mxu2 }
 0x1c5   :  { %v1013_v54 = vpop.f32.mrf.mxu1  ;;  %v1086_v4 = vadd.f32 %v1074_v51, %v1019_v1 }
 0x1c6   :  { %v1021_v24 = vadd.f32 %v1013_v54, %v954_v18 }
 0x1ca   :  { %v949_v52 = vpop.f32.mrf.mxu3 }
 0x1cb   :  { %v955_v36 = vadd.f32 %v949_v52, %v888_v28 }
 0x1cc   :  { %v1077_v53 = vpop.f32.mrf.mxu2 }
 0x1cd   :  { %v1016_v56 = vpop.f32.mrf.mxu1  ;;  %v1087_v14 = vadd.f32 %v1077_v53, %v1020_v10 }
 0x1ce   :  { %v1022_v42 = vadd.f32 %v1016_v56, %v955_v36 }
 0x1d2   :  { %v1141_v21 = vpop.f32.mrf.mxu3 }
 0x1d3   :  { %v1153_v7 = vadd.f32 %v1141_v21, %v1086_v4 }
 0x1d4   :  { %v1080_v55 = vpop.f32.mrf.mxu2 }
 0x1d5   :  { %v1210_v63 = vpop.f32.mrf.mxu1  ;;  %v1088_v30 = vadd.f32 %v1080_v55, %v1021_v24 }
 0x1d6   :  { %v1222_v11 = vadd.f32 %v1210_v63, %v1153_v7 }
 0x1da   :  { %v1144_v57 = vpop.f32.mrf.mxu3 }
 0x1db   :  { %v1154_v19 = vadd.f32 %v1144_v57, %v1087_v14 }
 0x1dc   :  { %v1083_v58 = vpop.f32.mrf.mxu2 }
 0x1dd   :  { %v1213_v8 = vpop.f32.mrf.mxu1  ;;  %v1089_v46 = vadd.f32 %v1083_v58, %v1022_v42  ;;  %v1443_v58 = vld [vmem:[%s2125_s3 + $0x10] sm:$0xff] }
 0x1de   :  { %v1223_v25 = vadd.f32 %v1213_v8, %v1154_v19 }
 0x1e2   :  { %v1147_v61 = vpop.f32.mrf.mxu3 }
 0x1e3   :  { %v1155_v37 = vadd.f32 %v1147_v61, %v1088_v30 }
 0x1e4   :  { %v1279_v2 = vpop.f32.mrf.mxu2 }
 0x1e5   :  { %v1291_v15 = vadd.f32 %v1279_v2, %v1222_v11  ;;  %v1216_v29 = vpop.f32.mrf.mxu1 }
 0x1e6   :  { %v1224_v43 = vadd.f32 %v1216_v29, %v1155_v37 }
 0x1ea   :  { %v1150_v5 = vpop.f32.mrf.mxu3  ;;  %v1413_v12 = vpop.f32.mrf.mxu0 }
 0x1eb   :  { %v1156_v52 = vadd.f32 %v1150_v5, %v1089_v46  ;;  %v1444_v5 = vld [vmem:[%s2125_s3 + $0x18] sm:$0xff] }
 0x1ec   :  { %v1282_v16 = vpop.f32.mrf.mxu2 }
 0x1ed   :  { %v1292_v31 = vadd.f32 %v1282_v16, %v1223_v25  ;;  %v1219_v49 = vpop.f32.mrf.mxu1 }
 0x1ee   :  { %v1225_v57 = vadd.f32 %v1219_v49, %v1156_v52 }
 0x1f2   :  { %v1346_v17 = vpop.f32.mrf.mxu3  ;;  %v1416_v33 = vpop.f32.mrf.mxu0 }
 0x1f3   :  { %v1358_v20 = vadd.f32 %v1346_v17, %v1291_v15 }
 0x1f4   :  { %v1285_v39 = vpop.f32.mrf.mxu2 }
 0x1f5   :  { %v1425_v22 = vadd.f32 %v1413_v12, %v1358_v20  ;;  %v1293_v47 = vadd.f32 %v1285_v39, %v1224_v43 }
 0x1f7   :  { %v1433_v26 = vmul.f32 0.2, %v1425_v22  ;;  %vm1429_vm2 = vcmp.gt.f32.partialorder %v1425_v22, 0.0 }
 0x1f9   :  { %v1437_v32 = vsel %vm1429_vm2, %v1425_v22, %v1433_v26 }
 0x1fa   :  { %v1349_v34 = vpop.f32.mrf.mxu3  ;;  %v1445_v35 = vmul.f32 %v1441_v27, %v1437_v32  ;;  %v1419_v54 = vpop.f32.mrf.mxu0 }
 0x1fb   :  { %v1359_v38 = vadd.f32 %v1349_v34, %v1292_v31  ;;  %v1422_v1 = vpop.f32.mrf.mxu1 }
 0x1fc   :  { %v1450_v40 = vsel %vm1449_vm3, %v1445_v35, 0.0  ;;  %v1288_v56 = vpop.f32.mrf.mxu2 }
 0x1fd   :  { %v1426_v41 = vadd.f32 %v1416_v33, %v1359_v38  ;;  %1451 = vadd.xlane.f32.xlu0 %v1450_v40  ;;  %v1294_v60 = vadd.f32 %v1288_v56, %v1225_v57 }
 0x1ff   :  { %v1434_v44 = vmul.f32 0.2, %v1426_v41  ;;  %vm1430_vm6 = vcmp.gt.f32.partialorder %v1426_v41, 0.0 }
 0x201   :  { %v1438_v48 = vsel %vm1430_vm6, %v1426_v41, %v1434_v44 }
 0x202   :  { %v1352_v50 = vpop.f32.mrf.mxu3  ;;  %v1446_v51 = vmul.f32 %v1442_v45, %v1438_v48 }
 0x203   :  { %v1360_v53 = vadd.f32 %v1352_v50, %v1293_v47 }
 0x204   :  { %v1453_v21 = vsel %vm1449_vm3, %v1446_v51, 0.0 }
 0x205   :  { %v1427_v55 = vadd.f32 %v1419_v54, %v1360_v53  ;;  %1454 = vadd.xlane.f32.xlu0 %v1453_v21 }
 0x207   :  { %v1435_v59 = vmul.f32 0.2, %v1427_v55  ;;  %vm1431_vm7 = vcmp.gt.f32.partialorder %v1427_v55, 0.0 }
 0x209   :  { %v1439_v61 = vsel %vm1431_vm7, %v1427_v55, %v1435_v59 }
 0x20a   :  { %v1355_v62 = vpop.f32.mrf.mxu3  ;;  %v1447_v63 = vmul.f32 %v1443_v58, %v1439_v61 }
 0x20b   :  { %v1361_v0 = vadd.f32 %v1355_v62, %v1294_v60 }
 0x20c   :  { %v1456_v2 = vsel %vm1449_vm3, %v1447_v63, 0.0 }
 0x20d   :  { %v1428_v3 = vadd.f32 %v1422_v1, %v1361_v0  ;;  %1457 = vadd.xlane.f32.xlu1 %v1456_v2 }
 0x20f   :  { %v1436_v4 = vmul.f32 0.2, %v1428_v3  ;;  %vm1432_vm8 = vcmp.gt.f32.partialorder %v1428_v3, 0.0 }
 0x211   :  { %v1440_v6 = vsel %vm1432_vm8, %v1428_v3, %v1436_v4 }
 0x212   :  { %v1448_v7 = vmul.f32 %v1444_v5, %v1440_v6 }
 0x214   :  { %v1459_v8 = vsel %vm1449_vm3, %v1448_v7, 0.0 }
 0x215   :  { %1460 = vadd.xlane.f32.xlu1 %v1459_v8 }
 0x270   :  { %v1452_v9 = vpop.xlane.xlu0 %1451 }
 0x278   :  { %v1455_v11 = vpop.xlane.xlu0 %1454 }
 0x279   :  { %v1462_v12 = vadd.f32 %v1455_v11, %v1452_v9 }
 0x280   :  { %v1458_v10 = vpop.xlane.xlu1 %1457 }
 0x281   :  { %v1463_v13 = vadd.f32 %v1462_v12, %v1458_v10 }
 0x288   :  { %v1461_v14 = vpop.xlane.xlu1 %1460 }
 0x289   :  { %v1464_v15 = vadd.f32 %v1463_v13, %v1461_v14 }
 0x28b   :  { %v1465_v16 = vrot.slane %v1464_v15, 4 }
 0x28d   :  { %v1466_v17 = vadd.f32 %v1465_v16, %v1464_v15 }
 0x28f   :  { %v1467_v18 = vrot.slane %v1466_v17, 2 }
 0x291   :  { %v1468_v19 = vadd.f32 %v1467_v18, %v1466_v17 }
 0x293   :  { %v1469_v20 = vrot.slane %v1468_v19, 1 }
 0x295   :  { %v1470_v22 = vadd.f32 %v1469_v20, %v1468_v19 }
 0x297   :  { %v1471_v23 = vmul.f32 0.5, %v1470_v22 }
 0x299   :  { %1472 = vst [vmem:[#allocation5] sm:$0x1] %v1471_v23 }
 0x29a   :  { %1483 = dma.vmem_to_hbm [thread:$0]  %s1479_s20, 16, %s1481_s22, [#allocation6]  }
 0x29b   :  { %1611 = dma.done.wait [#allocation6], 16  }
 0x29c   :  { %1612 = vsyncadd [#allocation6], 4294967280 }
 0x29d   :  { %1488 = vsyncpa [#allocation6], 1 }

</bundles_post_ra>
